<compile_context>
chip_gen: v7x
topology: tpu7x:2x2x1
jax: 0.10.0
libtpu: 0.0.40
codegen_flags: <defaults>
</compile_context>

<pallas_src>
import functools

import jax
import jax.numpy as jnp
from jax import lax
from jax.experimental import pallas as pl
from jax.experimental.pallas import tpu as pltpu

K = 3  # kernel size (fixed by the module)


def _fused_conv_kernel(x_ref, w_ref, b_ref, o_ref, *, n, cin, cout):
    """n chained 3x3 valid convs, batch packed along lanes, full planes + rolls.

    x_ref : (Cin, H, N*W)        VMEM   lane index l = img*W + w
    w_ref : (Cout*Cin*K*K,)      SMEM   flattened Conv2d weight (OIHW order)
    b_ref : (Cout,)              SMEM
    o_ref : (Cout, H, N*W)       VMEM   full planes; valid region cropped by caller
    """
    _, H, L = x_ref.shape  # L = N*W

    # ---- hoist all scalar parameter reads out of the MAC loops -------------
    wts = [[[[w_ref[((co * cin + ci) * K + kh) * K + kw]
              for kw in range(K)]
             for kh in range(K)]
            for ci in range(cin)]
           for co in range(cout)]
    # Bias splats hoisted out of the n-step loop (JAX does not CSE broadcasts).
    bias_planes = [jnp.full((H, L), b_ref[co], dtype=jnp.float32)
                   for co in range(cout)]

    # Current feature map: one f32 (H, L) plane per input channel.
    planes = [x_ref[ci].astype(jnp.float32) for ci in range(cin)]

    # n is static -> unrolled Python loop; shapes stay (H, L) for every step.
    for _step in range(n):
        # 9 lane-rolled taps (ci x kw): rolled[h, l] = plane[h, l + kw].
        # Live set stays at cin*K = 9 full planes (plus accumulators).
        lane_taps = [[planes[ci] if kw == 0
                      else pltpu.roll(planes[ci], shift=L - kw, axis=1)
                      for kw in range(K)]
                     for ci in range(cin)]

        new_planes = []
        for co in range(cout):
            acc = bias_planes[co]
            for kh in range(K):
                # Partial sum over (ci, kw) for this kernel row, then one
                # sublane roll to realize the kh shift: partial[h+kh] -> [h].
                partial = None
                for ci in range(cin):
                    for kw in range(K):
                        term = wts[co][ci][kh][kw] * lane_taps[ci][kw]
                        partial = term if partial is None else partial + term
                if kh:
                    partial = pltpu.roll(partial, shift=H - kh, axis=0)
                acc = acc + partial
            new_planes.append(acc)
        planes = new_planes

    # Direct per-channel stores of the full planes (row-dense vst).
    for co in range(cout):
        o_ref[co] = planes[co].astype(o_ref.dtype)


def model_forward(x, w, b, n):
    """Apply Conv2d(3, 3, 3) n times — single fused, grid-less pallas_call."""
    N, Cin, H, W = x.shape
    Cout = w.shape[0]

    if n == 0:
        return x
    Ho = H - n * (K - 1)
    Wo = W - n * (K - 1)
    if Ho <= 0 or Wo <= 0:
        raise ValueError(
            f"n={n} conv steps of size {K} do not fit spatial dims ({H},{W})")

    L = N * W
    # Pack the batch into the lane axis: (Cin, H, N*W), lane = img*W + w.
    x_packed = jnp.transpose(x, (1, 2, 0, 3)).reshape(Cin, H, L)

    kernel = functools.partial(_fused_conv_kernel, n=n, cin=Cin, cout=Cout)

    out_full = pl.pallas_call(
        kernel,
        out_shape=jax.ShapeDtypeStruct((Cout, H, L), x.dtype),
        in_specs=[
            pl.BlockSpec(memory_space=pltpu.MemorySpace.VMEM),
            pl.BlockSpec(memory_space=pltpu.MemorySpace.SMEM),
            pl.BlockSpec(memory_space=pltpu.MemorySpace.SMEM),
        ],
        out_specs=pl.BlockSpec(memory_space=pltpu.MemorySpace.VMEM),
    )(x_packed, w.reshape(-1), b)

    # Single crop of the valid region, outside the kernel (tiny relayout).
    out = out_full.reshape(Cout, H, N, W)[:, :Ho, :, :Wo]   # (Cout, Ho, N, Wo)
    return jnp.transpose(out, (2, 0, 1, 3))                 # (N, Cout, Ho, Wo)


def _reference_forward(x, w, b, n):
    for _ in range(n):
        x = lax.conv_general_dilated(
            x, w, window_strides=(1, 1), padding="VALID",
            dimension_numbers=("NCHW", "OIHW", "NCHW"),
        ) + b.reshape(1, -1, 1, 1)
    return x


if __name__ == "__main__":
    key = jax.random.PRNGKey(0)
    kx, kw_, kb = jax.random.split(key, 3)

    n = 3                       # Model(n=3)
    N, C, H, W = 2, 3, 16, 16   # small NCHW input, C fixed at 3 by the module

    x = jax.random.normal(kx, (N, C, H, W), dtype=jnp.float32)
    # deterministic Conv2d(3, 3, 3) parameters (synthetic, not a checkpoint)
    fan_in = C * K * K
    bound = 1.0 / (fan_in ** 0.5)
    w = jax.random.uniform(kw_, (3, 3, K, K), jnp.float32, -bound, bound)
    b = jax.random.uniform(kb, (3,), jnp.float32, -bound, bound)

    out = jax.block_until_ready(model_forward(x, w, b, n))

    ref = _reference_forward(x, w, b, n)
    assert out.shape == (N, 3, H - 2 * n, W - 2 * n), out.shape
    assert jnp.allclose(out, ref, rtol=1e-4, atol=1e-4), "mismatch vs reference"

    print("KERNEL_OK")
</pallas_src>

<mosaic_0001>
module attributes {stable_mosaic.version = 11 : i64} {
  func.func @_fused_conv_kernel(%arg0: memref<3x16x32xf32, #tpu.memory_space<vmem>>, %arg1: memref<81xf32, #tpu.memory_space<smem>>, %arg2: memref<3xf32, #tpu.memory_space<smem>>, %arg3: memref<3x16x32xf32, #tpu.memory_space<vmem>>) attributes {dimension_semantics = [], scalar_prefetch = 0 : i64, scratch_operands = 0 : i64, tpu.core_type = #tpu.core_type<tc>} {
    %c0 = arith.constant 0 : index
    %0 = memref.load %arg1[%c0] : memref<81xf32, #tpu.memory_space<smem>>
    %c1 = arith.constant 1 : index
    %1 = memref.load %arg1[%c1] : memref<81xf32, #tpu.memory_space<smem>>
    %c2 = arith.constant 2 : index
    %2 = memref.load %arg1[%c2] : memref<81xf32, #tpu.memory_space<smem>>
    %c3 = arith.constant 3 : index
    %3 = memref.load %arg1[%c3] : memref<81xf32, #tpu.memory_space<smem>>
    %c4 = arith.constant 4 : index
    %4 = memref.load %arg1[%c4] : memref<81xf32, #tpu.memory_space<smem>>
    %c5 = arith.constant 5 : index
    %5 = memref.load %arg1[%c5] : memref<81xf32, #tpu.memory_space<smem>>
    %c6 = arith.constant 6 : index
    %6 = memref.load %arg1[%c6] : memref<81xf32, #tpu.memory_space<smem>>
    %c7 = arith.constant 7 : index
    %7 = memref.load %arg1[%c7] : memref<81xf32, #tpu.memory_space<smem>>
    %c8 = arith.constant 8 : index
    %8 = memref.load %arg1[%c8] : memref<81xf32, #tpu.memory_space<smem>>
    %c9 = arith.constant 9 : index
    %9 = memref.load %arg1[%c9] : memref<81xf32, #tpu.memory_space<smem>>
    %c10 = arith.constant 10 : index
    %10 = memref.load %arg1[%c10] : memref<81xf32, #tpu.memory_space<smem>>
    %c11 = arith.constant 11 : index
    %11 = memref.load %arg1[%c11] : memref<81xf32, #tpu.memory_space<smem>>
    %c12 = arith.constant 12 : index
    %12 = memref.load %arg1[%c12] : memref<81xf32, #tpu.memory_space<smem>>
    %c13 = arith.constant 13 : index
    %13 = memref.load %arg1[%c13] : memref<81xf32, #tpu.memory_space<smem>>
    %c14 = arith.constant 14 : index
    %14 = memref.load %arg1[%c14] : memref<81xf32, #tpu.memory_space<smem>>
    %c15 = arith.constant 15 : index
    %15 = memref.load %arg1[%c15] : memref<81xf32, #tpu.memory_space<smem>>
    %c16 = arith.constant 16 : index
    %16 = memref.load %arg1[%c16] : memref<81xf32, #tpu.memory_space<smem>>
    %c17 = arith.constant 17 : index
    %17 = memref.load %arg1[%c17] : memref<81xf32, #tpu.memory_space<smem>>
    %c18 = arith.constant 18 : index
    %18 = memref.load %arg1[%c18] : memref<81xf32, #tpu.memory_space<smem>>
    %c19 = arith.constant 19 : index
    %19 = memref.load %arg1[%c19] : memref<81xf32, #tpu.memory_space<smem>>
    %c20 = arith.constant 20 : index
    %20 = memref.load %arg1[%c20] : memref<81xf32, #tpu.memory_space<smem>>
    %c21 = arith.constant 21 : index
    %21 = memref.load %arg1[%c21] : memref<81xf32, #tpu.memory_space<smem>>
    %c22 = arith.constant 22 : index
    %22 = memref.load %arg1[%c22] : memref<81xf32, #tpu.memory_space<smem>>
    %c23 = arith.constant 23 : index
    %23 = memref.load %arg1[%c23] : memref<81xf32, #tpu.memory_space<smem>>
    %c24 = arith.constant 24 : index
    %24 = memref.load %arg1[%c24] : memref<81xf32, #tpu.memory_space<smem>>
    %c25 = arith.constant 25 : index
    %25 = memref.load %arg1[%c25] : memref<81xf32, #tpu.memory_space<smem>>
    %c26 = arith.constant 26 : index
    %26 = memref.load %arg1[%c26] : memref<81xf32, #tpu.memory_space<smem>>
    %c27 = arith.constant 27 : index
    %27 = memref.load %arg1[%c27] : memref<81xf32, #tpu.memory_space<smem>>
    %c28 = arith.constant 28 : index
    %28 = memref.load %arg1[%c28] : memref<81xf32, #tpu.memory_space<smem>>
    %c29 = arith.constant 29 : index
    %29 = memref.load %arg1[%c29] : memref<81xf32, #tpu.memory_space<smem>>
    %c30 = arith.constant 30 : index
    %30 = memref.load %arg1[%c30] : memref<81xf32, #tpu.memory_space<smem>>
    %c31 = arith.constant 31 : index
    %31 = memref.load %arg1[%c31] : memref<81xf32, #tpu.memory_space<smem>>
    %c32 = arith.constant 32 : index
    %32 = memref.load %arg1[%c32] : memref<81xf32, #tpu.memory_space<smem>>
    %c33 = arith.constant 33 : index
    %33 = memref.load %arg1[%c33] : memref<81xf32, #tpu.memory_space<smem>>
    %c34 = arith.constant 34 : index
    %34 = memref.load %arg1[%c34] : memref<81xf32, #tpu.memory_space<smem>>
    %c35 = arith.constant 35 : index
    %35 = memref.load %arg1[%c35] : memref<81xf32, #tpu.memory_space<smem>>
    %c36 = arith.constant 36 : index
    %36 = memref.load %arg1[%c36] : memref<81xf32, #tpu.memory_space<smem>>
    %c37 = arith.constant 37 : index
    %37 = memref.load %arg1[%c37] : memref<81xf32, #tpu.memory_space<smem>>
    %c38 = arith.constant 38 : index
    %38 = memref.load %arg1[%c38] : memref<81xf32, #tpu.memory_space<smem>>
    %c39 = arith.constant 39 : index
    %39 = memref.load %arg1[%c39] : memref<81xf32, #tpu.memory_space<smem>>
    %c40 = arith.constant 40 : index
    %40 = memref.load %arg1[%c40] : memref<81xf32, #tpu.memory_space<smem>>
    %c41 = arith.constant 41 : index
    %41 = memref.load %arg1[%c41] : memref<81xf32, #tpu.memory_space<smem>>
    %c42 = arith.constant 42 : index
    %42 = memref.load %arg1[%c42] : memref<81xf32, #tpu.memory_space<smem>>
    %c43 = arith.constant 43 : index
    %43 = memref.load %arg1[%c43] : memref<81xf32, #tpu.memory_space<smem>>
    %c44 = arith.constant 44 : index
    %44 = memref.load %arg1[%c44] : memref<81xf32, #tpu.memory_space<smem>>
    %c45 = arith.constant 45 : index
    %45 = memref.load %arg1[%c45] : memref<81xf32, #tpu.memory_space<smem>>
    %c46 = arith.constant 46 : index
    %46 = memref.load %arg1[%c46] : memref<81xf32, #tpu.memory_space<smem>>
    %c47 = arith.constant 47 : index
    %47 = memref.load %arg1[%c47] : memref<81xf32, #tpu.memory_space<smem>>
    %c48 = arith.constant 48 : index
    %48 = memref.load %arg1[%c48] : memref<81xf32, #tpu.memory_space<smem>>
    %c49 = arith.constant 49 : index
    %49 = memref.load %arg1[%c49] : memref<81xf32, #tpu.memory_space<smem>>
    %c50 = arith.constant 50 : index
    %50 = memref.load %arg1[%c50] : memref<81xf32, #tpu.memory_space<smem>>
    %c51 = arith.constant 51 : index
    %51 = memref.load %arg1[%c51] : memref<81xf32, #tpu.memory_space<smem>>
    %c52 = arith.constant 52 : index
    %52 = memref.load %arg1[%c52] : memref<81xf32, #tpu.memory_space<smem>>
    %c53 = arith.constant 53 : index
    %53 = memref.load %arg1[%c53] : memref<81xf32, #tpu.memory_space<smem>>
    %c54 = arith.constant 54 : index
    %54 = memref.load %arg1[%c54] : memref<81xf32, #tpu.memory_space<smem>>
    %c55 = arith.constant 55 : index
    %55 = memref.load %arg1[%c55] : memref<81xf32, #tpu.memory_space<smem>>
    %c56 = arith.constant 56 : index
    %56 = memref.load %arg1[%c56] : memref<81xf32, #tpu.memory_space<smem>>
    %c57 = arith.constant 57 : index
    %57 = memref.load %arg1[%c57] : memref<81xf32, #tpu.memory_space<smem>>
    %c58 = arith.constant 58 : index
    %58 = memref.load %arg1[%c58] : memref<81xf32, #tpu.memory_space<smem>>
    %c59 = arith.constant 59 : index
    %59 = memref.load %arg1[%c59] : memref<81xf32, #tpu.memory_space<smem>>
    %c60 = arith.constant 60 : index
    %60 = memref.load %arg1[%c60] : memref<81xf32, #tpu.memory_space<smem>>
    %c61 = arith.constant 61 : index
    %61 = memref.load %arg1[%c61] : memref<81xf32, #tpu.memory_space<smem>>
    %c62 = arith.constant 62 : index
    %62 = memref.load %arg1[%c62] : memref<81xf32, #tpu.memory_space<smem>>
    %c63 = arith.constant 63 : index
    %63 = memref.load %arg1[%c63] : memref<81xf32, #tpu.memory_space<smem>>
    %c64 = arith.constant 64 : index
    %64 = memref.load %arg1[%c64] : memref<81xf32, #tpu.memory_space<smem>>
    %c65 = arith.constant 65 : index
    %65 = memref.load %arg1[%c65] : memref<81xf32, #tpu.memory_space<smem>>
    %c66 = arith.constant 66 : index
    %66 = memref.load %arg1[%c66] : memref<81xf32, #tpu.memory_space<smem>>
    %c67 = arith.constant 67 : index
    %67 = memref.load %arg1[%c67] : memref<81xf32, #tpu.memory_space<smem>>
    %c68 = arith.constant 68 : index
    %68 = memref.load %arg1[%c68] : memref<81xf32, #tpu.memory_space<smem>>
    %c69 = arith.constant 69 : index
    %69 = memref.load %arg1[%c69] : memref<81xf32, #tpu.memory_space<smem>>
    %c70 = arith.constant 70 : index
    %70 = memref.load %arg1[%c70] : memref<81xf32, #tpu.memory_space<smem>>
    %c71 = arith.constant 71 : index
    %71 = memref.load %arg1[%c71] : memref<81xf32, #tpu.memory_space<smem>>
    %c72 = arith.constant 72 : index
    %72 = memref.load %arg1[%c72] : memref<81xf32, #tpu.memory_space<smem>>
    %c73 = arith.constant 73 : index
    %73 = memref.load %arg1[%c73] : memref<81xf32, #tpu.memory_space<smem>>
    %c74 = arith.constant 74 : index
    %74 = memref.load %arg1[%c74] : memref<81xf32, #tpu.memory_space<smem>>
    %c75 = arith.constant 75 : index
    %75 = memref.load %arg1[%c75] : memref<81xf32, #tpu.memory_space<smem>>
    %c76 = arith.constant 76 : index
    %76 = memref.load %arg1[%c76] : memref<81xf32, #tpu.memory_space<smem>>
    %c77 = arith.constant 77 : index
    %77 = memref.load %arg1[%c77] : memref<81xf32, #tpu.memory_space<smem>>
    %c78 = arith.constant 78 : index
    %78 = memref.load %arg1[%c78] : memref<81xf32, #tpu.memory_space<smem>>
    %c79 = arith.constant 79 : index
    %79 = memref.load %arg1[%c79] : memref<81xf32, #tpu.memory_space<smem>>
    %c80 = arith.constant 80 : index
    %80 = memref.load %arg1[%c80] : memref<81xf32, #tpu.memory_space<smem>>
    %c0_0 = arith.constant 0 : index
    %81 = memref.load %arg2[%c0_0] : memref<3xf32, #tpu.memory_space<smem>>
    %82 = vector.broadcast %81 : f32 to vector<16x32xf32>
    %c1_1 = arith.constant 1 : index
    %83 = memref.load %arg2[%c1_1] : memref<3xf32, #tpu.memory_space<smem>>
    %84 = vector.broadcast %83 : f32 to vector<16x32xf32>
    %c2_2 = arith.constant 2 : index
    %85 = memref.load %arg2[%c2_2] : memref<3xf32, #tpu.memory_space<smem>>
    %86 = vector.broadcast %85 : f32 to vector<16x32xf32>
    %c0_3 = arith.constant 0 : index
    %c0_4 = arith.constant 0 : index
    %c0_5 = arith.constant 0 : index
    %87 = vector.load %arg0[%c0_3, %c0_4, %c0_5] : memref<3x16x32xf32, #tpu.memory_space<vmem>>, vector<1x16x32xf32>
    %88 = vector.shape_cast %87 : vector<1x16x32xf32> to vector<16x32xf32>
    %c1_6 = arith.constant 1 : index
    %c0_7 = arith.constant 0 : index
    %c0_8 = arith.constant 0 : index
    %89 = vector.load %arg0[%c1_6, %c0_7, %c0_8] : memref<3x16x32xf32, #tpu.memory_space<vmem>>, vector<1x16x32xf32>
    %90 = vector.shape_cast %89 : vector<1x16x32xf32> to vector<16x32xf32>
    %c2_9 = arith.constant 2 : index
    %c0_10 = arith.constant 0 : index
    %c0_11 = arith.constant 0 : index
    %91 = vector.load %arg0[%c2_9, %c0_10, %c0_11] : memref<3x16x32xf32, #tpu.memory_space<vmem>>, vector<1x16x32xf32>
    %92 = vector.shape_cast %91 : vector<1x16x32xf32> to vector<16x32xf32>
    %c31_i32 = arith.constant 31 : i32
    %93 = tpu.dynamic_rotate %88 by %c31_i32 dim 1 : vector<16x32xf32>, i32 -> vector<16x32xf32>
    %c30_i32 = arith.constant 30 : i32
    %94 = tpu.dynamic_rotate %88 by %c30_i32 dim 1 : vector<16x32xf32>, i32 -> vector<16x32xf32>
    %c31_i32_12 = arith.constant 31 : i32
    %95 = tpu.dynamic_rotate %90 by %c31_i32_12 dim 1 : vector<16x32xf32>, i32 -> vector<16x32xf32>
    %c30_i32_13 = arith.constant 30 : i32
    %96 = tpu.dynamic_rotate %90 by %c30_i32_13 dim 1 : vector<16x32xf32>, i32 -> vector<16x32xf32>
    %c31_i32_14 = arith.constant 31 : i32
    %97 = tpu.dynamic_rotate %92 by %c31_i32_14 dim 1 : vector<16x32xf32>, i32 -> vector<16x32xf32>
    %c30_i32_15 = arith.constant 30 : i32
    %98 = tpu.dynamic_rotate %92 by %c30_i32_15 dim 1 : vector<16x32xf32>, i32 -> vector<16x32xf32>
    %99 = vector.broadcast %0 : f32 to vector<16x32xf32>
    %100 = arith.mulf %99, %88 : vector<16x32xf32>
    %101 = vector.broadcast %1 : f32 to vector<16x32xf32>
    %102 = arith.mulf %101, %93 : vector<16x32xf32>
    %103 = arith.addf %100, %102 : vector<16x32xf32>
    %104 = vector.broadcast %2 : f32 to vector<16x32xf32>
    %105 = arith.mulf %104, %94 : vector<16x32xf32>
    %106 = arith.addf %103, %105 : vector<16x32xf32>
    %107 = vector.broadcast %9 : f32 to vector<16x32xf32>
    %108 = arith.mulf %107, %90 : vector<16x32xf32>
    %109 = arith.addf %106, %108 : vector<16x32xf32>
    %110 = vector.broadcast %10 : f32 to vector<16x32xf32>
    %111 = arith.mulf %110, %95 : vector<16x32xf32>
    %112 = arith.addf %109, %111 : vector<16x32xf32>
    %113 = vector.broadcast %11 : f32 to vector<16x32xf32>
    %114 = arith.mulf %113, %96 : vector<16x32xf32>
    %115 = arith.addf %112, %114 : vector<16x32xf32>
    %116 = vector.broadcast %18 : f32 to vector<16x32xf32>
    %117 = arith.mulf %116, %92 : vector<16x32xf32>
    %118 = arith.addf %115, %117 : vector<16x32xf32>
    %119 = vector.broadcast %19 : f32 to vector<16x32xf32>
    %120 = arith.mulf %119, %97 : vector<16x32xf32>
    %121 = arith.addf %118, %120 : vector<16x32xf32>
    %122 = vector.broadcast %20 : f32 to vector<16x32xf32>
    %123 = arith.mulf %122, %98 : vector<16x32xf32>
    %124 = arith.addf %121, %123 : vector<16x32xf32>
    %125 = arith.addf %82, %124 : vector<16x32xf32>
    %126 = vector.broadcast %3 : f32 to vector<16x32xf32>
    %127 = arith.mulf %126, %88 : vector<16x32xf32>
    %128 = vector.broadcast %4 : f32 to vector<16x32xf32>
    %129 = arith.mulf %128, %93 : vector<16x32xf32>
    %130 = arith.addf %127, %129 : vector<16x32xf32>
    %131 = vector.broadcast %5 : f32 to vector<16x32xf32>
    %132 = arith.mulf %131, %94 : vector<16x32xf32>
    %133 = arith.addf %130, %132 : vector<16x32xf32>
    %134 = vector.broadcast %12 : f32 to vector<16x32xf32>
    %135 = arith.mulf %134, %90 : vector<16x32xf32>
    %136 = arith.addf %133, %135 : vector<16x32xf32>
    %137 = vector.broadcast %13 : f32 to vector<16x32xf32>
    %138 = arith.mulf %137, %95 : vector<16x32xf32>
    %139 = arith.addf %136, %138 : vector<16x32xf32>
    %140 = vector.broadcast %14 : f32 to vector<16x32xf32>
    %141 = arith.mulf %140, %96 : vector<16x32xf32>
    %142 = arith.addf %139, %141 : vector<16x32xf32>
    %143 = vector.broadcast %21 : f32 to vector<16x32xf32>
    %144 = arith.mulf %143, %92 : vector<16x32xf32>
    %145 = arith.addf %142, %144 : vector<16x32xf32>
    %146 = vector.broadcast %22 : f32 to vector<16x32xf32>
    %147 = arith.mulf %146, %97 : vector<16x32xf32>
    %148 = arith.addf %145, %147 : vector<16x32xf32>
    %149 = vector.broadcast %23 : f32 to vector<16x32xf32>
    %150 = arith.mulf %149, %98 : vector<16x32xf32>
    %151 = arith.addf %148, %150 : vector<16x32xf32>
    %c15_i32 = arith.constant 15 : i32
    %152 = tpu.dynamic_rotate %151 by %c15_i32 dim 0 : vector<16x32xf32>, i32 -> vector<16x32xf32>
    %153 = arith.addf %125, %152 : vector<16x32xf32>
    %154 = vector.broadcast %6 : f32 to vector<16x32xf32>
    %155 = arith.mulf %154, %88 : vector<16x32xf32>
    %156 = vector.broadcast %7 : f32 to vector<16x32xf32>
    %157 = arith.mulf %156, %93 : vector<16x32xf32>
    %158 = arith.addf %155, %157 : vector<16x32xf32>
    %159 = vector.broadcast %8 : f32 to vector<16x32xf32>
    %160 = arith.mulf %159, %94 : vector<16x32xf32>
    %161 = arith.addf %158, %160 : vector<16x32xf32>
    %162 = vector.broadcast %15 : f32 to vector<16x32xf32>
    %163 = arith.mulf %162, %90 : vector<16x32xf32>
    %164 = arith.addf %161, %163 : vector<16x32xf32>
    %165 = vector.broadcast %16 : f32 to vector<16x32xf32>
    %166 = arith.mulf %165, %95 : vector<16x32xf32>
    %167 = arith.addf %164, %166 : vector<16x32xf32>
    %168 = vector.broadcast %17 : f32 to vector<16x32xf32>
    %169 = arith.mulf %168, %96 : vector<16x32xf32>
    %170 = arith.addf %167, %169 : vector<16x32xf32>
    %171 = vector.broadcast %24 : f32 to vector<16x32xf32>
    %172 = arith.mulf %171, %92 : vector<16x32xf32>
    %173 = arith.addf %170, %172 : vector<16x32xf32>
    %174 = vector.broadcast %25 : f32 to vector<16x32xf32>
    %175 = arith.mulf %174, %97 : vector<16x32xf32>
    %176 = arith.addf %173, %175 : vector<16x32xf32>
    %177 = vector.broadcast %26 : f32 to vector<16x32xf32>
    %178 = arith.mulf %177, %98 : vector<16x32xf32>
    %179 = arith.addf %176, %178 : vector<16x32xf32>
    %c14_i32 = arith.constant 14 : i32
    %180 = tpu.dynamic_rotate %179 by %c14_i32 dim 0 : vector<16x32xf32>, i32 -> vector<16x32xf32>
    %181 = arith.addf %153, %180 : vector<16x32xf32>
    %182 = vector.broadcast %27 : f32 to vector<16x32xf32>
    %183 = arith.mulf %182, %88 : vector<16x32xf32>
    %184 = vector.broadcast %28 : f32 to vector<16x32xf32>
    %185 = arith.mulf %184, %93 : vector<16x32xf32>
    %186 = arith.addf %183, %185 : vector<16x32xf32>
    %187 = vector.broadcast %29 : f32 to vector<16x32xf32>
    %188 = arith.mulf %187, %94 : vector<16x32xf32>
    %189 = arith.addf %186, %188 : vector<16x32xf32>
    %190 = vector.broadcast %36 : f32 to vector<16x32xf32>
    %191 = arith.mulf %190, %90 : vector<16x32xf32>
    %192 = arith.addf %189, %191 : vector<16x32xf32>
    %193 = vector.broadcast %37 : f32 to vector<16x32xf32>
    %194 = arith.mulf %193, %95 : vector<16x32xf32>
    %195 = arith.addf %192, %194 : vector<16x32xf32>
    %196 = vector.broadcast %38 : f32 to vector<16x32xf32>
    %197 = arith.mulf %196, %96 : vector<16x32xf32>
    %198 = arith.addf %195, %197 : vector<16x32xf32>
    %199 = vector.broadcast %45 : f32 to vector<16x32xf32>
    %200 = arith.mulf %199, %92 : vector<16x32xf32>
    %201 = arith.addf %198, %200 : vector<16x32xf32>
    %202 = vector.broadcast %46 : f32 to vector<16x32xf32>
    %203 = arith.mulf %202, %97 : vector<16x32xf32>
    %204 = arith.addf %201, %203 : vector<16x32xf32>
    %205 = vector.broadcast %47 : f32 to vector<16x32xf32>
    %206 = arith.mulf %205, %98 : vector<16x32xf32>
    %207 = arith.addf %204, %206 : vector<16x32xf32>
    %208 = arith.addf %84, %207 : vector<16x32xf32>
    %209 = vector.broadcast %30 : f32 to vector<16x32xf32>
    %210 = arith.mulf %209, %88 : vector<16x32xf32>
    %211 = vector.broadcast %31 : f32 to vector<16x32xf32>
    %212 = arith.mulf %211, %93 : vector<16x32xf32>
    %213 = arith.addf %210, %212 : vector<16x32xf32>
    %214 = vector.broadcast %32 : f32 to vector<16x32xf32>
    %215 = arith.mulf %214, %94 : vector<16x32xf32>
    %216 = arith.addf %213, %215 : vector<16x32xf32>
    %217 = vector.broadcast %39 : f32 to vector<16x32xf32>
    %218 = arith.mulf %217, %90 : vector<16x32xf32>
    %219 = arith.addf %216, %218 : vector<16x32xf32>
    %220 = vector.broadcast %40 : f32 to vector<16x32xf32>
    %221 = arith.mulf %220, %95 : vector<16x32xf32>
    %222 = arith.addf %219, %221 : vector<16x32xf32>
    %223 = vector.broadcast %41 : f32 to vector<16x32xf32>
    %224 = arith.mulf %223, %96 : vector<16x32xf32>
    %225 = arith.addf %222, %224 : vector<16x32xf32>
    %226 = vector.broadcast %48 : f32 to vector<16x32xf32>
    %227 = arith.mulf %226, %92 : vector<16x32xf32>
    %228 = arith.addf %225, %227 : vector<16x32xf32>
    %229 = vector.broadcast %49 : f32 to vector<16x32xf32>
    %230 = arith.mulf %229, %97 : vector<16x32xf32>
    %231 = arith.addf %228, %230 : vector<16x32xf32>
    %232 = vector.broadcast %50 : f32 to vector<16x32xf32>
    %233 = arith.mulf %232, %98 : vector<16x32xf32>
    %234 = arith.addf %231, %233 : vector<16x32xf32>
    %c15_i32_16 = arith.constant 15 : i32
    %235 = tpu.dynamic_rotate %234 by %c15_i32_16 dim 0 : vector<16x32xf32>, i32 -> vector<16x32xf32>
    %236 = arith.addf %208, %235 : vector<16x32xf32>
    %237 = vector.broadcast %33 : f32 to vector<16x32xf32>
    %238 = arith.mulf %237, %88 : vector<16x32xf32>
    %239 = vector.broadcast %34 : f32 to vector<16x32xf32>
    %240 = arith.mulf %239, %93 : vector<16x32xf32>
    %241 = arith.addf %238, %240 : vector<16x32xf32>
    %242 = vector.broadcast %35 : f32 to vector<16x32xf32>
    %243 = arith.mulf %242, %94 : vector<16x32xf32>
    %244 = arith.addf %241, %243 : vector<16x32xf32>
    %245 = vector.broadcast %42 : f32 to vector<16x32xf32>
    %246 = arith.mulf %245, %90 : vector<16x32xf32>
    %247 = arith.addf %244, %246 : vector<16x32xf32>
    %248 = vector.broadcast %43 : f32 to vector<16x32xf32>
    %249 = arith.mulf %248, %95 : vector<16x32xf32>
    %250 = arith.addf %247, %249 : vector<16x32xf32>
    %251 = vector.broadcast %44 : f32 to vector<16x32xf32>
    %252 = arith.mulf %251, %96 : vector<16x32xf32>
    %253 = arith.addf %250, %252 : vector<16x32xf32>
    %254 = vector.broadcast %51 : f32 to vector<16x32xf32>
    %255 = arith.mulf %254, %92 : vector<16x32xf32>
    %256 = arith.addf %253, %255 : vector<16x32xf32>
    %257 = vector.broadcast %52 : f32 to vector<16x32xf32>
    %258 = arith.mulf %257, %97 : vector<16x32xf32>
    %259 = arith.addf %256, %258 : vector<16x32xf32>
    %260 = vector.broadcast %53 : f32 to vector<16x32xf32>
    %261 = arith.mulf %260, %98 : vector<16x32xf32>
    %262 = arith.addf %259, %261 : vector<16x32xf32>
    %c14_i32_17 = arith.constant 14 : i32
    %263 = tpu.dynamic_rotate %262 by %c14_i32_17 dim 0 : vector<16x32xf32>, i32 -> vector<16x32xf32>
    %264 = arith.addf %236, %263 : vector<16x32xf32>
    %265 = vector.broadcast %54 : f32 to vector<16x32xf32>
    %266 = arith.mulf %265, %88 : vector<16x32xf32>
    %267 = vector.broadcast %55 : f32 to vector<16x32xf32>
    %268 = arith.mulf %267, %93 : vector<16x32xf32>
    %269 = arith.addf %266, %268 : vector<16x32xf32>
    %270 = vector.broadcast %56 : f32 to vector<16x32xf32>
    %271 = arith.mulf %270, %94 : vector<16x32xf32>
    %272 = arith.addf %269, %271 : vector<16x32xf32>
    %273 = vector.broadcast %63 : f32 to vector<16x32xf32>
    %274 = arith.mulf %273, %90 : vector<16x32xf32>
    %275 = arith.addf %272, %274 : vector<16x32xf32>
    %276 = vector.broadcast %64 : f32 to vector<16x32xf32>
    %277 = arith.mulf %276, %95 : vector<16x32xf32>
    %278 = arith.addf %275, %277 : vector<16x32xf32>
    %279 = vector.broadcast %65 : f32 to vector<16x32xf32>
    %280 = arith.mulf %279, %96 : vector<16x32xf32>
    %281 = arith.addf %278, %280 : vector<16x32xf32>
    %282 = vector.broadcast %72 : f32 to vector<16x32xf32>
    %283 = arith.mulf %282, %92 : vector<16x32xf32>
    %284 = arith.addf %281, %283 : vector<16x32xf32>
    %285 = vector.broadcast %73 : f32 to vector<16x32xf32>
    %286 = arith.mulf %285, %97 : vector<16x32xf32>
    %287 = arith.addf %284, %286 : vector<16x32xf32>
    %288 = vector.broadcast %74 : f32 to vector<16x32xf32>
    %289 = arith.mulf %288, %98 : vector<16x32xf32>
    %290 = arith.addf %287, %289 : vector<16x32xf32>
    %291 = arith.addf %86, %290 : vector<16x32xf32>
    %292 = vector.broadcast %57 : f32 to vector<16x32xf32>
    %293 = arith.mulf %292, %88 : vector<16x32xf32>
    %294 = vector.broadcast %58 : f32 to vector<16x32xf32>
    %295 = arith.mulf %294, %93 : vector<16x32xf32>
    %296 = arith.addf %293, %295 : vector<16x32xf32>
    %297 = vector.broadcast %59 : f32 to vector<16x32xf32>
    %298 = arith.mulf %297, %94 : vector<16x32xf32>
    %299 = arith.addf %296, %298 : vector<16x32xf32>
    %300 = vector.broadcast %66 : f32 to vector<16x32xf32>
    %301 = arith.mulf %300, %90 : vector<16x32xf32>
    %302 = arith.addf %299, %301 : vector<16x32xf32>
    %303 = vector.broadcast %67 : f32 to vector<16x32xf32>
    %304 = arith.mulf %303, %95 : vector<16x32xf32>
    %305 = arith.addf %302, %304 : vector<16x32xf32>
    %306 = vector.broadcast %68 : f32 to vector<16x32xf32>
    %307 = arith.mulf %306, %96 : vector<16x32xf32>
    %308 = arith.addf %305, %307 : vector<16x32xf32>
    %309 = vector.broadcast %75 : f32 to vector<16x32xf32>
    %310 = arith.mulf %309, %92 : vector<16x32xf32>
    %311 = arith.addf %308, %310 : vector<16x32xf32>
    %312 = vector.broadcast %76 : f32 to vector<16x32xf32>
    %313 = arith.mulf %312, %97 : vector<16x32xf32>
    %314 = arith.addf %311, %313 : vector<16x32xf32>
    %315 = vector.broadcast %77 : f32 to vector<16x32xf32>
    %316 = arith.mulf %315, %98 : vector<16x32xf32>
    %317 = arith.addf %314, %316 : vector<16x32xf32>
    %c15_i32_18 = arith.constant 15 : i32
    %318 = tpu.dynamic_rotate %317 by %c15_i32_18 dim 0 : vector<16x32xf32>, i32 -> vector<16x32xf32>
    %319 = arith.addf %291, %318 : vector<16x32xf32>
    %320 = vector.broadcast %60 : f32 to vector<16x32xf32>
    %321 = arith.mulf %320, %88 : vector<16x32xf32>
    %322 = vector.broadcast %61 : f32 to vector<16x32xf32>
    %323 = arith.mulf %322, %93 : vector<16x32xf32>
    %324 = arith.addf %321, %323 : vector<16x32xf32>
    %325 = vector.broadcast %62 : f32 to vector<16x32xf32>
    %326 = arith.mulf %325, %94 : vector<16x32xf32>
    %327 = arith.addf %324, %326 : vector<16x32xf32>
    %328 = vector.broadcast %69 : f32 to vector<16x32xf32>
    %329 = arith.mulf %328, %90 : vector<16x32xf32>
    %330 = arith.addf %327, %329 : vector<16x32xf32>
    %331 = vector.broadcast %70 : f32 to vector<16x32xf32>
    %332 = arith.mulf %331, %95 : vector<16x32xf32>
    %333 = arith.addf %330, %332 : vector<16x32xf32>
    %334 = vector.broadcast %71 : f32 to vector<16x32xf32>
    %335 = arith.mulf %334, %96 : vector<16x32xf32>
    %336 = arith.addf %333, %335 : vector<16x32xf32>
    %337 = vector.broadcast %78 : f32 to vector<16x32xf32>
    %338 = arith.mulf %337, %92 : vector<16x32xf32>
    %339 = arith.addf %336, %338 : vector<16x32xf32>
    %340 = vector.broadcast %79 : f32 to vector<16x32xf32>
    %341 = arith.mulf %340, %97 : vector<16x32xf32>
    %342 = arith.addf %339, %341 : vector<16x32xf32>
    %343 = vector.broadcast %80 : f32 to vector<16x32xf32>
    %344 = arith.mulf %343, %98 : vector<16x32xf32>
    %345 = arith.addf %342, %344 : vector<16x32xf32>
    %c14_i32_19 = arith.constant 14 : i32
    %346 = tpu.dynamic_rotate %345 by %c14_i32_19 dim 0 : vector<16x32xf32>, i32 -> vector<16x32xf32>
    %347 = arith.addf %319, %346 : vector<16x32xf32>
    %c31_i32_20 = arith.constant 31 : i32
    %348 = tpu.dynamic_rotate %181 by %c31_i32_20 dim 1 : vector<16x32xf32>, i32 -> vector<16x32xf32>
    %c30_i32_21 = arith.constant 30 : i32
    %349 = tpu.dynamic_rotate %181 by %c30_i32_21 dim 1 : vector<16x32xf32>, i32 -> vector<16x32xf32>
    %c31_i32_22 = arith.constant 31 : i32
    %350 = tpu.dynamic_rotate %264 by %c31_i32_22 dim 1 : vector<16x32xf32>, i32 -> vector<16x32xf32>
    %c30_i32_23 = arith.constant 30 : i32
    %351 = tpu.dynamic_rotate %264 by %c30_i32_23 dim 1 : vector<16x32xf32>, i32 -> vector<16x32xf32>
    %c31_i32_24 = arith.constant 31 : i32
    %352 = tpu.dynamic_rotate %347 by %c31_i32_24 dim 1 : vector<16x32xf32>, i32 -> vector<16x32xf32>
    %c30_i32_25 = arith.constant 30 : i32
    %353 = tpu.dynamic_rotate %347 by %c30_i32_25 dim 1 : vector<16x32xf32>, i32 -> vector<16x32xf32>
    %354 = vector.broadcast %0 : f32 to vector<16x32xf32>
    %355 = arith.mulf %354, %181 : vector<16x32xf32>
    %356 = vector.broadcast %1 : f32 to vector<16x32xf32>
    %357 = arith.mulf %356, %348 : vector<16x32xf32>
    %358 = arith.addf %355, %357 : vector<16x32xf32>
    %359 = vector.broadcast %2 : f32 to vector<16x32xf32>
    %360 = arith.mulf %359, %349 : vector<16x32xf32>
    %361 = arith.addf %358, %360 : vector<16x32xf32>
    %362 = vector.broadcast %9 : f32 to vector<16x32xf32>
    %363 = arith.mulf %362, %264 : vector<16x32xf32>
    %364 = arith.addf %361, %363 : vector<16x32xf32>
    %365 = vector.broadcast %10 : f32 to vector<16x32xf32>
    %366 = arith.mulf %365, %350 : vector<16x32xf32>
    %367 = arith.addf %364, %366 : vector<16x32xf32>
    %368 = vector.broadcast %11 : f32 to vector<16x32xf32>
    %369 = arith.mulf %368, %351 : vector<16x32xf32>
    %370 = arith.addf %367, %369 : vector<16x32xf32>
    %371 = vector.broadcast %18 : f32 to vector<16x32xf32>
    %372 = arith.mulf %371, %347 : vector<16x32xf32>
    %373 = arith.addf %370, %372 : vector<16x32xf32>
    %374 = vector.broadcast %19 : f32 to vector<16x32xf32>
    %375 = arith.mulf %374, %352 : vector<16x32xf32>
    %376 = arith.addf %373, %375 : vector<16x32xf32>
    %377 = vector.broadcast %20 : f32 to vector<16x32xf32>
    %378 = arith.mulf %377, %353 : vector<16x32xf32>
    %379 = arith.addf %376, %378 : vector<16x32xf32>
    %380 = arith.addf %82, %379 : vector<16x32xf32>
    %381 = vector.broadcast %3 : f32 to vector<16x32xf32>
    %382 = arith.mulf %381, %181 : vector<16x32xf32>
    %383 = vector.broadcast %4 : f32 to vector<16x32xf32>
    %384 = arith.mulf %383, %348 : vector<16x32xf32>
    %385 = arith.addf %382, %384 : vector<16x32xf32>
    %386 = vector.broadcast %5 : f32 to vector<16x32xf32>
    %387 = arith.mulf %386, %349 : vector<16x32xf32>
    %388 = arith.addf %385, %387 : vector<16x32xf32>
    %389 = vector.broadcast %12 : f32 to vector<16x32xf32>
    %390 = arith.mulf %389, %264 : vector<16x32xf32>
    %391 = arith.addf %388, %390 : vector<16x32xf32>
    %392 = vector.broadcast %13 : f32 to vector<16x32xf32>
    %393 = arith.mulf %392, %350 : vector<16x32xf32>
    %394 = arith.addf %391, %393 : vector<16x32xf32>
    %395 = vector.broadcast %14 : f32 to vector<16x32xf32>
    %396 = arith.mulf %395, %351 : vector<16x32xf32>
    %397 = arith.addf %394, %396 : vector<16x32xf32>
    %398 = vector.broadcast %21 : f32 to vector<16x32xf32>
    %399 = arith.mulf %398, %347 : vector<16x32xf32>
    %400 = arith.addf %397, %399 : vector<16x32xf32>
    %401 = vector.broadcast %22 : f32 to vector<16x32xf32>
    %402 = arith.mulf %401, %352 : vector<16x32xf32>
    %403 = arith.addf %400, %402 : vector<16x32xf32>
    %404 = vector.broadcast %23 : f32 to vector<16x32xf32>
    %405 = arith.mulf %404, %353 : vector<16x32xf32>
    %406 = arith.addf %403, %405 : vector<16x32xf32>
    %c15_i32_26 = arith.constant 15 : i32
    %407 = tpu.dynamic_rotate %406 by %c15_i32_26 dim 0 : vector<16x32xf32>, i32 -> vector<16x32xf32>
    %408 = arith.addf %380, %407 : vector<16x32xf32>
    %409 = vector.broadcast %6 : f32 to vector<16x32xf32>
    %410 = arith.mulf %409, %181 : vector<16x32xf32>
    %411 = vector.broadcast %7 : f32 to vector<16x32xf32>
    %412 = arith.mulf %411, %348 : vector<16x32xf32>
    %413 = arith.addf %410, %412 : vector<16x32xf32>
    %414 = vector.broadcast %8 : f32 to vector<16x32xf32>
    %415 = arith.mulf %414, %349 : vector<16x32xf32>
    %416 = arith.addf %413, %415 : vector<16x32xf32>
    %417 = vector.broadcast %15 : f32 to vector<16x32xf32>
    %418 = arith.mulf %417, %264 : vector<16x32xf32>
    %419 = arith.addf %416, %418 : vector<16x32xf32>
    %420 = vector.broadcast %16 : f32 to vector<16x32xf32>
    %421 = arith.mulf %420, %350 : vector<16x32xf32>
    %422 = arith.addf %419, %421 : vector<16x32xf32>
    %423 = vector.broadcast %17 : f32 to vector<16x32xf32>
    %424 = arith.mulf %423, %351 : vector<16x32xf32>
    %425 = arith.addf %422, %424 : vector<16x32xf32>
    %426 = vector.broadcast %24 : f32 to vector<16x32xf32>
    %427 = arith.mulf %426, %347 : vector<16x32xf32>
    %428 = arith.addf %425, %427 : vector<16x32xf32>
    %429 = vector.broadcast %25 : f32 to vector<16x32xf32>
    %430 = arith.mulf %429, %352 : vector<16x32xf32>
    %431 = arith.addf %428, %430 : vector<16x32xf32>
    %432 = vector.broadcast %26 : f32 to vector<16x32xf32>
    %433 = arith.mulf %432, %353 : vector<16x32xf32>
    %434 = arith.addf %431, %433 : vector<16x32xf32>
    %c14_i32_27 = arith.constant 14 : i32
    %435 = tpu.dynamic_rotate %434 by %c14_i32_27 dim 0 : vector<16x32xf32>, i32 -> vector<16x32xf32>
    %436 = arith.addf %408, %435 : vector<16x32xf32>
    %437 = vector.broadcast %27 : f32 to vector<16x32xf32>
    %438 = arith.mulf %437, %181 : vector<16x32xf32>
    %439 = vector.broadcast %28 : f32 to vector<16x32xf32>
    %440 = arith.mulf %439, %348 : vector<16x32xf32>
    %441 = arith.addf %438, %440 : vector<16x32xf32>
    %442 = vector.broadcast %29 : f32 to vector<16x32xf32>
    %443 = arith.mulf %442, %349 : vector<16x32xf32>
    %444 = arith.addf %441, %443 : vector<16x32xf32>
    %445 = vector.broadcast %36 : f32 to vector<16x32xf32>
    %446 = arith.mulf %445, %264 : vector<16x32xf32>
    %447 = arith.addf %444, %446 : vector<16x32xf32>
    %448 = vector.broadcast %37 : f32 to vector<16x32xf32>
    %449 = arith.mulf %448, %350 : vector<16x32xf32>
    %450 = arith.addf %447, %449 : vector<16x32xf32>
    %451 = vector.broadcast %38 : f32 to vector<16x32xf32>
    %452 = arith.mulf %451, %351 : vector<16x32xf32>
    %453 = arith.addf %450, %452 : vector<16x32xf32>
    %454 = vector.broadcast %45 : f32 to vector<16x32xf32>
    %455 = arith.mulf %454, %347 : vector<16x32xf32>
    %456 = arith.addf %453, %455 : vector<16x32xf32>
    %457 = vector.broadcast %46 : f32 to vector<16x32xf32>
    %458 = arith.mulf %457, %352 : vector<16x32xf32>
    %459 = arith.addf %456, %458 : vector<16x32xf32>
    %460 = vector.broadcast %47 : f32 to vector<16x32xf32>
    %461 = arith.mulf %460, %353 : vector<16x32xf32>
    %462 = arith.addf %459, %461 : vector<16x32xf32>
    %463 = arith.addf %84, %462 : vector<16x32xf32>
    %464 = vector.broadcast %30 : f32 to vector<16x32xf32>
    %465 = arith.mulf %464, %181 : vector<16x32xf32>
    %466 = vector.broadcast %31 : f32 to vector<16x32xf32>
    %467 = arith.mulf %466, %348 : vector<16x32xf32>
    %468 = arith.addf %465, %467 : vector<16x32xf32>
    %469 = vector.broadcast %32 : f32 to vector<16x32xf32>
    %470 = arith.mulf %469, %349 : vector<16x32xf32>
    %471 = arith.addf %468, %470 : vector<16x32xf32>
    %472 = vector.broadcast %39 : f32 to vector<16x32xf32>
    %473 = arith.mulf %472, %264 : vector<16x32xf32>
    %474 = arith.addf %471, %473 : vector<16x32xf32>
    %475 = vector.broadcast %40 : f32 to vector<16x32xf32>
    %476 = arith.mulf %475, %350 : vector<16x32xf32>
    %477 = arith.addf %474, %476 : vector<16x32xf32>
    %478 = vector.broadcast %41 : f32 to vector<16x32xf32>
    %479 = arith.mulf %478, %351 : vector<16x32xf32>
    %480 = arith.addf %477, %479 : vector<16x32xf32>
    %481 = vector.broadcast %48 : f32 to vector<16x32xf32>
    %482 = arith.mulf %481, %347 : vector<16x32xf32>
    %483 = arith.addf %480, %482 : vector<16x32xf32>
    %484 = vector.broadcast %49 : f32 to vector<16x32xf32>
    %485 = arith.mulf %484, %352 : vector<16x32xf32>
    %486 = arith.addf %483, %485 : vector<16x32xf32>
    %487 = vector.broadcast %50 : f32 to vector<16x32xf32>
    %488 = arith.mulf %487, %353 : vector<16x32xf32>
    %489 = arith.addf %486, %488 : vector<16x32xf32>
    %c15_i32_28 = arith.constant 15 : i32
    %490 = tpu.dynamic_rotate %489 by %c15_i32_28 dim 0 : vector<16x32xf32>, i32 -> vector<16x32xf32>
    %491 = arith.addf %463, %490 : vector<16x32xf32>
    %492 = vector.broadcast %33 : f32 to vector<16x32xf32>
    %493 = arith.mulf %492, %181 : vector<16x32xf32>
    %494 = vector.broadcast %34 : f32 to vector<16x32xf32>
    %495 = arith.mulf %494, %348 : vector<16x32xf32>
    %496 = arith.addf %493, %495 : vector<16x32xf32>
    %497 = vector.broadcast %35 : f32 to vector<16x32xf32>
    %498 = arith.mulf %497, %349 : vector<16x32xf32>
    %499 = arith.addf %496, %498 : vector<16x32xf32>
    %500 = vector.broadcast %42 : f32 to vector<16x32xf32>
    %501 = arith.mulf %500, %264 : vector<16x32xf32>
    %502 = arith.addf %499, %501 : vector<16x32xf32>
    %503 = vector.broadcast %43 : f32 to vector<16x32xf32>
    %504 = arith.mulf %503, %350 : vector<16x32xf32>
    %505 = arith.addf %502, %504 : vector<16x32xf32>
    %506 = vector.broadcast %44 : f32 to vector<16x32xf32>
    %507 = arith.mulf %506, %351 : vector<16x32xf32>
    %508 = arith.addf %505, %507 : vector<16x32xf32>
    %509 = vector.broadcast %51 : f32 to vector<16x32xf32>
    %510 = arith.mulf %509, %347 : vector<16x32xf32>
    %511 = arith.addf %508, %510 : vector<16x32xf32>
    %512 = vector.broadcast %52 : f32 to vector<16x32xf32>
    %513 = arith.mulf %512, %352 : vector<16x32xf32>
    %514 = arith.addf %511, %513 : vector<16x32xf32>
    %515 = vector.broadcast %53 : f32 to vector<16x32xf32>
    %516 = arith.mulf %515, %353 : vector<16x32xf32>
    %517 = arith.addf %514, %516 : vector<16x32xf32>
    %c14_i32_29 = arith.constant 14 : i32
    %518 = tpu.dynamic_rotate %517 by %c14_i32_29 dim 0 : vector<16x32xf32>, i32 -> vector<16x32xf32>
    %519 = arith.addf %491, %518 : vector<16x32xf32>
    %520 = vector.broadcast %54 : f32 to vector<16x32xf32>
    %521 = arith.mulf %520, %181 : vector<16x32xf32>
    %522 = vector.broadcast %55 : f32 to vector<16x32xf32>
    %523 = arith.mulf %522, %348 : vector<16x32xf32>
    %524 = arith.addf %521, %523 : vector<16x32xf32>
    %525 = vector.broadcast %56 : f32 to vector<16x32xf32>
    %526 = arith.mulf %525, %349 : vector<16x32xf32>
    %527 = arith.addf %524, %526 : vector<16x32xf32>
    %528 = vector.broadcast %63 : f32 to vector<16x32xf32>
    %529 = arith.mulf %528, %264 : vector<16x32xf32>
    %530 = arith.addf %527, %529 : vector<16x32xf32>
    %531 = vector.broadcast %64 : f32 to vector<16x32xf32>
    %532 = arith.mulf %531, %350 : vector<16x32xf32>
    %533 = arith.addf %530, %532 : vector<16x32xf32>
    %534 = vector.broadcast %65 : f32 to vector<16x32xf32>
    %535 = arith.mulf %534, %351 : vector<16x32xf32>
    %536 = arith.addf %533, %535 : vector<16x32xf32>
    %537 = vector.broadcast %72 : f32 to vector<16x32xf32>
    %538 = arith.mulf %537, %347 : vector<16x32xf32>
    %539 = arith.addf %536, %538 : vector<16x32xf32>
    %540 = vector.broadcast %73 : f32 to vector<16x32xf32>
    %541 = arith.mulf %540, %352 : vector<16x32xf32>
    %542 = arith.addf %539, %541 : vector<16x32xf32>
    %543 = vector.broadcast %74 : f32 to vector<16x32xf32>
    %544 = arith.mulf %543, %353 : vector<16x32xf32>
    %545 = arith.addf %542, %544 : vector<16x32xf32>
    %546 = arith.addf %86, %545 : vector<16x32xf32>
    %547 = vector.broadcast %57 : f32 to vector<16x32xf32>
    %548 = arith.mulf %547, %181 : vector<16x32xf32>
    %549 = vector.broadcast %58 : f32 to vector<16x32xf32>
    %550 = arith.mulf %549, %348 : vector<16x32xf32>
    %551 = arith.addf %548, %550 : vector<16x32xf32>
    %552 = vector.broadcast %59 : f32 to vector<16x32xf32>
    %553 = arith.mulf %552, %349 : vector<16x32xf32>
    %554 = arith.addf %551, %553 : vector<16x32xf32>
    %555 = vector.broadcast %66 : f32 to vector<16x32xf32>
    %556 = arith.mulf %555, %264 : vector<16x32xf32>
    %557 = arith.addf %554, %556 : vector<16x32xf32>
    %558 = vector.broadcast %67 : f32 to vector<16x32xf32>
    %559 = arith.mulf %558, %350 : vector<16x32xf32>
    %560 = arith.addf %557, %559 : vector<16x32xf32>
    %561 = vector.broadcast %68 : f32 to vector<16x32xf32>
    %562 = arith.mulf %561, %351 : vector<16x32xf32>
    %563 = arith.addf %560, %562 : vector<16x32xf32>
    %564 = vector.broadcast %75 : f32 to vector<16x32xf32>
    %565 = arith.mulf %564, %347 : vector<16x32xf32>
    %566 = arith.addf %563, %565 : vector<16x32xf32>
    %567 = vector.broadcast %76 : f32 to vector<16x32xf32>
    %568 = arith.mulf %567, %352 : vector<16x32xf32>
    %569 = arith.addf %566, %568 : vector<16x32xf32>
    %570 = vector.broadcast %77 : f32 to vector<16x32xf32>
    %571 = arith.mulf %570, %353 : vector<16x32xf32>
    %572 = arith.addf %569, %571 : vector<16x32xf32>
    %c15_i32_30 = arith.constant 15 : i32
    %573 = tpu.dynamic_rotate %572 by %c15_i32_30 dim 0 : vector<16x32xf32>, i32 -> vector<16x32xf32>
    %574 = arith.addf %546, %573 : vector<16x32xf32>
    %575 = vector.broadcast %60 : f32 to vector<16x32xf32>
    %576 = arith.mulf %575, %181 : vector<16x32xf32>
    %577 = vector.broadcast %61 : f32 to vector<16x32xf32>
    %578 = arith.mulf %577, %348 : vector<16x32xf32>
    %579 = arith.addf %576, %578 : vector<16x32xf32>
    %580 = vector.broadcast %62 : f32 to vector<16x32xf32>
    %581 = arith.mulf %580, %349 : vector<16x32xf32>
    %582 = arith.addf %579, %581 : vector<16x32xf32>
    %583 = vector.broadcast %69 : f32 to vector<16x32xf32>
    %584 = arith.mulf %583, %264 : vector<16x32xf32>
    %585 = arith.addf %582, %584 : vector<16x32xf32>
    %586 = vector.broadcast %70 : f32 to vector<16x32xf32>
    %587 = arith.mulf %586, %350 : vector<16x32xf32>
    %588 = arith.addf %585, %587 : vector<16x32xf32>
    %589 = vector.broadcast %71 : f32 to vector<16x32xf32>
    %590 = arith.mulf %589, %351 : vector<16x32xf32>
    %591 = arith.addf %588, %590 : vector<16x32xf32>
    %592 = vector.broadcast %78 : f32 to vector<16x32xf32>
    %593 = arith.mulf %592, %347 : vector<16x32xf32>
    %594 = arith.addf %591, %593 : vector<16x32xf32>
    %595 = vector.broadcast %79 : f32 to vector<16x32xf32>
    %596 = arith.mulf %595, %352 : vector<16x32xf32>
    %597 = arith.addf %594, %596 : vector<16x32xf32>
    %598 = vector.broadcast %80 : f32 to vector<16x32xf32>
    %599 = arith.mulf %598, %353 : vector<16x32xf32>
    %600 = arith.addf %597, %599 : vector<16x32xf32>
    %c14_i32_31 = arith.constant 14 : i32
    %601 = tpu.dynamic_rotate %600 by %c14_i32_31 dim 0 : vector<16x32xf32>, i32 -> vector<16x32xf32>
    %602 = arith.addf %574, %601 : vector<16x32xf32>
    %c31_i32_32 = arith.constant 31 : i32
    %603 = tpu.dynamic_rotate %436 by %c31_i32_32 dim 1 : vector<16x32xf32>, i32 -> vector<16x32xf32>
    %c30_i32_33 = arith.constant 30 : i32
    %604 = tpu.dynamic_rotate %436 by %c30_i32_33 dim 1 : vector<16x32xf32>, i32 -> vector<16x32xf32>
    %c31_i32_34 = arith.constant 31 : i32
    %605 = tpu.dynamic_rotate %519 by %c31_i32_34 dim 1 : vector<16x32xf32>, i32 -> vector<16x32xf32>
    %c30_i32_35 = arith.constant 30 : i32
    %606 = tpu.dynamic_rotate %519 by %c30_i32_35 dim 1 : vector<16x32xf32>, i32 -> vector<16x32xf32>
    %c31_i32_36 = arith.constant 31 : i32
    %607 = tpu.dynamic_rotate %602 by %c31_i32_36 dim 1 : vector<16x32xf32>, i32 -> vector<16x32xf32>
    %c30_i32_37 = arith.constant 30 : i32
    %608 = tpu.dynamic_rotate %602 by %c30_i32_37 dim 1 : vector<16x32xf32>, i32 -> vector<16x32xf32>
    %609 = vector.broadcast %0 : f32 to vector<16x32xf32>
    %610 = arith.mulf %609, %436 : vector<16x32xf32>
    %611 = vector.broadcast %1 : f32 to vector<16x32xf32>
    %612 = arith.mulf %611, %603 : vector<16x32xf32>
    %613 = arith.addf %610, %612 : vector<16x32xf32>
    %614 = vector.broadcast %2 : f32 to vector<16x32xf32>
    %615 = arith.mulf %614, %604 : vector<16x32xf32>
    %616 = arith.addf %613, %615 : vector<16x32xf32>
    %617 = vector.broadcast %9 : f32 to vector<16x32xf32>
    %618 = arith.mulf %617, %519 : vector<16x32xf32>
    %619 = arith.addf %616, %618 : vector<16x32xf32>
    %620 = vector.broadcast %10 : f32 to vector<16x32xf32>
    %621 = arith.mulf %620, %605 : vector<16x32xf32>
    %622 = arith.addf %619, %621 : vector<16x32xf32>
    %623 = vector.broadcast %11 : f32 to vector<16x32xf32>
    %624 = arith.mulf %623, %606 : vector<16x32xf32>
    %625 = arith.addf %622, %624 : vector<16x32xf32>
    %626 = vector.broadcast %18 : f32 to vector<16x32xf32>
    %627 = arith.mulf %626, %602 : vector<16x32xf32>
    %628 = arith.addf %625, %627 : vector<16x32xf32>
    %629 = vector.broadcast %19 : f32 to vector<16x32xf32>
    %630 = arith.mulf %629, %607 : vector<16x32xf32>
    %631 = arith.addf %628, %630 : vector<16x32xf32>
    %632 = vector.broadcast %20 : f32 to vector<16x32xf32>
    %633 = arith.mulf %632, %608 : vector<16x32xf32>
    %634 = arith.addf %631, %633 : vector<16x32xf32>
    %635 = arith.addf %82, %634 : vector<16x32xf32>
    %636 = vector.broadcast %3 : f32 to vector<16x32xf32>
    %637 = arith.mulf %636, %436 : vector<16x32xf32>
    %638 = vector.broadcast %4 : f32 to vector<16x32xf32>
    %639 = arith.mulf %638, %603 : vector<16x32xf32>
    %640 = arith.addf %637, %639 : vector<16x32xf32>
    %641 = vector.broadcast %5 : f32 to vector<16x32xf32>
    %642 = arith.mulf %641, %604 : vector<16x32xf32>
    %643 = arith.addf %640, %642 : vector<16x32xf32>
    %644 = vector.broadcast %12 : f32 to vector<16x32xf32>
    %645 = arith.mulf %644, %519 : vector<16x32xf32>
    %646 = arith.addf %643, %645 : vector<16x32xf32>
    %647 = vector.broadcast %13 : f32 to vector<16x32xf32>
    %648 = arith.mulf %647, %605 : vector<16x32xf32>
    %649 = arith.addf %646, %648 : vector<16x32xf32>
    %650 = vector.broadcast %14 : f32 to vector<16x32xf32>
    %651 = arith.mulf %650, %606 : vector<16x32xf32>
    %652 = arith.addf %649, %651 : vector<16x32xf32>
    %653 = vector.broadcast %21 : f32 to vector<16x32xf32>
    %654 = arith.mulf %653, %602 : vector<16x32xf32>
    %655 = arith.addf %652, %654 : vector<16x32xf32>
    %656 = vector.broadcast %22 : f32 to vector<16x32xf32>
    %657 = arith.mulf %656, %607 : vector<16x32xf32>
    %658 = arith.addf %655, %657 : vector<16x32xf32>
    %659 = vector.broadcast %23 : f32 to vector<16x32xf32>
    %660 = arith.mulf %659, %608 : vector<16x32xf32>
    %661 = arith.addf %658, %660 : vector<16x32xf32>
    %c15_i32_38 = arith.constant 15 : i32
    %662 = tpu.dynamic_rotate %661 by %c15_i32_38 dim 0 : vector<16x32xf32>, i32 -> vector<16x32xf32>
    %663 = arith.addf %635, %662 : vector<16x32xf32>
    %664 = vector.broadcast %6 : f32 to vector<16x32xf32>
    %665 = arith.mulf %664, %436 : vector<16x32xf32>
    %666 = vector.broadcast %7 : f32 to vector<16x32xf32>
    %667 = arith.mulf %666, %603 : vector<16x32xf32>
    %668 = arith.addf %665, %667 : vector<16x32xf32>
    %669 = vector.broadcast %8 : f32 to vector<16x32xf32>
    %670 = arith.mulf %669, %604 : vector<16x32xf32>
    %671 = arith.addf %668, %670 : vector<16x32xf32>
    %672 = vector.broadcast %15 : f32 to vector<16x32xf32>
    %673 = arith.mulf %672, %519 : vector<16x32xf32>
    %674 = arith.addf %671, %673 : vector<16x32xf32>
    %675 = vector.broadcast %16 : f32 to vector<16x32xf32>
    %676 = arith.mulf %675, %605 : vector<16x32xf32>
    %677 = arith.addf %674, %676 : vector<16x32xf32>
    %678 = vector.broadcast %17 : f32 to vector<16x32xf32>
    %679 = arith.mulf %678, %606 : vector<16x32xf32>
    %680 = arith.addf %677, %679 : vector<16x32xf32>
    %681 = vector.broadcast %24 : f32 to vector<16x32xf32>
    %682 = arith.mulf %681, %602 : vector<16x32xf32>
    %683 = arith.addf %680, %682 : vector<16x32xf32>
    %684 = vector.broadcast %25 : f32 to vector<16x32xf32>
    %685 = arith.mulf %684, %607 : vector<16x32xf32>
    %686 = arith.addf %683, %685 : vector<16x32xf32>
    %687 = vector.broadcast %26 : f32 to vector<16x32xf32>
    %688 = arith.mulf %687, %608 : vector<16x32xf32>
    %689 = arith.addf %686, %688 : vector<16x32xf32>
    %c14_i32_39 = arith.constant 14 : i32
    %690 = tpu.dynamic_rotate %689 by %c14_i32_39 dim 0 : vector<16x32xf32>, i32 -> vector<16x32xf32>
    %691 = arith.addf %663, %690 : vector<16x32xf32>
    %692 = vector.broadcast %27 : f32 to vector<16x32xf32>
    %693 = arith.mulf %692, %436 : vector<16x32xf32>
    %694 = vector.broadcast %28 : f32 to vector<16x32xf32>
    %695 = arith.mulf %694, %603 : vector<16x32xf32>
    %696 = arith.addf %693, %695 : vector<16x32xf32>
    %697 = vector.broadcast %29 : f32 to vector<16x32xf32>
    %698 = arith.mulf %697, %604 : vector<16x32xf32>
    %699 = arith.addf %696, %698 : vector<16x32xf32>
    %700 = vector.broadcast %36 : f32 to vector<16x32xf32>
    %701 = arith.mulf %700, %519 : vector<16x32xf32>
    %702 = arith.addf %699, %701 : vector<16x32xf32>
    %703 = vector.broadcast %37 : f32 to vector<16x32xf32>
    %704 = arith.mulf %703, %605 : vector<16x32xf32>
    %705 = arith.addf %702, %704 : vector<16x32xf32>
    %706 = vector.broadcast %38 : f32 to vector<16x32xf32>
    %707 = arith.mulf %706, %606 : vector<16x32xf32>
    %708 = arith.addf %705, %707 : vector<16x32xf32>
    %709 = vector.broadcast %45 : f32 to vector<16x32xf32>
    %710 = arith.mulf %709, %602 : vector<16x32xf32>
    %711 = arith.addf %708, %710 : vector<16x32xf32>
    %712 = vector.broadcast %46 : f32 to vector<16x32xf32>
    %713 = arith.mulf %712, %607 : vector<16x32xf32>
    %714 = arith.addf %711, %713 : vector<16x32xf32>
    %715 = vector.broadcast %47 : f32 to vector<16x32xf32>
    %716 = arith.mulf %715, %608 : vector<16x32xf32>
    %717 = arith.addf %714, %716 : vector<16x32xf32>
    %718 = arith.addf %84, %717 : vector<16x32xf32>
    %719 = vector.broadcast %30 : f32 to vector<16x32xf32>
    %720 = arith.mulf %719, %436 : vector<16x32xf32>
    %721 = vector.broadcast %31 : f32 to vector<16x32xf32>
    %722 = arith.mulf %721, %603 : vector<16x32xf32>
    %723 = arith.addf %720, %722 : vector<16x32xf32>
    %724 = vector.broadcast %32 : f32 to vector<16x32xf32>
    %725 = arith.mulf %724, %604 : vector<16x32xf32>
    %726 = arith.addf %723, %725 : vector<16x32xf32>
    %727 = vector.broadcast %39 : f32 to vector<16x32xf32>
    %728 = arith.mulf %727, %519 : vector<16x32xf32>
    %729 = arith.addf %726, %728 : vector<16x32xf32>
    %730 = vector.broadcast %40 : f32 to vector<16x32xf32>
    %731 = arith.mulf %730, %605 : vector<16x32xf32>
    %732 = arith.addf %729, %731 : vector<16x32xf32>
    %733 = vector.broadcast %41 : f32 to vector<16x32xf32>
    %734 = arith.mulf %733, %606 : vector<16x32xf32>
    %735 = arith.addf %732, %734 : vector<16x32xf32>
    %736 = vector.broadcast %48 : f32 to vector<16x32xf32>
    %737 = arith.mulf %736, %602 : vector<16x32xf32>
    %738 = arith.addf %735, %737 : vector<16x32xf32>
    %739 = vector.broadcast %49 : f32 to vector<16x32xf32>
    %740 = arith.mulf %739, %607 : vector<16x32xf32>
    %741 = arith.addf %738, %740 : vector<16x32xf32>
    %742 = vector.broadcast %50 : f32 to vector<16x32xf32>
    %743 = arith.mulf %742, %608 : vector<16x32xf32>
    %744 = arith.addf %741, %743 : vector<16x32xf32>
    %c15_i32_40 = arith.constant 15 : i32
    %745 = tpu.dynamic_rotate %744 by %c15_i32_40 dim 0 : vector<16x32xf32>, i32 -> vector<16x32xf32>
    %746 = arith.addf %718, %745 : vector<16x32xf32>
    %747 = vector.broadcast %33 : f32 to vector<16x32xf32>
    %748 = arith.mulf %747, %436 : vector<16x32xf32>
    %749 = vector.broadcast %34 : f32 to vector<16x32xf32>
    %750 = arith.mulf %749, %603 : vector<16x32xf32>
    %751 = arith.addf %748, %750 : vector<16x32xf32>
    %752 = vector.broadcast %35 : f32 to vector<16x32xf32>
    %753 = arith.mulf %752, %604 : vector<16x32xf32>
    %754 = arith.addf %751, %753 : vector<16x32xf32>
    %755 = vector.broadcast %42 : f32 to vector<16x32xf32>
    %756 = arith.mulf %755, %519 : vector<16x32xf32>
    %757 = arith.addf %754, %756 : vector<16x32xf32>
    %758 = vector.broadcast %43 : f32 to vector<16x32xf32>
    %759 = arith.mulf %758, %605 : vector<16x32xf32>
    %760 = arith.addf %757, %759 : vector<16x32xf32>
    %761 = vector.broadcast %44 : f32 to vector<16x32xf32>
    %762 = arith.mulf %761, %606 : vector<16x32xf32>
    %763 = arith.addf %760, %762 : vector<16x32xf32>
    %764 = vector.broadcast %51 : f32 to vector<16x32xf32>
    %765 = arith.mulf %764, %602 : vector<16x32xf32>
    %766 = arith.addf %763, %765 : vector<16x32xf32>
    %767 = vector.broadcast %52 : f32 to vector<16x32xf32>
    %768 = arith.mulf %767, %607 : vector<16x32xf32>
    %769 = arith.addf %766, %768 : vector<16x32xf32>
    %770 = vector.broadcast %53 : f32 to vector<16x32xf32>
    %771 = arith.mulf %770, %608 : vector<16x32xf32>
    %772 = arith.addf %769, %771 : vector<16x32xf32>
    %c14_i32_41 = arith.constant 14 : i32
    %773 = tpu.dynamic_rotate %772 by %c14_i32_41 dim 0 : vector<16x32xf32>, i32 -> vector<16x32xf32>
    %774 = arith.addf %746, %773 : vector<16x32xf32>
    %775 = vector.broadcast %54 : f32 to vector<16x32xf32>
    %776 = arith.mulf %775, %436 : vector<16x32xf32>
    %777 = vector.broadcast %55 : f32 to vector<16x32xf32>
    %778 = arith.mulf %777, %603 : vector<16x32xf32>
    %779 = arith.addf %776, %778 : vector<16x32xf32>
    %780 = vector.broadcast %56 : f32 to vector<16x32xf32>
    %781 = arith.mulf %780, %604 : vector<16x32xf32>
    %782 = arith.addf %779, %781 : vector<16x32xf32>
    %783 = vector.broadcast %63 : f32 to vector<16x32xf32>
    %784 = arith.mulf %783, %519 : vector<16x32xf32>
    %785 = arith.addf %782, %784 : vector<16x32xf32>
    %786 = vector.broadcast %64 : f32 to vector<16x32xf32>
    %787 = arith.mulf %786, %605 : vector<16x32xf32>
    %788 = arith.addf %785, %787 : vector<16x32xf32>
    %789 = vector.broadcast %65 : f32 to vector<16x32xf32>
    %790 = arith.mulf %789, %606 : vector<16x32xf32>
    %791 = arith.addf %788, %790 : vector<16x32xf32>
    %792 = vector.broadcast %72 : f32 to vector<16x32xf32>
    %793 = arith.mulf %792, %602 : vector<16x32xf32>
    %794 = arith.addf %791, %793 : vector<16x32xf32>
    %795 = vector.broadcast %73 : f32 to vector<16x32xf32>
    %796 = arith.mulf %795, %607 : vector<16x32xf32>
    %797 = arith.addf %794, %796 : vector<16x32xf32>
    %798 = vector.broadcast %74 : f32 to vector<16x32xf32>
    %799 = arith.mulf %798, %608 : vector<16x32xf32>
    %800 = arith.addf %797, %799 : vector<16x32xf32>
    %801 = arith.addf %86, %800 : vector<16x32xf32>
    %802 = vector.broadcast %57 : f32 to vector<16x32xf32>
    %803 = arith.mulf %802, %436 : vector<16x32xf32>
    %804 = vector.broadcast %58 : f32 to vector<16x32xf32>
    %805 = arith.mulf %804, %603 : vector<16x32xf32>
    %806 = arith.addf %803, %805 : vector<16x32xf32>
    %807 = vector.broadcast %59 : f32 to vector<16x32xf32>
    %808 = arith.mulf %807, %604 : vector<16x32xf32>
    %809 = arith.addf %806, %808 : vector<16x32xf32>
    %810 = vector.broadcast %66 : f32 to vector<16x32xf32>
    %811 = arith.mulf %810, %519 : vector<16x32xf32>
    %812 = arith.addf %809, %811 : vector<16x32xf32>
    %813 = vector.broadcast %67 : f32 to vector<16x32xf32>
    %814 = arith.mulf %813, %605 : vector<16x32xf32>
    %815 = arith.addf %812, %814 : vector<16x32xf32>
    %816 = vector.broadcast %68 : f32 to vector<16x32xf32>
    %817 = arith.mulf %816, %606 : vector<16x32xf32>
    %818 = arith.addf %815, %817 : vector<16x32xf32>
    %819 = vector.broadcast %75 : f32 to vector<16x32xf32>
    %820 = arith.mulf %819, %602 : vector<16x32xf32>
    %821 = arith.addf %818, %820 : vector<16x32xf32>
    %822 = vector.broadcast %76 : f32 to vector<16x32xf32>
    %823 = arith.mulf %822, %607 : vector<16x32xf32>
    %824 = arith.addf %821, %823 : vector<16x32xf32>
    %825 = vector.broadcast %77 : f32 to vector<16x32xf32>
    %826 = arith.mulf %825, %608 : vector<16x32xf32>
    %827 = arith.addf %824, %826 : vector<16x32xf32>
    %c15_i32_42 = arith.constant 15 : i32
    %828 = tpu.dynamic_rotate %827 by %c15_i32_42 dim 0 : vector<16x32xf32>, i32 -> vector<16x32xf32>
    %829 = arith.addf %801, %828 : vector<16x32xf32>
    %830 = vector.broadcast %60 : f32 to vector<16x32xf32>
    %831 = arith.mulf %830, %436 : vector<16x32xf32>
    %832 = vector.broadcast %61 : f32 to vector<16x32xf32>
    %833 = arith.mulf %832, %603 : vector<16x32xf32>
    %834 = arith.addf %831, %833 : vector<16x32xf32>
    %835 = vector.broadcast %62 : f32 to vector<16x32xf32>
    %836 = arith.mulf %835, %604 : vector<16x32xf32>
    %837 = arith.addf %834, %836 : vector<16x32xf32>
    %838 = vector.broadcast %69 : f32 to vector<16x32xf32>
    %839 = arith.mulf %838, %519 : vector<16x32xf32>
    %840 = arith.addf %837, %839 : vector<16x32xf32>
    %841 = vector.broadcast %70 : f32 to vector<16x32xf32>
    %842 = arith.mulf %841, %605 : vector<16x32xf32>
    %843 = arith.addf %840, %842 : vector<16x32xf32>
    %844 = vector.broadcast %71 : f32 to vector<16x32xf32>
    %845 = arith.mulf %844, %606 : vector<16x32xf32>
    %846 = arith.addf %843, %845 : vector<16x32xf32>
    %847 = vector.broadcast %78 : f32 to vector<16x32xf32>
    %848 = arith.mulf %847, %602 : vector<16x32xf32>
    %849 = arith.addf %846, %848 : vector<16x32xf32>
    %850 = vector.broadcast %79 : f32 to vector<16x32xf32>
    %851 = arith.mulf %850, %607 : vector<16x32xf32>
    %852 = arith.addf %849, %851 : vector<16x32xf32>
    %853 = vector.broadcast %80 : f32 to vector<16x32xf32>
    %854 = arith.mulf %853, %608 : vector<16x32xf32>
    %855 = arith.addf %852, %854 : vector<16x32xf32>
    %c14_i32_43 = arith.constant 14 : i32
    %856 = tpu.dynamic_rotate %855 by %c14_i32_43 dim 0 : vector<16x32xf32>, i32 -> vector<16x32xf32>
    %857 = arith.addf %829, %856 : vector<16x32xf32>
    %c0_44 = arith.constant 0 : index
    %c0_45 = arith.constant 0 : index
    %c0_46 = arith.constant 0 : index
    %858 = vector.load %arg3[%c0_44, %c0_45, %c0_46] : memref<3x16x32xf32, #tpu.memory_space<vmem>>, vector<1x16x32xf32>
    %859 = vector.shape_cast %858 : vector<1x16x32xf32> to vector<16x32xf32>
    %860 = vector.shape_cast %691 : vector<16x32xf32> to vector<1x16x32xf32>
    tpu.vector_store %arg3[%c0_44, %c0_45, %c0_46], %860 {strides = array<i32>} : memref<3x16x32xf32, #tpu.memory_space<vmem>>, vector<1x16x32xf32>,
    %c1_47 = arith.constant 1 : index
    %c0_48 = arith.constant 0 : index
    %c0_49 = arith.constant 0 : index
    %861 = vector.load %arg3[%c1_47, %c0_48, %c0_49] : memref<3x16x32xf32, #tpu.memory_space<vmem>>, vector<1x16x32xf32>
    %862 = vector.shape_cast %861 : vector<1x16x32xf32> to vector<16x32xf32>
    %863 = vector.shape_cast %774 : vector<16x32xf32> to vector<1x16x32xf32>
    tpu.vector_store %arg3[%c1_47, %c0_48, %c0_49], %863 {strides = array<i32>} : memref<3x16x32xf32, #tpu.memory_space<vmem>>, vector<1x16x32xf32>,
    %c2_50 = arith.constant 2 : index
    %c0_51 = arith.constant 0 : index
    %c0_52 = arith.constant 0 : index
    %864 = vector.load %arg3[%c2_50, %c0_51, %c0_52] : memref<3x16x32xf32, #tpu.memory_space<vmem>>, vector<1x16x32xf32>
    %865 = vector.shape_cast %864 : vector<1x16x32xf32> to vector<16x32xf32>
    %866 = vector.shape_cast %857 : vector<16x32xf32> to vector<1x16x32xf32>
    tpu.vector_store %arg3[%c2_50, %c0_51, %c0_52], %866 {strides = array<i32>} : memref<3x16x32xf32, #tpu.memory_space<vmem>>, vector<1x16x32xf32>,
    return
  }
}

</mosaic_0001>

<bundles_post_ra>
// kernel: tpu_custom_call.1
= control target key start
LH: loop header
LB: loop body
LE: loop exit
PB: predicated region body
PF: predicated region fallthrough
CT: control target
= control target key end

     0   :  { %8 = vsyncpa [#allocation3], 0  ;;  %s5146_s0 = inlined_call_operand.hbm [shape: f32[3,16,32], index: 0, kind: input, shape index: {}]   ;;  %s5147_s1 = inlined_call_operand.vmem [shape: f32[81], index: 1, kind: input, shape index: {}]   ;;  %s5148_s2 = inlined_call_operand.vmem [shape: f32[3], index: 2, kind: input, shape index: {}]   ;;  %s5149_s3 = inlined_call_operand.hbm [shape: f32[3,16,32], index: 3, kind: output, shape index: {}]  }
   0x1   :  { %9 = vsyncpa [#allocation5], 0 }
   0x2   :  { %10 = vsyncpa [#allocation8], 0 }
   0x3   :  { %11 = vsyncpa [#allocation4], 0  ;;  %s2884_s12 = smov [#allocation2]   ;;  %s30_s16 = sshll.u32 %s5147_s1, 4  ;;  %s31_s16 = int_to_ptr.vmem [resolvable:$true] %s30_s16 }
   0x4   :  { %s17_s13 = sshll.u32 %s2884_s12, 4  ;;  %s2808_s19 = scalar_lea.hbm %s5146_s0, 768  ;;  %s18_s13 = int_to_ptr.vmem [resolvable:$true] %s17_s13 }
   0x5   :  { %p2809_p0 = scmp.ne.s32.totalorder %s5146_s0, %s2808_s19  ;;  %p2812_p1 = scmp.lt.u32.totalorder %s2808_s19, %s5146_s0 }
   0x7   :  { %p2814_p2 = pnand %p2812_p1, %p2809_p0 }
   0x9   :  { %2817 = shalt.err (!%p2814_p2)
}
   0xa   :  { %s2818_s24 = scalar_lea.vmem %s18_s13, 768  ;;  %p2823_p4 = scmp.lt.s32.totalorder %s18_s13, %s18_s13 }
   0xb   :  { %p2819_p3 = scmp.ne.s32.totalorder %s18_s13, %s2818_s24  ;;  %p2824_p5 = scmp.lt.s32.totalorder %s2818_s24, %s2818_s24 }
   0xd   :  { %p2825_p6 = por %p2824_p5, %p2823_p4 }
   0xf   :  { %p2826_p7 = pnand %p2825_p6, %p2819_p3 }
  0x11   :  { %2829 = shalt.err (!%p2826_p7)
}
  0x12   :  { %s2885_s1 = smov 128   ;;  %s2886_s25 = smov 8  }
  0x13   :  { %23 = dma.hbm_to_vmem [thread:$0]  %s5146_s0, 768, %s18_s13, [#allocation3], %s2885_s1, %s2885_s1, %s2886_s25  }
  0x14   :  { %s2830_s28 = scalar_lea.vmem %s31_s16, 16  ;;  %p2835_p9 = scmp.lt.s32.totalorder %s31_s16, %s31_s16 }
  0x15   :  { %p2831_p8 = scmp.ne.s32.totalorder %s31_s16, %s2830_s28  ;;  %p2836_p10 = scmp.lt.s32.totalorder %s2830_s28, %s2830_s28 }
  0x17   :  { %p2837_p11 = por %p2836_p10, %p2835_p9 }
  0x19   :  { %p2838_p12 = pnand %p2837_p11, %p2831_p8 }
  0x1b   :  { %2841 = shalt.err (!%p2838_p12)
}
  0x1c   :  { %s2887_s29 = smov [#allocation6]   ;;  %s40_s5 = sshll.u32 %s5148_s2, 4  ;;  %s41_s5 = int_to_ptr.vmem [resolvable:$true] %s40_s5 }
  0x1d   :  { %33 = dma.vmem_to_smem %s31_s16, 16, %s2887_s29, [#allocation5]  }
  0x1e   :  { %s2842_s6 = scalar_lea.vmem %s41_s5, 16  ;;  %p2847_p0 = scmp.lt.s32.totalorder %s41_s5, %s41_s5 }
  0x1f   :  { %p2843_p13 = scmp.ne.s32.totalorder %s41_s5, %s2842_s6  ;;  %p2848_p1 = scmp.lt.s32.totalorder %s2842_s6, %s2842_s6 }
  0x21   :  { %p2849_p2 = por %p2848_p1, %p2847_p0 }
  0x23   :  { %p2850_p3 = pnand %p2849_p2, %p2843_p13 }
  0x25   :  { %2853 = shalt.err (!%p2850_p3)
}
  0x26   :  { %s2888_s0 = smov [#allocation7]  }
  0x27   :  { %43 = dma.vmem_to_smem %s41_s5, 16, %s2888_s0, [#allocation8]  }
  0x28   :  { %2876 = dma.done.wait [#allocation3], 768  }
  0x29   :  { %2877 = vsyncadd [#allocation3], 4294966528 }
  0x2a   :  { %2878 = dma.done.wait [#allocation5], 16  }
  0x2b   :  { %2879 = vsyncadd [#allocation5], 4294967280 }
  0x2c   :  { %2880 = dma.done.wait [#allocation8], 16  }
  0x2d   :  { %2881 = vsyncadd [#allocation8], 4294967280 }
  0x2e   :  { %53 = sfence }
  0x2f   :  { %v2934_v0 = vld [vmem:[#allocation2] sm:$0xff]  ;;  %s2889_s2 = smov 32   ;;  %v2938_v1 = vld [vmem:[#allocation2 + $0x18] sm:$0xff]  ;;  %v2940_v2 = vld [vmem:[#allocation2 + $0x8] sm:$0xff]  ;;  %vm149_vm0 = vcmask 1047808   ;;  %s2711_s7 = sld [smem:[#allocation6 + $0x1]] }
  0x30   :  { %150 = vrot.lane.b32.xlu0 %v2934_v0, %s2889_s2  ;;  %165 = vrot.lane.b32.xlu1 %v2938_v1, %s2889_s2  ;;  %v2944_v3 = vld [vmem:[#allocation2 + $0x28] sm:$0xff]  ;;  %v2948_v4 = vld [vmem:[#allocation2 + $0x10] sm:$0xff]  ;;  %v2954_v5 = vld [vmem:[#allocation2 + $0x20] sm:$0xff]  ;;  %s2712_s8 = sld [smem:[#allocation6 + $0x2]]  ;;  %s2721_s10 = sld [smem:[#allocation6 + $0xb]]  ;;  %vm2683_vm3 = vcmask 261120  }
  0x31   :  { %s2720_s9 = sld [smem:[#allocation6 + $0xa]]  ;;  %s2890_s11 = smov 127  }
  0x32   :  { %s2729_s12 = sld [smem:[#allocation6 + $0x13]]  ;;  %s2891_s13 = smov 126  }
  0x33   :  { %s2730_s14 = sld [smem:[#allocation6 + $0x14]]  ;;  %s2715_s16 = sld [smem:[#allocation6 + $0x5]] }
  0x34   :  { %153 = vrot.lane.b32.xlu0 %v2940_v2, %s2889_s2  ;;  %177 = vrot.lane.b32.xlu1 %v2944_v3, %s2889_s2  ;;  %s2714_s15 = sld [smem:[#allocation6 + $0x4]]  ;;  %s2723_s17 = sld [smem:[#allocation6 + $0xd]] }
  0x35   :  { %v2976_v18 = vstv %s2711_s7  ;;  %s2724_s18 = sld [smem:[#allocation6 + $0xe]]  ;;  %s2733_s20 = sld [smem:[#allocation6 + $0x17]] }
  0x36   :  { %5366 = vst [vmem:[#allocation14_spill] sm:$0xff] %v2976_v18  ;;  %v2984_v22 = vstv %s2712_s8  ;;  %v3007_v32 = vstv %s2721_s10  ;;  %s2732_s19 = sld [smem:[#allocation6 + $0x16]]  ;;  %s2717_s21 = sld [smem:[#allocation6 + $0x7]] }
  0x37   :  { %5367 = vst [vmem:[#allocation15_spill] sm:$0xff] %v2984_v22  ;;  %v2995_v27 = vstv %s2720_s9  ;;  %5369 = vst [vmem:[#allocation17_spill] sm:$0xff] %v3007_v32  ;;  %s2718_s22 = sld [smem:[#allocation6 + $0x8]]  ;;  %s2727_s24 = sld [smem:[#allocation6 + $0x11]] }
  0x38   :  { %162 = vrot.lane.b32.xlu0 %v2948_v4, %s2889_s2  ;;  %5368 = vst [vmem:[#allocation16_spill] sm:$0xff] %v2995_v27  ;;  %v3023_v39 = vstv %s2729_s12  ;;  %s2726_s23 = sld [smem:[#allocation6 + $0x10]]  ;;  %s2735_s26 = sld [smem:[#allocation6 + $0x19]] }
  0x39   :  { %5370 = vst [vmem:[#allocation18_spill] sm:$0xff] %v3023_v39  ;;  %v3033_v43 = vstv %s2730_s14  ;;  %v3051_v50 = vstv %s2715_s16  ;;  %s2736_s27 = sld [smem:[#allocation6 + $0x1a]]  ;;  %s2738_s28 = sld [smem:[#allocation6 + $0x1c]] }
  0x3a   :  { %5371 = vst [vmem:[#allocation19_spill] sm:$0xff] %v3033_v43  ;;  %v3043_v47 = vstv %s2714_s15  ;;  %5373 = vst [vmem:[#allocation21_spill] sm:$0xff] %v3051_v50  ;;  %v3059_v53 = vstv %s2723_s17  ;;  %s2739_s29 = sld [smem:[#allocation6 + $0x1d]]  ;;  %s2748_s4 = sld [smem:[#allocation6 + $0x26]] }
  0x3b   :  { %5372 = vst [vmem:[#allocation20_spill] sm:$0xff] %v3043_v47  ;;  %5374 = vst [vmem:[#allocation22_spill] sm:$0xff] %v3059_v53  ;;  %v3067_v56 = vstv %s2724_s18  ;;  %v3083_v62 = vstv %s2733_s20  ;;  %s2747_s30 = sld [smem:[#allocation6 + $0x25]]  ;;  %s2756_s5 = sld [smem:[#allocation6 + $0x2e]] }
  0x3c   :  { %174 = vrot.lane.b32.xlu0 %v2954_v5, %s2889_s2  ;;  %5375 = vst [vmem:[#allocation23_spill] sm:$0xff] %v3067_v56  ;;  %v3075_v59 = vstv %s2732_s19  ;;  %5377 = vst [vmem:[#allocation25_spill] sm:$0xff] %v3083_v62  ;;  %s2757_s6 = sld [smem:[#allocation6 + $0x2f]]  ;;  %s2742_s7 = sld [smem:[#allocation6 + $0x20]] }
  0x3d   :  { %5376 = vst [vmem:[#allocation24_spill] sm:$0xff] %v3075_v59  ;;  %s2741_s0 = sld [smem:[#allocation6 + $0x1f]]  ;;  %s2750_s8 = sld [smem:[#allocation6 + $0x28]] }
  0x3e   :  { %s2751_s9 = sld [smem:[#allocation6 + $0x29]]  ;;  %s2760_s12 = sld [smem:[#allocation6 + $0x32]] }
  0x3f   :  { %s2759_s10 = sld [smem:[#allocation6 + $0x31]]  ;;  %s2744_s14 = sld [smem:[#allocation6 + $0x22]] }
  0x40   :  { %s2745_s15 = sld [smem:[#allocation6 + $0x23]]  ;;  %s2754_s17 = sld [smem:[#allocation6 + $0x2c]] }
  0x41   :  { %s2753_s16 = sld [smem:[#allocation6 + $0x2b]]  ;;  %s2762_s18 = sld [smem:[#allocation6 + $0x34]] }
  0x42   :  { %s2763_s19 = sld [smem:[#allocation6 + $0x35]]  ;;  %s2765_s20 = sld [smem:[#allocation6 + $0x37]] }
  0xa2   :  { %v151_v6 = vpop.permute.xlu0 %150  ;;  %v166_v9 = vpop.permute.xlu1 %165 }
  0xa3   :  { %v152_v7 = vsel %vm149_vm0, %v151_v6, %v2934_v0  ;;  %v167_v11 = vsel %vm149_vm0, %v166_v9, %v2938_v1 }
  0xa4   :  { %156 = vrot.lane.b32.xlu1 %v152_v7, %s2889_s2  ;;  %v3091_v7 = vstv %s2717_s21  ;;  %s2766_s21 = sld [smem:[#allocation6 + $0x38]] }
  0xa5   :  { %5378 = vst [vmem:[#allocation26_spill] sm:$0xff] %v3091_v7 }
  0xa6   :  { %v154_v8 = vpop.permute.xlu0 %153  ;;  %v178_v13 = vpop.permute.xlu1 %177 }
  0xa7   :  { %v155_v10 = vsel %vm149_vm0, %v154_v8, %v2940_v2  ;;  %v179_v15 = vsel %vm149_vm0, %v178_v13, %v2944_v3  ;;  %v3107_v13 = vstv %s2726_s23  ;;  %s2775_s23 = sld [smem:[#allocation6 + $0x41]] }
  0xa8   :  { %158 = vrot.lane.b32.xlu1 %v155_v10, %s2889_s2  ;;  %v3099_v10 = vstv %s2718_s22  ;;  %5380 = vst [vmem:[#allocation28_spill] sm:$0xff] %v3107_v13  ;;  %s2774_s22 = sld [smem:[#allocation6 + $0x40]] }
  0xa9   :  { %5379 = vst [vmem:[#allocation27_spill] sm:$0xff] %v3099_v10 }
  0xaa   :  { %v163_v12 = vpop.permute.xlu0 %162 }
  0xab   :  { %v164_v14 = vsel %vm149_vm0, %v163_v12, %v2948_v4 }
  0xac   :  { %168 = vrot.lane.b32.xlu0 %v164_v14, %s2889_s2  ;;  %170 = vrot.lane.b32.xlu1 %v167_v11, %s2889_s2 }
  0xae   :  { %v175_v16 = vpop.permute.xlu0 %174 }
  0xaf   :  { %v176_v17 = vsel %vm149_vm0, %v175_v16, %v2954_v5  ;;  %v3115_v16 = vstv %s2727_s24  ;;  %s2783_s24 = sld [smem:[#allocation6 + $0x49]] }
  0xb0   :  { %180 = vrot.lane.b32.xlu0 %v176_v17, %s2889_s2  ;;  %182 = vrot.lane.b32.xlu1 %v179_v15, %s2889_s2  ;;  %5381 = vst [vmem:[#allocation29_spill] sm:$0xff] %v3115_v16 }
 0x116   :  { %v157_v19 = vpop.permute.xlu1 %156 }
 0x117   :  { %v2980_v20 = vsel %vm149_vm0, %v157_v19, %v2934_v0 }
 0x118   :  { %v190_v21 = vmul.f32 %v2976_v18, %v2980_v20  ;;  %v203_v26 = vmul.f32 %v2984_v22, %v2980_v20  ;;  %v283_v49 = vmul.f32 %v3043_v47, %v2980_v20  ;;  %v296_v52 = vmul.f32 %v3051_v50, %v2980_v20 }
 0x119   :  { %v383_v9 = vmul.f32 %v3091_v7, %v2980_v20  ;;  %v396_v12 = vmul.f32 %v3099_v10, %v2980_v20 }
 0x11a   :  { %v159_v23 = vpop.permute.xlu1 %158  ;;  %194 = vrot.lane.b32.xlu0 %v190_v21, %s2890_s11  ;;  %v3123_v21 = vstv %s2735_s26  ;;  %s2784_s26 = sld [smem:[#allocation6 + $0x4a]] }
 0x11b   :  { %v2989_v24 = vsel %vm149_vm0, %v159_v23, %v2940_v2  ;;  %5382 = vst [vmem:[#allocation30_spill] sm:$0xff] %v3123_v21 }
 0x11c   :  { %v191_v25 = vmul.f32 %v2976_v18, %v2989_v24  ;;  %v204_v33 = vmul.f32 %v2984_v22, %v2989_v24  ;;  %v284_v51 = vmul.f32 %v3043_v47, %v2989_v24  ;;  %v297_v54 = vmul.f32 %v3051_v50, %v2989_v24 }
 0x11d   :  { %v384_v11 = vmul.f32 %v3091_v7, %v2989_v24  ;;  %v397_v14 = vmul.f32 %v3099_v10, %v2989_v24 }
 0x11e   :  { %v169_v28 = vpop.permute.xlu0 %168  ;;  %196 = vrot.lane.b32.xlu1 %v191_v25, %s2890_s11  ;;  %207 = vrot.lane.b32.xlu0 %v203_v26, %s2891_s13  ;;  %v171_v29 = vpop.permute.xlu1 %170  ;;  %v3131_v26 = vstv %s2736_s27  ;;  %s2768_s27 = sld [smem:[#allocation6 + $0x3a]] }
 0x11f   :  { %v3001_v30 = vsel %vm149_vm0, %v169_v28, %v2948_v4  ;;  %v3005_v31 = vsel %vm149_vm0, %v171_v29, %v2938_v1  ;;  %5383 = vst [vmem:[#allocation31_spill] sm:$0xff] %v3131_v26 }
 0x120   :  { %v221_v34 = vmul.f32 %v2995_v27, %v3001_v30  ;;  %v222_v36 = vmul.f32 %v2995_v27, %v3005_v31  ;;  %v234_v37 = vmul.f32 %v3007_v32, %v3001_v30  ;;  %v235_v44 = vmul.f32 %v3007_v32, %v3005_v31 }
 0x121   :  { %v314_v55 = vmul.f32 %v3059_v53, %v3001_v30  ;;  %v315_v57 = vmul.f32 %v3059_v53, %v3005_v31  ;;  %v327_v58 = vmul.f32 %v3067_v56, %v3001_v30  ;;  %v328_v60 = vmul.f32 %v3067_v56, %v3005_v31 }
 0x122   :  { %209 = vrot.lane.b32.xlu1 %v204_v33, %s2891_s13  ;;  %225 = vrot.lane.b32.xlu0 %v221_v34, %s2890_s11  ;;  %v181_v35 = vpop.permute.xlu0 %180  ;;  %v183_v40 = vpop.permute.xlu1 %182  ;;  %v414_v15 = vmul.f32 %v3107_v13, %v3001_v30  ;;  %v415_v17 = vmul.f32 %v3107_v13, %v3005_v31  ;;  %v427_v19 = vmul.f32 %v3115_v16, %v3001_v30  ;;  %v3139_v33 = vstv %s2738_s28  ;;  %s2769_s28 = sld [smem:[#allocation6 + $0x3b]] }
 0x123   :  { %v3021_v38 = vsel %vm149_vm0, %v181_v35, %v2954_v5  ;;  %v3031_v42 = vsel %vm149_vm0, %v183_v40, %v2944_v3  ;;  %v428_v23 = vmul.f32 %v3115_v16, %v3005_v31  ;;  %5384 = vst [vmem:[#allocation32_spill] sm:$0xff] %v3139_v33  ;;  %v481_v35 = vmul.f32 %v3139_v33, %v2980_v20 }
 0x124   :  { %v252_v41 = vmul.f32 %v3023_v39, %v3021_v38  ;;  %v253_v45 = vmul.f32 %v3023_v39, %v3031_v42  ;;  %v265_v46 = vmul.f32 %v3033_v43, %v3021_v38  ;;  %v266_v48 = vmul.f32 %v3033_v43, %v3031_v42 }
 0x125   :  { %v345_v61 = vmul.f32 %v3075_v59, %v3021_v38  ;;  %v346_v63 = vmul.f32 %v3075_v59, %v3031_v42  ;;  %v358_v6 = vmul.f32 %v3083_v62, %v3021_v38  ;;  %v359_v8 = vmul.f32 %v3083_v62, %v3031_v42 }
 0x126   :  { %227 = vrot.lane.b32.xlu1 %v222_v36, %s2890_s11  ;;  %238 = vrot.lane.b32.xlu0 %v234_v37, %s2891_s13  ;;  %v445_v25 = vmul.f32 %v3123_v21, %v3021_v38  ;;  %v446_v28 = vmul.f32 %v3123_v21, %v3031_v42  ;;  %v458_v29 = vmul.f32 %v3131_v26, %v3021_v38  ;;  %v3147_v36 = vstv %s2739_s29  ;;  %s2777_s29 = sld [smem:[#allocation6 + $0x43]] }
 0x127   :  { %v459_v34 = vmul.f32 %v3131_v26, %v3031_v42  ;;  %5385 = vst [vmem:[#allocation33_spill] sm:$0xff] %v3147_v36  ;;  %v482_v37 = vmul.f32 %v3139_v33, %v2989_v24  ;;  %v494_v40 = vmul.f32 %v3147_v36, %v2980_v20 }
 0x128   :  { %v3391_v33 = vstv %s2769_s28  ;;  %s2746_s28 = sld [smem:[#allocation6 + $0x24]] }
 0x129   :  { %5409 = vst [vmem:[#allocation57_spill] sm:$0xff] %v3391_v33  ;;  %v875_v16 = vmul.f32 %v3391_v33, %v2989_v24 }
 0x12a   :  { %240 = vrot.lane.b32.xlu1 %v235_v44, %s2891_s13  ;;  %256 = vrot.lane.b32.xlu0 %v252_v41, %s2890_s11  ;;  %v3155_v41 = vstv %s2747_s30  ;;  %v495_v44 = vmul.f32 %v3147_v36, %v2989_v24  ;;  %s2713_s30 = sld [smem:[#allocation6 + $0x3]] }
 0x12b   :  { %5386 = vst [vmem:[#allocation34_spill] sm:$0xff] %v3155_v41 }
 0x12c   :  { %v3401_v21 = vstv %s2777_s29  ;;  %s2752_s29 = sld [smem:[#allocation6 + $0x2a]] }
 0x12d   :  { %5410 = vst [vmem:[#allocation58_spill] sm:$0xff] %v3401_v21  ;;  %v892_v13 = vmul.f32 %v3401_v21, %v3001_v30  ;;  %v893_v53 = vmul.f32 %v3401_v21, %v3005_v31 }
 0x12e   :  { %258 = vrot.lane.b32.xlu1 %v253_v45, %s2890_s11  ;;  %269 = vrot.lane.b32.xlu0 %v265_v46, %s2891_s13  ;;  %v512_v45 = vmul.f32 %v3155_v41, %v3001_v30  ;;  %v3163_v46 = vstv %s2748_s4  ;;  %s2778_s4 = sld [smem:[#allocation6 + $0x44]] }
 0x12f   :  { %5387 = vst [vmem:[#allocation35_spill] sm:$0xff] %v3163_v46 }
 0x132   :  { %271 = vrot.lane.b32.xlu1 %v266_v48, %s2891_s13  ;;  %287 = vrot.lane.b32.xlu0 %v283_v49, %s2890_s11  ;;  %v513_v48 = vmul.f32 %v3155_v41, %v3005_v31  ;;  %v525_v49 = vmul.f32 %v3163_v46, %v3001_v30  ;;  %v3381_v41 = vstv %s2768_s27  ;;  %s2743_s27 = sld [smem:[#allocation6 + $0x21]] }
 0x133   :  { %5408 = vst [vmem:[#allocation56_spill] sm:$0xff] %v3381_v41  ;;  %v862_v26 = vmul.f32 %v3381_v41, %v2989_v24 }
 0x134   :  { %v3419_v10 = vstv %s2778_s4  ;;  %s2755_s4 = sld [smem:[#allocation6 + $0x2d]] }
 0x135   :  { %5412 = vst [vmem:[#allocation60_spill] sm:$0xff] %v3419_v10 }
 0x136   :  { %289 = vrot.lane.b32.xlu1 %v284_v51, %s2890_s11  ;;  %300 = vrot.lane.b32.xlu0 %v296_v52, %s2891_s13  ;;  %v3171_v51 = vstv %s2756_s5  ;;  %v526_v52 = vmul.f32 %v3163_v46, %v3005_v31  ;;  %s2716_s5 = sld [smem:[#allocation6 + $0x6]] }
 0x137   :  { %5388 = vst [vmem:[#allocation36_spill] sm:$0xff] %v3171_v51 }
 0x13a   :  { %302 = vrot.lane.b32.xlu1 %v297_v54, %s2891_s13  ;;  %318 = vrot.lane.b32.xlu0 %v314_v55, %s2890_s11  ;;  %v543_v54 = vmul.f32 %v3171_v51, %v3021_v38  ;;  %v3179_v55 = vstv %s2757_s6  ;;  %s54_s6 = sld [smem:[#allocation6]] }
 0x13b   :  { %5389 = vst [vmem:[#allocation37_spill] sm:$0xff] %v3179_v55 }
 0x13e   :  { %320 = vrot.lane.b32.xlu1 %v315_v57, %s2890_s11  ;;  %331 = vrot.lane.b32.xlu0 %v327_v58, %s2891_s13  ;;  %v544_v57 = vmul.f32 %v3171_v51, %v3031_v42  ;;  %v556_v58 = vmul.f32 %v3179_v55, %v3021_v38  ;;  %v3369_v51 = vstv %s2784_s26  ;;  %s2749_s26 = sld [smem:[#allocation6 + $0x27]] }
 0x13f   :  { %5407 = vst [vmem:[#allocation55_spill] sm:$0xff] %v3369_v51  ;;  %v844_v36 = vmul.f32 %v3369_v51, %v3031_v42 }
 0x140   :  { %v3425_v7 = vstv %s54_s6  ;;  %s2791_s6 = sld [smem:[#allocation7 + $0x1]] }
 0x141   :  { %v187_v43 = vmul.f32 %v3425_v7, %v2934_v0  ;;  %v188_v22 = vmul.f32 %v3425_v7, %v2940_v2 }
 0x142   :  { %333 = vrot.lane.b32.xlu1 %v328_v60, %s2891_s13  ;;  %349 = vrot.lane.b32.xlu0 %v345_v61, %s2890_s11  ;;  %v3187_v60 = vstv %s2741_s0  ;;  %v557_v61 = vmul.f32 %v3179_v55, %v3031_v42  ;;  %s2722_s0 = sld [smem:[#allocation6 + $0xc]] }
 0x143   :  { %5390 = vst [vmem:[#allocation38_spill] sm:$0xff] %v3187_v60 }
 0x146   :  { %351 = vrot.lane.b32.xlu1 %v346_v63, %s2890_s11  ;;  %362 = vrot.lane.b32.xlu0 %v358_v6, %s2891_s13  ;;  %v574_v63 = vmul.f32 %v3187_v60, %v2980_v20  ;;  %v3195_v6 = vstv %s2742_s7  ;;  %s2786_s7 = sld [smem:[#allocation6 + $0x4c]] }
 0x147   :  { %5391 = vst [vmem:[#allocation39_spill] sm:$0xff] %v3195_v6 }
 0x148   :  { %v3440_v50 = vstv %s2722_s0  ;;  %s2767_s0 = sld [smem:[#allocation6 + $0x39]] }
 0x149   :  { %5414 = vst [vmem:[#allocation62_spill] sm:$0xff] %v3440_v50  ;;  %v310_v21 = vmul.f32 %v3440_v50, %v2938_v1  ;;  %v309_v32 = vmul.f32 %v3440_v50, %v2948_v4 }
 0x14a   :  { %364 = vrot.lane.b32.xlu1 %v359_v8, %s2891_s13  ;;  %387 = vrot.lane.b32.xlu0 %v383_v9, %s2890_s11  ;;  %v575_v8 = vmul.f32 %v3187_v60, %v2989_v24  ;;  %v587_v9 = vmul.f32 %v3195_v6, %v2980_v20  ;;  %v3357_v60 = vstv %s2783_s24  ;;  %s2737_s24 = sld [smem:[#allocation6 + $0x1b]] }
 0x14b   :  { %5406 = vst [vmem:[#allocation54_spill] sm:$0xff] %v3357_v60  ;;  %v831_v46 = vmul.f32 %v3357_v60, %v3031_v42 }
 0x14c   :  { %v3444_v47 = vstv %s2786_s7  ;;  %s2764_s7 = sld [smem:[#allocation6 + $0x36]] }
 0x14d   :  { %5415 = vst [vmem:[#allocation63_spill] sm:$0xff] %v3444_v47 }
 0x14e   :  { %389 = vrot.lane.b32.xlu1 %v384_v11, %s2890_s11  ;;  %400 = vrot.lane.b32.xlu0 %v396_v12, %s2891_s13  ;;  %v3203_v11 = vstv %s2750_s8  ;;  %v588_v12 = vmul.f32 %v3195_v6, %v2989_v24  ;;  %s2719_s8 = sld [smem:[#allocation6 + $0x9]] }
 0x14f   :  { %5392 = vst [vmem:[#allocation40_spill] sm:$0xff] %v3203_v11 }
 0x152   :  { %402 = vrot.lane.b32.xlu1 %v397_v14, %s2891_s13  ;;  %418 = vrot.lane.b32.xlu0 %v414_v15, %s2890_s11  ;;  %v605_v14 = vmul.f32 %v3203_v11, %v3001_v30  ;;  %v3211_v15 = vstv %s2751_s9  ;;  %s2787_s9 = sld [smem:[#allocation6 + $0x4d]] }
 0x153   :  { %5393 = vst [vmem:[#allocation41_spill] sm:$0xff] %v3211_v15 }
 0x154   :  { %v3450_v39 = vstv %s2719_s8  ;;  %s2776_s8 = sld [smem:[#allocation6 + $0x42]] }
 0x156   :  { %420 = vrot.lane.b32.xlu1 %v415_v17, %s2890_s11  ;;  %431 = vrot.lane.b32.xlu0 %v427_v19, %s2891_s13  ;;  %v606_v17 = vmul.f32 %v3203_v11, %v3005_v31  ;;  %v618_v19 = vmul.f32 %v3211_v15, %v3001_v30  ;;  %v3345_v11 = vstv %s2775_s23  ;;  %s2740_s23 = sld [smem:[#allocation6 + $0x1e]] }
 0x157   :  { %5405 = vst [vmem:[#allocation53_spill] sm:$0xff] %v3345_v11  ;;  %v813_v55 = vmul.f32 %v3345_v11, %v3005_v31 }
 0x15a   :  { %433 = vrot.lane.b32.xlu1 %v428_v23, %s2891_s13  ;;  %449 = vrot.lane.b32.xlu0 %v445_v25, %s2890_s11  ;;  %v3219_v23 = vstv %s2759_s10  ;;  %v619_v25 = vmul.f32 %v3211_v15, %v3005_v31  ;;  %s3407_s10 = sld [smem:[#allocation6 + $0xf]] }
 0x15b   :  { %5394 = vst [vmem:[#allocation42_spill] sm:$0xff] %v3219_v23 }
 0x15e   :  { %451 = vrot.lane.b32.xlu1 %v446_v28, %s2890_s11  ;;  %462 = vrot.lane.b32.xlu0 %v458_v29, %s2891_s13  ;;  %v636_v28 = vmul.f32 %v3219_v23, %v3021_v38  ;;  %v3227_v29 = vstv %s2760_s12  ;;  %s3446_s12 = sld [smem:[#allocation6 + $0x3d]] }
 0x15f   :  { %5395 = vst [vmem:[#allocation43_spill] sm:$0xff] %v3227_v29 }
 0x162   :  { %464 = vrot.lane.b32.xlu1 %v459_v34, %s2891_s13  ;;  %485 = vrot.lane.b32.xlu0 %v481_v35, %s2890_s11  ;;  %v637_v35 = vmul.f32 %v3219_v23, %v3031_v42  ;;  %v3333_v23 = vstv %s2774_s22  ;;  %s3589_s22 = sld [smem:[#allocation6 + $0x50]] }
 0x163   :  { %5404 = vst [vmem:[#allocation52_spill] sm:$0xff] %v3333_v23  ;;  %v800_v6 = vmul.f32 %v3333_v23, %v3005_v31 }
 0x166   :  { %487 = vrot.lane.b32.xlu1 %v482_v37, %s2890_s11  ;;  %498 = vrot.lane.b32.xlu0 %v494_v40, %s2891_s13  ;;  %v649_v37 = vmul.f32 %v3227_v29, %v3021_v38  ;;  %v3237_v40 = vstv %s2744_s14  ;;  %s3456_s14 = sld [smem:[#allocation6 + $0x3e]] }
 0x167   :  { %5396 = vst [vmem:[#allocation44_spill] sm:$0xff] %v3237_v40 }
 0x16a   :  { %500 = vrot.lane.b32.xlu1 %v495_v44, %s2891_s13  ;;  %516 = vrot.lane.b32.xlu0 %v512_v45, %s2890_s11 }
 0x16e   :  { %518 = vrot.lane.b32.xlu1 %v513_v48, %s2890_s11  ;;  %529 = vrot.lane.b32.xlu0 %v525_v49, %s2891_s13  ;;  %v650_v48 = vmul.f32 %v3227_v29, %v3031_v42  ;;  %v671_v49 = vmul.f32 %v3237_v40, %v2980_v20 }
 0x172   :  { %531 = vrot.lane.b32.xlu1 %v526_v52, %s2891_s13  ;;  %547 = vrot.lane.b32.xlu0 %v543_v54, %s2890_s11  ;;  %v3249_v52 = vstv %s2745_s15  ;;  %s3462_s15 = sld [smem:[#allocation6 + $0x15]] }
 0x173   :  { %5397 = vst [vmem:[#allocation45_spill] sm:$0xff] %v3249_v52 }
 0x176   :  { %549 = vrot.lane.b32.xlu1 %v544_v57, %s2890_s11  ;;  %560 = vrot.lane.b32.xlu0 %v556_v58, %s2891_s13  ;;  %v672_v58 = vmul.f32 %v3237_v40, %v2989_v24  ;;  %v3321_v40 = vstv %s2766_s21  ;;  %s3583_s21 = sld [smem:[#allocation7]] }
 0x177   :  { %5403 = vst [vmem:[#allocation51_spill] sm:$0xff] %v3321_v40  ;;  %v782_v15 = vmul.f32 %v3321_v40, %v2989_v24 }
 0x17a   :  { %562 = vrot.lane.b32.xlu1 %v557_v61, %s2891_s13  ;;  %578 = vrot.lane.b32.xlu0 %v574_v63, %s2890_s11  ;;  %v684_v61 = vmul.f32 %v3249_v52, %v2980_v20  ;;  %v3261_v63 = vstv %s2753_s16  ;;  %s3484_s16 = sld [smem:[#allocation6 + $0x12]] }
 0x17b   :  { %5398 = vst [vmem:[#allocation46_spill] sm:$0xff] %v3261_v63 }
 0x17e   :  { %580 = vrot.lane.b32.xlu1 %v575_v8, %s2890_s11  ;;  %591 = vrot.lane.b32.xlu0 %v587_v9, %s2891_s13 }
 0x182   :  { %593 = vrot.lane.b32.xlu1 %v588_v12, %s2891_s13  ;;  %609 = vrot.lane.b32.xlu0 %v605_v14, %s2890_s11  ;;  %v685_v12 = vmul.f32 %v3249_v52, %v2989_v24  ;;  %v702_v14 = vmul.f32 %v3261_v63, %v3001_v30 }
 0x186   :  { %611 = vrot.lane.b32.xlu1 %v606_v17, %s2890_s11  ;;  %622 = vrot.lane.b32.xlu0 %v618_v19, %s2891_s13  ;;  %v3273_v17 = vstv %s2754_s17  ;;  %s3486_s17 = sld [smem:[#allocation6 + $0x18]] }
 0x187   :  { %5399 = vst [vmem:[#allocation47_spill] sm:$0xff] %v3273_v17 }
 0x18a   :  { %624 = vrot.lane.b32.xlu1 %v619_v25, %s2891_s13  ;;  %640 = vrot.lane.b32.xlu0 %v636_v28, %s2890_s11  ;;  %v703_v28 = vmul.f32 %v3261_v63, %v3005_v31  ;;  %v3309_v63 = vstv %s2765_s20  ;;  %s3567_s20 = sld [smem:[#allocation6 + $0x4f]] }
 0x18b   :  { %5402 = vst [vmem:[#allocation50_spill] sm:$0xff] %v3309_v63  ;;  %v769_v29 = vmul.f32 %v3309_v63, %v2989_v24 }
 0x18c   :  { %v3231_v34 = vpop.permute.xlu0 %194 }
 0x18d   :  { %v200_v50 = vadd.f32 %v3231_v34, %v187_v43 }
 0x18e   :  { %642 = vrot.lane.b32.xlu1 %v637_v35, %s2890_s11  ;;  %653 = vrot.lane.b32.xlu0 %v649_v37, %s2891_s13  ;;  %v715_v35 = vmul.f32 %v3273_v17, %v3001_v30  ;;  %v3285_v37 = vstv %s2762_s18  ;;  %s3507_s18 = sld [smem:[#allocation6 + $0x46]] }
 0x18f   :  { %5400 = vst [vmem:[#allocation48_spill] sm:$0xff] %v3285_v37 }
 0x190   :  { %v3241_v44 = vpop.permute.xlu1 %196  ;;  %v3243_v45 = vpop.permute.xlu0 %207 }
 0x191   :  { %v213_v43 = vadd.f32 %v3243_v45, %v200_v50  ;;  %v201_v50 = vadd.f32 %v3241_v44, %v188_v22  ;;  %v217_v45 = vmul.f32 %v3450_v39, %v2938_v1 }
 0x192   :  { %655 = vrot.lane.b32.xlu1 %v650_v48, %s2891_s13  ;;  %675 = vrot.lane.b32.xlu0 %v671_v49, %s2890_s11 }
 0x194   :  { %v3253_v54 = vpop.permute.xlu1 %209  ;;  %v3255_v57 = vpop.permute.xlu0 %225 }
 0x196   :  { %677 = vrot.lane.b32.xlu1 %v672_v58, %s2890_s11  ;;  %688 = vrot.lane.b32.xlu0 %v684_v61, %s2891_s13  ;;  %v716_v58 = vmul.f32 %v3273_v17, %v3005_v31  ;;  %v733_v61 = vmul.f32 %v3285_v37, %v3021_v38 }
 0x198   :  { %v3265_v8 = vpop.permute.xlu1 %227  ;;  %v3267_v9 = vpop.permute.xlu0 %238 }
 0x19a   :  { %690 = vrot.lane.b32.xlu1 %v685_v12, %s2891_s13  ;;  %706 = vrot.lane.b32.xlu0 %v702_v14, %s2890_s11  ;;  %v3297_v12 = vstv %s2763_s19  ;;  %s3535_s19 = sld [smem:[#allocation6 + $0x47]] }
 0x19b   :  { %5401 = vst [vmem:[#allocation49_spill] sm:$0xff] %v3297_v12  ;;  %v746_v17 = vmul.f32 %v3297_v12, %v3021_v38  ;;  %v747_v52 = vmul.f32 %v3297_v12, %v3031_v42  ;;  %v781_v12 = vmul.f32 %v3321_v40, %v2980_v20  ;;  %v812_v40 = vmul.f32 %v3345_v11, %v3001_v30 }
 0x19c   :  { %v3277_v19 = vpop.permute.xlu1 %240  ;;  %v3279_v25 = vpop.permute.xlu0 %256  ;;  %v843_v11 = vmul.f32 %v3369_v51, %v3021_v38  ;;  %v874_v51 = vmul.f32 %v3391_v33, %v2980_v20 }
 0x19e   :  { %708 = vrot.lane.b32.xlu1 %v703_v28, %s2890_s11  ;;  %719 = vrot.lane.b32.xlu0 %v715_v35, %s2891_s13  ;;  %v734_v35 = vmul.f32 %v3285_v37, %v3031_v42  ;;  %v768_v37 = vmul.f32 %v3309_v63, %v2980_v20  ;;  %v799_v63 = vmul.f32 %v3333_v23, %v3001_v30 }
 0x19f   :  { %v830_v23 = vmul.f32 %v3357_v60, %v3021_v38  ;;  %v861_v60 = vmul.f32 %v3381_v41, %v2980_v20 }
 0x1a0   :  { %v3289_v48 = vpop.permute.xlu1 %258  ;;  %v3291_v49 = vpop.permute.xlu0 %269 }
 0x1a2   :  { %721 = vrot.lane.b32.xlu1 %v716_v58, %s2891_s13  ;;  %737 = vrot.lane.b32.xlu0 %v733_v61, %s2890_s11 }
 0x1a4   :  { %v3301_v14 = vpop.permute.xlu1 %271  ;;  %v3303_v28 = vpop.permute.xlu0 %287 }
 0x1a6   :  { %739 = vrot.lane.b32.xlu1 %v734_v35, %s2890_s11  ;;  %750 = vrot.lane.b32.xlu0 %v746_v17, %s2891_s13 }
 0x1a8   :  { %v3313_v58 = vpop.permute.xlu1 %289  ;;  %v3315_v61 = vpop.permute.xlu0 %300 }
 0x1aa   :  { %752 = vrot.lane.b32.xlu1 %v747_v52, %s2891_s13  ;;  %772 = vrot.lane.b32.xlu0 %v768_v37, %s2890_s11 }
 0x1ac   :  { %v3325_v35 = vpop.permute.xlu1 %302  ;;  %v3327_v17 = vpop.permute.xlu0 %318 }
 0x1ae   :  { %774 = vrot.lane.b32.xlu1 %v769_v29, %s2890_s11  ;;  %785 = vrot.lane.b32.xlu0 %v781_v12, %s2891_s13 }
 0x1b0   :  { %v3337_v52 = vpop.permute.xlu1 %320  ;;  %v3339_v37 = vpop.permute.xlu0 %331 }
 0x1b2   :  { %787 = vrot.lane.b32.xlu1 %v782_v15, %s2891_s13  ;;  %803 = vrot.lane.b32.xlu0 %v799_v63, %s2890_s11 }
 0x1b4   :  { %v3349_v29 = vpop.permute.xlu1 %333  ;;  %v3351_v12 = vpop.permute.xlu0 %349 }
 0x1b6   :  { %805 = vrot.lane.b32.xlu1 %v800_v6, %s2890_s11  ;;  %816 = vrot.lane.b32.xlu0 %v812_v40, %s2891_s13 }
 0x1b8   :  { %v3361_v15 = vpop.permute.xlu1 %351  ;;  %v3363_v63 = vpop.permute.xlu0 %362 }
 0x1ba   :  { %818 = vrot.lane.b32.xlu1 %v813_v55, %s2891_s13  ;;  %834 = vrot.lane.b32.xlu0 %v830_v23, %s2890_s11 }
 0x1bc   :  { %v3373_v6 = vpop.permute.xlu1 %364  ;;  %v3375_v40 = vpop.permute.xlu0 %387 }
 0x1be   :  { %836 = vrot.lane.b32.xlu1 %v831_v46, %s2890_s11  ;;  %847 = vrot.lane.b32.xlu0 %v843_v11, %s2891_s13 }
 0x1c0   :  { %v390_v55 = vpop.permute.xlu1 %389  ;;  %v3385_v23 = vpop.permute.xlu0 %400 }
 0x1c2   :  { %849 = vrot.lane.b32.xlu1 %v844_v36, %s2891_s13  ;;  %865 = vrot.lane.b32.xlu0 %v861_v60, %s2890_s11  ;;  %v3405_v36 = vstv %s2713_s30  ;;  %s2758_s30 = sld [smem:[#allocation6 + $0x30]] }
 0x1c3   :  { %5411 = vst [vmem:[#allocation59_spill] sm:$0xff] %v3405_v36  ;;  %v280_v62 = vmul.f32 %v3405_v36, %v2934_v0 }
 0x1c4   :  { %v403_v46 = vpop.permute.xlu1 %402  ;;  %v3395_v11 = vpop.permute.xlu0 %418 }
 0x1c6   :  { %867 = vrot.lane.b32.xlu1 %v862_v26, %s2890_s11  ;;  %878 = vrot.lane.b32.xlu0 %v874_v51, %s2891_s13  ;;  %v281_v26 = vmul.f32 %v3405_v36, %v2940_v2  ;;  %v3421_v51 = vstv %s2716_s5  ;;  %s2761_s5 = sld [smem:[#allocation6 + $0x33]] }
 0x1c7   :  { %5413 = vst [vmem:[#allocation61_spill] sm:$0xff] %v3421_v51  ;;  %v381_v33 = vmul.f32 %v3421_v51, %v2940_v2  ;;  %v380_v36 = vmul.f32 %v3421_v51, %v2934_v0  ;;  %v216_v2 = vmul.f32 %v3450_v39, %v2948_v4 }
 0x1c8   :  { %v3409_v60 = vpop.permute.xlu1 %420  ;;  %v3411_v41 = vpop.permute.xlu0 %431 }
 0x1c9   :  { %v394_v0 = vadd.f32 %v390_v55, %v381_v33 }
 0x1ca   :  { %880 = vrot.lane.b32.xlu1 %v875_v16, %s2891_s13  ;;  %896 = vrot.lane.b32.xlu0 %v892_v13, %s2890_s11  ;;  %v905_v16 = vmul.f32 %v3419_v10, %v3001_v30  ;;  %v294_v13 = vadd.f32 %v3313_v58, %v281_v26  ;;  %v3454_v58 = vstv %s2787_s9  ;;  %v293_v26 = vadd.f32 %v3303_v28, %v280_v62  ;;  %s2773_s9 = sld [smem:[#allocation6 + $0x3f]] }
 0x1cb   :  { %5416 = vst [vmem:[#allocation64_spill] sm:$0xff] %v3454_v58  ;;  %v906_v62 = vmul.f32 %v3419_v10, %v3005_v31  ;;  %v923_v28 = vmul.f32 %v3444_v47, %v3021_v38  ;;  %v407_v33 = vadd.f32 %v403_v46, %v394_v0  ;;  %v3505_v0 = vstv %s3446_s12  ;;  %s2779_s12 = sld [smem:[#allocation6 + $0x45]] }
 0x1cc   :  { %v3431_v59 = vpop.permute.xlu1 %433  ;;  %v3433_v56 = vpop.permute.xlu0 %449  ;;  %v307_v51 = vadd.f32 %v3325_v35, %v294_v13  ;;  %v306_v35 = vadd.f32 %v3315_v61, %v293_v26  ;;  %v393_v13 = vadd.f32 %v3375_v40, %v380_v36  ;;  %v924_v26 = vmul.f32 %v3444_v47, %v3031_v42 }
 0x1ce   :  { %898 = vrot.lane.b32.xlu1 %v893_v53, %s2890_s11  ;;  %909 = vrot.lane.b32.xlu0 %v905_v16, %s2891_s13  ;;  %v3467_v53 = vstv %s3407_s10  ;;  %v312_v61 = vadd.f32 %v310_v21, %v307_v51  ;;  %v406_v40 = vadd.f32 %v3385_v23, %v393_v13  ;;  %v936_v21 = vmul.f32 %v3454_v58, %v3021_v38  ;;  %s2770_s10 = sld [smem:[#allocation6 + $0x3c]] }
 0x1cf   :  { %5417 = vst [vmem:[#allocation65_spill] sm:$0xff] %v3467_v53  ;;  %v410_v55 = vmul.f32 %v3467_v53, %v2938_v1  ;;  %v409_v46 = vmul.f32 %v3467_v53, %v2948_v4  ;;  %v311_v23 = vadd.f32 %v309_v32, %v306_v35  ;;  %v3513_v4 = vstv %s3456_s14  ;;  %s2785_s14 = sld [smem:[#allocation6 + $0x4b]] }
 0x1d0   :  { %v3469_v16 = vpop.permute.xlu1 %451  ;;  %v3471_v27 = vpop.permute.xlu0 %462  ;;  %v3519_v32 = vstv %s3462_s15  ;;  %v214_v35 = vadd.f32 %v3253_v54, %v201_v50  ;;  %v218_v13 = vadd.f32 %v216_v2, %v213_v43  ;;  %v3543_v43 = vstv %s3486_s17  ;;  %s2782_s15 = sld [smem:[#allocation6 + $0x48]]  ;;  %s2792_s17 = sld [smem:[#allocation7 + $0x2]] }
 0x1d1   :  { %v412_v51 = vadd.f32 %v410_v55, %v407_v33  ;;  %v937_v33 = vmul.f32 %v3454_v58, %v3031_v42  ;;  %v958_v55 = vmul.f32 %v3505_v0, %v2980_v20  ;;  %v324_v1 = vadd.f32 %v3327_v17, %v311_v23 }
 0x1d2   :  { %911 = vrot.lane.b32.xlu1 %v906_v62, %s2891_s13  ;;  %927 = vrot.lane.b32.xlu0 %v923_v28, %s2890_s11  ;;  %v325_v62 = vadd.f32 %v3337_v52, %v312_v61  ;;  %v411_v28 = vadd.f32 %v409_v46, %v406_v40  ;;  %v341_v61 = vmul.f32 %v3519_v32, %v2944_v3  ;;  %v3538_v40 = vstv %s3484_s16  ;;  %s2788_s16 = sld [smem:[#allocation6 + $0x4e]] }
 0x1d3   :  { %v425_v54 = vadd.f32 %v3409_v60, %v412_v51  ;;  %v340_v46 = vmul.f32 %v3519_v32, %v2954_v5  ;;  %v337_v17 = vadd.f32 %v3339_v37, %v324_v1  ;;  %v441_v2 = vmul.f32 %v3543_v43, %v2944_v3 }
 0x1d4   :  { %v3496_v34 = vpop.permute.xlu1 %464  ;;  %v3498_v36 = vpop.permute.xlu0 %485  ;;  %v338_v52 = vadd.f32 %v3349_v29, %v325_v62  ;;  %v424_v29 = vadd.f32 %v3395_v11, %v411_v28  ;;  %v959_v50 = vmul.f32 %v3505_v0, %v2989_v24  ;;  %v971_v37 = vmul.f32 %v3513_v4, %v2980_v20 }
 0x1d5   :  { %v438_v60 = vadd.f32 %v3431_v59, %v425_v54  ;;  %v440_v59 = vmul.f32 %v3543_v43, %v2954_v5  ;;  %v3565_v28 = vstv %s3507_s18  ;;  %v342_v20 = vadd.f32 %v340_v46, %v337_v17 }
 0x1d6   :  { %929 = vrot.lane.b32.xlu1 %v924_v26, %s2890_s11  ;;  %940 = vrot.lane.b32.xlu0 %v936_v21, %s2891_s13  ;;  %v231_v26 = vadd.f32 %v3255_v57, %v218_v13  ;;  %v219_v21 = vadd.f32 %v217_v45, %v214_v35  ;;  %v343_v62 = vadd.f32 %v341_v61, %v338_v52  ;;  %v372_v13 = vlaneseq }
 0x1d7   :  { %v437_v11 = vadd.f32 %v3411_v41, %v424_v29  ;;  %v247_v45 = vmul.f32 %v3538_v40, %v2954_v5  ;;  %v443_v35 = vadd.f32 %v441_v2, %v438_v60  ;;  %v972_v1 = vmul.f32 %v3513_v4, %v2989_v24 }
 0x1d8   :  { %v3522_v22 = vpop.permute.xlu1 %487  ;;  %v3524_v44 = vpop.permute.xlu0 %498  ;;  %v244_v57 = vadd.f32 %v3267_v9, %v231_v26  ;;  %v232_v41 = vadd.f32 %v3265_v8, %v219_v21  ;;  %v989_v9 = vmul.f32 %v3565_v28, %v3001_v30  ;;  %v356_v5 = vadd.f32 %v3361_v15, %v343_v62 }
 0x1d9   :  { %v442_v52 = vadd.f32 %v440_v59, %v437_v11  ;;  %v3587_v61 = vstv %s3535_s19  ;;  %v248_v46 = vmul.f32 %v3538_v40, %v2944_v3  ;;  %v355_v24 = vadd.f32 %v3351_v12, %v342_v20 }
 0x1da   :  { %942 = vrot.lane.b32.xlu1 %v937_v33, %s2891_s13  ;;  %962 = vrot.lane.b32.xlu0 %v958_v55, %s2890_s11  ;;  %v245_v8 = vadd.f32 %v3277_v19, %v232_v41  ;;  %v249_v54 = vadd.f32 %v247_v45, %v244_v57  ;;  %v369_v15 = vadd.f32 %v3373_v6, %v356_v5  ;;  %v3599_v29 = vshrl.u32 %v372_v13, 7 }
 0x1db   :  { %v456_v17 = vadd.f32 %v3469_v16, %v443_v35  ;;  %v990_v2 = vmul.f32 %v3565_v28, %v3005_v31  ;;  %v1002_v3 = vmul.f32 %v3587_v61, %v3001_v30  ;;  %v368_v26 = vadd.f32 %v3363_v63, %v355_v24 }
 0x1dc   :  { %v3553_v23 = vpop.permute.xlu1 %500  ;;  %v3555_v51 = vpop.permute.xlu0 %516  ;;  %5418 = vst [vmem:[#allocation66_spill] sm:$0xff] %v3599_v29  ;;  %v455_v12 = vadd.f32 %v3433_v56, %v442_v52  ;;  %v3613_v16 = vstv %s3567_s20  ;;  %v262_v21 = vadd.f32 %v3279_v25, %v249_v54  ;;  %vm374_vm1 = vcmp.lt.s32.totalorder %v3599_v29, 7 }
 0x1dd   :  { %v469_v6 = vadd.f32 %v3496_v34, %v456_v17  ;;  %5419 = vst [vmem:[#allocation67_spill] sm:$0xff] %v3613_v16  ;;  %v1003_v62 = vmul.f32 %v3587_v61, %v3005_v31  ;;  %v1020_v25 = vmul.f32 %v3613_v16, %v3021_v38  ;;  %v3630_v11 = vstv %s3583_s21 }
 0x1de   :  { %964 = vrot.lane.b32.xlu1 %v959_v50, %s2890_s11  ;;  %975 = vrot.lane.b32.xlu0 %v971_v37, %s2891_s13  ;;  %v250_v50 = vadd.f32 %v248_v46, %v245_v8  ;;  %v371_v37 = vrot.slane %v369_v15, 1  ;;  %v468_v30 = vadd.f32 %v3471_v27, %v455_v12  ;;  %v275_v63 = vadd.f32 %v3291_v49, %v262_v21 }
 0x1df   :  { %5420 = vst [vmem:[#allocation68_spill] sm:$0xff] %v3630_v11  ;;  %v370_v59 = vrot.slane %v368_v26, 1  ;;  %v471_v57 = vrot.slane %v469_v6, 2  ;;  %v3633_v45 = vstv %s3589_s22  ;;  %vm472_vm2 = vcmp.lt.s32.totalorder %v3599_v29, 6  ;;  %v3671_v6 = vld [vmem:[#allocation2 + $0x8] sm:$0xff] }
 0x1e0   :  { %v3575_v33 = vpop.permute.xlu1 %518  ;;  %v3577_v55 = vpop.permute.xlu0 %529  ;;  %5421 = vst [vmem:[#allocation69_spill] sm:$0xff] %v3633_v45  ;;  %v263_v27 = vadd.f32 %v3289_v48, %v250_v50  ;;  %v470_v49 = vrot.slane %v468_v30, 2  ;;  %v277_v20 = vadd.f32 %v275_v63, %v3630_v11  ;;  %v1021_v48 = vmul.f32 %v3613_v16, %v3031_v42  ;;  %v3679_v63 = vld [vmem:[#allocation2] sm:$0xff] }
 0x1e1   :  { %v375_v31 = vsel %vm374_vm1, %v370_v59, %v371_v37  ;;  %v3669_v12 = vstv %s2740_s23  ;;  %v3677_v30 = vstv %s2737_s24 }
 0x1e2   :  { %977 = vrot.lane.b32.xlu1 %v972_v1, %s2891_s13  ;;  %993 = vrot.lane.b32.xlu0 %v989_v9, %s2890_s11  ;;  %v276_v35 = vadd.f32 %v3301_v14, %v263_v27  ;;  %v1033_v1 = vmul.f32 %v3633_v45, %v3021_v38  ;;  %v473_v9 = vsel %vm472_vm2, %v470_v49, %v471_v57  ;;  %v3687_v27 = vstv %s2749_s26 }
 0x1e3   :  { %v377_v5 = vadd.f32 %v375_v31, %v277_v20  ;;  %v376_v14 = vsel %vm374_vm1, %v371_v37, %v370_v59  ;;  %v1034_v38 = vmul.f32 %v3633_v45, %v3031_v42  ;;  %v474_v24 = vsel %vm472_vm2, %v471_v57, %v470_v49  ;;  %5422 = vst [vmem:[#allocation70_spill] sm:$0xff] %v3669_v12 }
 0x1e4   :  { %v3601_v60 = vpop.permute.xlu1 %531  ;;  %v3603_v19 = vpop.permute.xlu0 %547  ;;  %v278_v52 = vadd.f32 %v276_v35, %v3630_v11  ;;  %v572_v21 = vmul.f32 %v3671_v6, %v3669_v12  ;;  %5423 = vst [vmem:[#allocation71_spill] sm:$0xff] %v3677_v30  ;;  %v478_v59 = vmul.f32 %v3679_v63, %v3677_v30  ;;  %v479_v57 = vmul.f32 %v3671_v6, %v3677_v30 }
 0x1e5   :  { %v3656_v8 = vadd.f32 %v473_v9, %v377_v5  ;;  %5424 = vst [vmem:[#allocation72_spill] sm:$0xff] %v3687_v27  ;;  %v3697_v9 = vstv %s2743_s27  ;;  %v3699_v5 = vstv %s2746_s28 }
 0x1e6   :  { %995 = vrot.lane.b32.xlu1 %v990_v2, %s2890_s11  ;;  %1006 = vrot.lane.b32.xlu0 %v1002_v3, %s2891_s13  ;;  %v378_v15 = vadd.f32 %v376_v14, %v278_v52  ;;  %5425 = vst [vmem:[#allocation73_spill] sm:$0xff] %v3697_v9  ;;  %5426 = vst [vmem:[#allocation74_spill] sm:$0xff] %v3699_v5  ;;  %v3701_v52 = vld [vmem:[#allocation2 + $0x10] sm:$0xff] }
 0x1e8   :  { %v3621_v56 = vpop.permute.xlu1 %549  ;;  %v3623_v34 = vpop.permute.xlu0 %560  ;;  %v3665_v17 = vadd.f32 %v474_v24, %v378_v15  ;;  %v492_v24 = vadd.f32 %v3522_v22, %v479_v57  ;;  %v669_v22 = vmul.f32 %v3671_v6, %v3697_v9 }
 0x1ea   :  { %1008 = vrot.lane.b32.xlu1 %v1003_v62, %s2891_s13  ;;  %1024 = vrot.lane.b32.xlu0 %v1020_v25, %s2890_s11  ;;  %v571_v62 = vmul.f32 %v3679_v63, %v3669_v12  ;;  %v3723_v12 = vld [vmem:[#allocation2 + $0x28] sm:$0xff] }
 0x1ec   :  { %v3643_v41 = vpop.permute.xlu1 %562  ;;  %v579_v13 = vpop.permute.xlu0 %578 }
 0x1ed   :  { %v584_v20 = vadd.f32 %v579_v13, %v571_v62  ;;  %v668_v13 = vmul.f32 %v3679_v63, %v3697_v9 }
 0x1ee   :  { %1026 = vrot.lane.b32.xlu1 %v1021_v48, %s2890_s11  ;;  %1037 = vrot.lane.b32.xlu0 %v1033_v1, %s2891_s13  ;;  %v3693_v48 = vld [vmem:[#allocation2 + $0x18] sm:$0xff] }
 0x1ef   :  { %v601_v1 = vmul.f32 %v3693_v48, %v3687_v27 }
 0x1f0   :  { %v581_v54 = vpop.permute.xlu1 %580  ;;  %v592_v46 = vpop.permute.xlu0 %591 }
 0x1f1   :  { %v585_v25 = vadd.f32 %v581_v54, %v572_v21  ;;  %v597_v14 = vadd.f32 %v592_v46, %v584_v20  ;;  %v600_v54 = vmul.f32 %v3701_v52, %v3687_v27  ;;  %v3709_v21 = vstv %s2752_s29 }
 0x1f2   :  { %1039 = vrot.lane.b32.xlu1 %v1034_v38, %s2891_s13  ;;  %1051 = vrot.lane.b32.xlu0 %v3656_v8, %s2889_s2  ;;  %v491_v38 = vadd.f32 %v3498_v36, %v478_v59  ;;  %5427 = vst [vmem:[#allocation75_spill] sm:$0xff] %v3709_v21  ;;  %v507_v20 = vmul.f32 %v3701_v52, %v3699_v5 }
 0x1f3   :  { %v508_v27 = vmul.f32 %v3693_v48, %v3699_v5  ;;  %v602_v36 = vadd.f32 %v600_v54, %v597_v14  ;;  %v697_v57 = vmul.f32 %v3701_v52, %v3709_v21  ;;  %v698_v54 = vmul.f32 %v3693_v48, %v3709_v21 }
 0x1f4   :  { %v594_v2 = vpop.permute.xlu1 %593  ;;  %v610_v3 = vpop.permute.xlu0 %609  ;;  %v504_v46 = vadd.f32 %v3524_v44, %v491_v38  ;;  %v3721_v38 = vstv %s2758_s30 }
 0x1f5   :  { %v598_v35 = vadd.f32 %v594_v2, %v585_v25  ;;  %v505_v25 = vadd.f32 %v3553_v23, %v492_v24  ;;  %5428 = vst [vmem:[#allocation76_spill] sm:$0xff] %v3721_v38  ;;  %v632_v14 = vmul.f32 %v3723_v12, %v3721_v38 }
 0x1f6   :  { %1054 = vrot.lane.b32.xlu1 %v3665_v17, %s2889_s2  ;;  %v509_v24 = vadd.f32 %v507_v20, %v504_v46 }
 0x1f7   :  { %v603_v62 = vadd.f32 %v601_v1, %v598_v35  ;;  %v510_v30 = vadd.f32 %v508_v27, %v505_v25 }
 0x1f8   :  { %v612_v42 = vpop.permute.xlu1 %611  ;;  %v623_v26 = vpop.permute.xlu0 %622  ;;  %v522_v25 = vadd.f32 %v3555_v51, %v509_v24 }
 0x1f9   :  { %v616_v44 = vadd.f32 %v612_v42, %v603_v62  ;;  %v3729_v42 = vstv %s2755_s4  ;;  %v523_v20 = vadd.f32 %v3575_v33, %v510_v30 }
 0x1fa   :  { %5429 = vst [vmem:[#allocation77_spill] sm:$0xff] %v3729_v42 }
 0x1fc   :  { %v625_v50 = vpop.permute.xlu1 %624  ;;  %v3675_v37 = vpop.permute.xlu0 %640 }
 0x200   :  { %v3689_v31 = vpop.permute.xlu1 %642  ;;  %v3691_v49 = vpop.permute.xlu0 %653 }
 0x204   :  { %v656_v15 = vpop.permute.xlu1 %655  ;;  %v676_v2 = vpop.permute.xlu0 %675 }
 0x205   :  { %v681_v59 = vadd.f32 %v676_v2, %v668_v13  ;;  %v615_v13 = vadd.f32 %v610_v3, %v602_v36  ;;  %v629_v2 = vadd.f32 %v625_v50, %v616_v44 }
 0x207   :  { %v628_v62 = vadd.f32 %v623_v26, %v615_v13  ;;  %v634_v3 = vadd.f32 %v632_v14, %v629_v2 }
 0x208   :  { %v678_v35 = vpop.permute.xlu1 %677  ;;  %v689_v1 = vpop.permute.xlu0 %688 }
 0x209   :  { %v694_v23 = vadd.f32 %v689_v1, %v681_v59  ;;  %v682_v9 = vadd.f32 %v678_v35, %v669_v22  ;;  %v3731_v59 = vld [vmem:[#allocation2 + $0x20] sm:$0xff]  ;;  %v3737_v1 = vstv %s2761_s5  ;;  %v535_v22 = vadd.f32 %v3577_v55, %v522_v25 }
 0x20a   :  { %v631_v27 = vmul.f32 %v3731_v59, %v3721_v38  ;;  %5430 = vst [vmem:[#allocation78_spill] sm:$0xff] %v3737_v1  ;;  %v538_v26 = vmul.f32 %v3731_v59, %v3729_v42  ;;  %v539_v35 = vmul.f32 %v3723_v12, %v3729_v42  ;;  %v728_v33 = vmul.f32 %v3731_v59, %v3737_v1 }
 0x20b   :  { %v699_v5 = vadd.f32 %v697_v57, %v694_v23  ;;  %v536_v57 = vadd.f32 %v3601_v60, %v523_v20  ;;  %v729_v55 = vmul.f32 %v3723_v12, %v3737_v1 }
 0x20c   :  { %v691_v45 = vpop.permute.xlu1 %690  ;;  %v707_v11 = vpop.permute.xlu0 %706  ;;  %v633_v51 = vadd.f32 %v631_v27, %v628_v62  ;;  %v540_v60 = vadd.f32 %v538_v26, %v535_v22 }
 0x20d   :  { %v695_v46 = vadd.f32 %v691_v45, %v682_v9  ;;  %v712_v50 = vadd.f32 %v707_v11, %v699_v5  ;;  %v647_v11 = vadd.f32 %v3689_v31, %v634_v3  ;;  %v541_v5 = vadd.f32 %v539_v35, %v536_v57 }
 0x20e   :  { %v646_v14 = vadd.f32 %v3675_v37, %v633_v51  ;;  %v3756_v57 = vstv %s2791_s6 }
 0x20f   :  { %v700_v36 = vadd.f32 %v698_v54, %v695_v46  ;;  %v660_v54 = vadd.f32 %v656_v15, %v647_v11  ;;  %v553_v46 = vadd.f32 %v3603_v19, %v540_v60  ;;  %v554_v31 = vadd.f32 %v3621_v56, %v541_v5  ;;  %5431 = vst [vmem:[#allocation79_spill] sm:$0xff] %v3756_v57 }
 0x210   :  { %v709_v45 = vpop.permute.xlu1 %708  ;;  %v720_v9 = vpop.permute.xlu0 %719  ;;  %v659_v62 = vadd.f32 %v3691_v49, %v646_v14 }
 0x211   :  { %v725_v44 = vadd.f32 %v720_v9, %v712_v50  ;;  %v713_v30 = vadd.f32 %v709_v45, %v700_v36  ;;  %v662_v3 = vrot.slane %v660_v54, 1  ;;  %v566_v36 = vadd.f32 %v3623_v34, %v553_v46 }
 0x212   :  { %v567_v22 = vadd.f32 %v3643_v41, %v554_v31  ;;  %v661_v37 = vrot.slane %v659_v62, 1 }
 0x213   :  { %v730_v2 = vadd.f32 %v728_v33, %v725_v44  ;;  %v568_v9 = vadd.f32 %v566_v36, %v3756_v57 }
 0x214   :  { %v722_v23 = vpop.permute.xlu1 %721  ;;  %v738_v24 = vpop.permute.xlu0 %737  ;;  %v663_v19 = vsel %vm374_vm1, %v661_v37, %v662_v3  ;;  %v664_v56 = vsel %vm374_vm1, %v662_v3, %v661_v37  ;;  %v569_v34 = vadd.f32 %v567_v22, %v3756_v57  ;;  %v3812_v57 = vstv %s2773_s9 }
 0x215   :  { %v726_v13 = vadd.f32 %v722_v23, %v713_v30  ;;  %v743_v50 = vadd.f32 %v738_v24, %v730_v2  ;;  %v665_v44 = vadd.f32 %v663_v19, %v568_v9  ;;  %5435 = vst [vmem:[#allocation83_spill] sm:$0xff] %v3812_v57 }
 0x216   :  { %v666_v33 = vadd.f32 %v664_v56, %v569_v34 }
 0x217   :  { %v731_v27 = vadd.f32 %v729_v55, %v726_v13 }
 0x218   :  { %v740_v25 = vpop.permute.xlu1 %739  ;;  %v751_v20 = vpop.permute.xlu0 %750 }
 0x219   :  { %v744_v15 = vadd.f32 %v740_v25, %v731_v27  ;;  %v756_v26 = vadd.f32 %v751_v20, %v743_v50 }
 0x21b   :  { %v758_v51 = vrot.slane %v756_v26, 2 }
 0x21c   :  { %v753_v35 = vpop.permute.xlu1 %752  ;;  %v773_v49 = vpop.permute.xlu0 %772 }
 0x21d   :  { %v757_v45 = vadd.f32 %v753_v35, %v744_v15  ;;  %v3792_v15 = vstv %s2767_s0 }
 0x21e   :  { %5432 = vst [vmem:[#allocation80_spill] sm:$0xff] %v3792_v15  ;;  %v859_v26 = vmul.f32 %v3671_v6, %v3792_v15  ;;  %v858_v56 = vmul.f32 %v3679_v63, %v3792_v15 }
 0x21f   :  { %v759_v41 = vrot.slane %v757_v45, 2  ;;  %v3800_v45 = vstv %s2764_s7 }
 0x220   :  { %v775_v11 = vpop.permute.xlu1 %774  ;;  %v786_v30 = vpop.permute.xlu0 %785  ;;  %5433 = vst [vmem:[#allocation81_spill] sm:$0xff] %v3800_v45  ;;  %v765_v34 = vmul.f32 %v3679_v63, %v3800_v45 }
 0x221   :  { %v760_v55 = vsel %vm472_vm2, %v758_v51, %v759_v41  ;;  %v761_v60 = vsel %vm472_vm2, %v759_v41, %v758_v51  ;;  %v766_v51 = vmul.f32 %v3671_v6, %v3800_v45  ;;  %v3806_v41 = vstv %s2776_s8 }
 0x222   :  { %v3768_v5 = vadd.f32 %v760_v55, %v665_v44  ;;  %v3770_v23 = vadd.f32 %v761_v60, %v666_v33  ;;  %5434 = vst [vmem:[#allocation82_spill] sm:$0xff] %v3806_v41  ;;  %v888_v15 = vmul.f32 %v3693_v48, %v3806_v41  ;;  %v887_v1 = vmul.f32 %v3701_v52, %v3806_v41 }
 0x223   :  { %v778_v42 = vadd.f32 %v773_v49, %v765_v34  ;;  %v779_v38 = vadd.f32 %v775_v11, %v766_v51 }
 0x224   :  { %v788_v24 = vpop.permute.xlu1 %787  ;;  %v3772_v14 = vpop.permute.xlu0 %803  ;;  %1066 = vrot.lane.b32.xlu1 %v3770_v23, %s2889_s2  ;;  %1063 = vrot.lane.b32.xlu0 %v3768_v5, %s2889_s2 }
 0x225   :  { %v792_v16 = vadd.f32 %v788_v24, %v779_v38 }
 0x228   :  { %v3778_v54 = vpop.permute.xlu1 %805  ;;  %v3780_v13 = vpop.permute.xlu0 %816 }
 0x22c   :  { %v3782_v2 = vpop.permute.xlu1 %818  ;;  %v3784_v62 = vpop.permute.xlu0 %834 }
 0x230   :  { %v3786_v27 = vpop.permute.xlu1 %836  ;;  %v3788_v46 = vpop.permute.xlu0 %847 }
 0x234   :  { %v3790_v31 = vpop.permute.xlu1 %849  ;;  %v866_v25 = vpop.permute.xlu0 %865 }
 0x235   :  { %v871_v55 = vadd.f32 %v866_v25, %v858_v56 }
 0x238   :  { %v868_v20 = vpop.permute.xlu1 %867  ;;  %v879_v3 = vpop.permute.xlu0 %878 }
 0x239   :  { %v872_v9 = vadd.f32 %v868_v20, %v859_v26  ;;  %v3814_v20 = vstv %s2770_s10  ;;  %v884_v26 = vadd.f32 %v879_v3, %v871_v55  ;;  %v795_v3 = vmul.f32 %v3693_v48, %v3812_v57 }
 0x23a   :  { %5436 = vst [vmem:[#allocation84_spill] sm:$0xff] %v3814_v20  ;;  %v955_v45 = vmul.f32 %v3679_v63, %v3814_v20  ;;  %v3824_v55 = vstv %s2779_s12  ;;  %v956_v63 = vmul.f32 %v3671_v6, %v3814_v20  ;;  %v5491_v20 = vld [vmem:[#allocation59_spill] sm:$0xff] }
 0x23b   :  { %5437 = vst [vmem:[#allocation85_spill] sm:$0xff] %v3824_v55  ;;  %v889_v41 = vadd.f32 %v887_v1, %v884_v26  ;;  %v984_v49 = vmul.f32 %v3701_v52, %v3824_v55  ;;  %v985_v1 = vmul.f32 %v3693_v48, %v3824_v55 }
 0x23c   :  { %v881_v50 = vpop.permute.xlu1 %880  ;;  %v897_v36 = vpop.permute.xlu0 %896 }
 0x23d   :  { %v885_v60 = vadd.f32 %v881_v50, %v872_v9  ;;  %v794_v50 = vmul.f32 %v3701_v52, %v3812_v57  ;;  %v791_v9 = vadd.f32 %v786_v30, %v778_v42  ;;  %v797_v30 = vadd.f32 %v795_v3, %v792_v16 }
 0x23e   :  { %v3836_v57 = vstv %s2782_s15 }
 0x23f   :  { %v890_v56 = vadd.f32 %v888_v15, %v885_v60  ;;  %v3830_v15 = vstv %s2785_s14  ;;  %v796_v42 = vadd.f32 %v794_v50, %v791_v9  ;;  %5439 = vst [vmem:[#allocation87_spill] sm:$0xff] %v3836_v57  ;;  %v3842_v9 = vstv %s2788_s16 }
 0x240   :  { %v899_v22 = vpop.permute.xlu1 %898  ;;  %v910_v37 = vpop.permute.xlu0 %909  ;;  %5438 = vst [vmem:[#allocation86_spill] sm:$0xff] %v3830_v15  ;;  %v919_v24 = vmul.f32 %v3723_v12, %v3830_v15  ;;  %5440 = vst [vmem:[#allocation88_spill] sm:$0xff] %v3842_v9 }
 0x241   :  { %v903_v51 = vadd.f32 %v899_v22, %v890_v56  ;;  %v809_v16 = vadd.f32 %v3772_v14, %v796_v42  ;;  %v810_v56 = vadd.f32 %v3778_v54, %v797_v30  ;;  %v1015_v54 = vmul.f32 %v3731_v59, %v3842_v9 }
 0x243   :  { %v823_v3 = vadd.f32 %v3782_v2, %v810_v56  ;;  %v3860_v56 = vstv %s2792_s17 }
 0x244   :  { %v912_v35 = vpop.permute.xlu1 %911  ;;  %v3796_v19 = vpop.permute.xlu0 %927  ;;  %5441 = vst [vmem:[#allocation89_spill] sm:$0xff] %v3860_v56 }
 0x245   :  { %v916_v60 = vadd.f32 %v912_v35, %v903_v51 }
 0x247   :  { %v921_v48 = vadd.f32 %v919_v24, %v916_v60 }
 0x248   :  { %v930_v44 = vpop.permute.xlu1 %929  ;;  %v3808_v33 = vpop.permute.xlu0 %940 }
 0x249   :  { %v934_v51 = vadd.f32 %v930_v44, %v921_v48 }
 0x24c   :  { %v943_v21 = vpop.permute.xlu1 %942  ;;  %v963_v25 = vpop.permute.xlu0 %962 }
 0x24d   :  { %v968_v58 = vadd.f32 %v963_v25, %v955_v45  ;;  %v902_v45 = vadd.f32 %v897_v36, %v889_v41  ;;  %v822_v41 = vadd.f32 %v3780_v13, %v809_v16  ;;  %v1016_v13 = vmul.f32 %v3723_v12, %v3842_v9  ;;  %v5488_v9 = vld [vmem:[#allocation56_spill] sm:$0xff] }
 0x24f   :  { %v915_v22 = vadd.f32 %v910_v37, %v902_v45  ;;  %v825_v37 = vmul.f32 %v3731_v59, %v3836_v57  ;;  %v947_v45 = vadd.f32 %v943_v21, %v934_v51 }
 0x250   :  { %v965_v11 = vpop.permute.xlu1 %964  ;;  %v976_v34 = vpop.permute.xlu0 %975 }
 0x251   :  { %v981_v38 = vadd.f32 %v976_v34, %v968_v58  ;;  %v969_v6 = vadd.f32 %v965_v11, %v956_v63  ;;  %v918_v58 = vmul.f32 %v3731_v59, %v3830_v15  ;;  %v826_v63 = vmul.f32 %v3723_v12, %v3836_v57 }
 0x252   :  { %v827_v2 = vadd.f32 %v825_v37, %v822_v41 }
 0x253   :  { %v986_v26 = vadd.f32 %v984_v49, %v981_v38  ;;  %v920_v14 = vadd.f32 %v918_v58, %v915_v22  ;;  %v828_v42 = vadd.f32 %v826_v63, %v823_v3  ;;  %v949_v58 = vrot.slane %v947_v45, 1 }
 0x254   :  { %v978_v25 = vpop.permute.xlu1 %977  ;;  %v994_v52 = vpop.permute.xlu0 %993  ;;  %v840_v59 = vadd.f32 %v3784_v62, %v827_v2 }
 0x255   :  { %v982_v50 = vadd.f32 %v978_v25, %v969_v6  ;;  %v999_v36 = vadd.f32 %v994_v52, %v986_v26  ;;  %v841_v44 = vadd.f32 %v3786_v27, %v828_v42 }
 0x257   :  { %v987_v35 = vadd.f32 %v985_v1, %v982_v50  ;;  %v933_v1 = vadd.f32 %v3796_v19, %v920_v14  ;;  %v853_v50 = vadd.f32 %v3788_v46, %v840_v59  ;;  %v854_v16 = vadd.f32 %v3790_v31, %v841_v44 }
 0x258   :  { %v996_v49 = vpop.permute.xlu1 %995  ;;  %v1007_v11 = vpop.permute.xlu0 %1006 }
 0x259   :  { %v1012_v34 = vadd.f32 %v1007_v11, %v999_v36  ;;  %v1000_v38 = vadd.f32 %v996_v49, %v987_v35  ;;  %v946_v26 = vadd.f32 %v3808_v33, %v933_v1  ;;  %v855_v35 = vadd.f32 %v853_v50, %v3860_v56 }
 0x25a   :  { %v856_v41 = vadd.f32 %v854_v16, %v3860_v56 }
 0x25b   :  { %v1017_v6 = vadd.f32 %v1015_v54, %v1012_v34  ;;  %v948_v21 = vrot.slane %v946_v26, 1 }
 0x25c   :  { %v1009_v30 = vpop.permute.xlu1 %1008  ;;  %v1025_v24 = vpop.permute.xlu0 %1024 }
 0x25d   :  { %v1013_v60 = vadd.f32 %v1009_v30, %v1000_v38  ;;  %v1030_v12 = vadd.f32 %v1025_v24, %v1017_v6  ;;  %v950_v33 = vsel %vm374_vm1, %v948_v21, %v949_v58  ;;  %v951_v62 = vsel %vm374_vm1, %v949_v58, %v948_v21 }
 0x25e   :  { %v952_v31 = vadd.f32 %v950_v33, %v855_v35  ;;  %v953_v37 = vadd.f32 %v951_v62, %v856_v41  ;;  %v5444_v62 = vld [vmem:[#allocation17_spill] sm:$0xff] }
 0x25f   :  { %v1018_v25 = vadd.f32 %v1016_v13, %v1013_v60 }
 0x260   :  { %v1027_v52 = vpop.permute.xlu1 %1026  ;;  %v1038_v22 = vpop.permute.xlu0 %1037 }
 0x261   :  { %v1031_v19 = vadd.f32 %v1027_v52, %v1018_v25  ;;  %v1043_v48 = vadd.f32 %v1038_v22, %v1030_v12  ;;  %v5442_v22 = vld [vmem:[#allocation15_spill] sm:$0xff] }
 0x263   :  { %v1045_v46 = vrot.slane %v1043_v48, 2  ;;  %v5443_v48 = vld [vmem:[#allocation16_spill] sm:$0xff] }
 0x264   :  { %v1040_v36 = vpop.permute.xlu1 %1039  ;;  %v1052_v34 = vpop.permute.xlu0 %1051 }
 0x265   :  { %v1044_v27 = vadd.f32 %v1040_v36, %v1031_v19  ;;  %v1053_v51 = vsel %vm149_vm0, %v1052_v34, %v3656_v8  ;;  %v5446_v34 = vld [vmem:[#allocation19_spill] sm:$0xff] }
 0x267   :  { %v1046_v3 = vrot.slane %v1044_v27, 2 }
 0x268   :  { %v1055_v54 = vpop.permute.xlu1 %1054 }
 0x269   :  { %v1047_v63 = vsel %vm472_vm2, %v1045_v46, %v1046_v3  ;;  %v1048_v49 = vsel %vm472_vm2, %v1046_v3, %v1045_v46  ;;  %v1056_v38 = vsel %vm149_vm0, %v1055_v54, %v3665_v17 }
 0x26a   :  { %v3872_v11 = vadd.f32 %v1047_v63, %v952_v31  ;;  %v3874_v14 = vadd.f32 %v1048_v49, %v953_v37  ;;  %v5445_v37 = vld [vmem:[#allocation18_spill] sm:$0xff] }
 0x26c   :  { %1078 = vrot.lane.b32.xlu1 %v3874_v14, %s2889_s2  ;;  %1075 = vrot.lane.b32.xlu0 %v3872_v11, %s2889_s2 }
 0x270   :  { %1059 = vrot.lane.b32.xlu1 %v1056_v38, %s2889_s2  ;;  %1057 = vrot.lane.b32.xlu0 %v1053_v51, %s2889_s2  ;;  %v5447_v38 = vld [vmem:[#allocation20_spill] sm:$0xff] }
 0x296   :  { %v1067_v13 = vpop.permute.xlu1 %1066  ;;  %v1064_v2 = vpop.permute.xlu0 %1063 }
 0x297   :  { %v1068_v42 = vsel %vm149_vm0, %v1067_v13, %v3770_v23  ;;  %v1065_v30 = vsel %vm149_vm0, %v1064_v2, %v3768_v5 }
 0x298   :  { %1071 = vrot.lane.b32.xlu1 %v1068_v42, %s2889_s2  ;;  %1069 = vrot.lane.b32.xlu0 %v1065_v30, %s2889_s2  ;;  %v5448_v42 = vld [vmem:[#allocation21_spill] sm:$0xff] }
 0x2de   :  { %v1079_v24 = vpop.permute.xlu1 %1078  ;;  %v1076_v1 = vpop.permute.xlu0 %1075 }
 0x2df   :  { %v1080_v45 = vsel %vm149_vm0, %v1079_v24, %v3874_v14  ;;  %v1077_v60 = vsel %vm149_vm0, %v1076_v1, %v3872_v11  ;;  %v5449_v1 = vld [vmem:[#allocation22_spill] sm:$0xff] }
 0x2e0   :  { %1083 = vrot.lane.b32.xlu1 %v1080_v45, %s2889_s2  ;;  %1081 = vrot.lane.b32.xlu0 %v1077_v60, %s2889_s2 }
 0x2e2   :  { %v1060_v6 = vpop.permute.xlu1 %1059  ;;  %v1058_v26 = vpop.permute.xlu0 %1057 }
 0x2e3   :  { %v3900_v25 = vsel %vm149_vm0, %v1060_v6, %v3665_v17  ;;  %v3904_v59 = vsel %vm149_vm0, %v1058_v26, %v3656_v8  ;;  %v5450_v6 = vld [vmem:[#allocation23_spill] sm:$0xff] }
 0x2e4   :  { %v1090_v44 = vmul.f32 %v3900_v25, %v2976_v18  ;;  %v1089_v52 = vmul.f32 %v3904_v59, %v2976_v18  ;;  %v1102_v58 = vmul.f32 %v3900_v25, %v5442_v22  ;;  %v1101_v12 = vmul.f32 %v3904_v59, %v5442_v22  ;;  %v5487_v22 = vld [vmem:[#allocation55_spill] sm:$0xff] }
 0x2e5   :  { %v1174_v13 = vmul.f32 %v3900_v25, %v5447_v38  ;;  %v1173_v2 = vmul.f32 %v3904_v59, %v5447_v38  ;;  %v1186_v30 = vmul.f32 %v3900_v25, %v5448_v42  ;;  %v1185_v24 = vmul.f32 %v3904_v59, %v5448_v42 }
 0x2e6   :  { %1095 = vrot.lane.b32.xlu1 %v1090_v44, %s2890_s11  ;;  %1093 = vrot.lane.b32.xlu0 %v1089_v52, %s2890_s11  ;;  %v5451_v52 = vld [vmem:[#allocation24_spill] sm:$0xff] }
 0x2ea   :  { %1107 = vrot.lane.b32.xlu1 %v1102_v58, %s2891_s13  ;;  %1105 = vrot.lane.b32.xlu0 %v1101_v12, %s2891_s13 }
 0x30a   :  { %v1072_v50 = vpop.permute.xlu1 %1071  ;;  %v1070_v16 = vpop.permute.xlu0 %1069 }
 0x30b   :  { %v3920_v21 = vsel %vm149_vm0, %v1072_v50, %v3770_v23  ;;  %v3924_v19 = vsel %vm149_vm0, %v1070_v16, %v3768_v5  ;;  %v5452_v50 = vld [vmem:[#allocation25_spill] sm:$0xff] }
 0x30c   :  { %v1118_v36 = vmul.f32 %v3920_v21, %v5443_v48  ;;  %v1117_v33 = vmul.f32 %v3924_v19, %v5443_v48  ;;  %v1130_v27 = vmul.f32 %v3920_v21, %v5444_v62  ;;  %v1129_v35 = vmul.f32 %v3924_v19, %v5444_v62 }
 0x30d   :  { %v1202_v45 = vmul.f32 %v3920_v21, %v5449_v1  ;;  %v1201_v60 = vmul.f32 %v3924_v19, %v5449_v1  ;;  %v1214_v26 = vmul.f32 %v3920_v21, %v5450_v6  ;;  %v1213_v44 = vmul.f32 %v3924_v19, %v5450_v6 }
 0x30e   :  { %1123 = vrot.lane.b32.xlu1 %v1118_v36, %s2890_s11  ;;  %1121 = vrot.lane.b32.xlu0 %v1117_v33, %s2890_s11  ;;  %v5453_v33 = vld [vmem:[#allocation26_spill] sm:$0xff] }
 0x312   :  { %1135 = vrot.lane.b32.xlu1 %v1130_v27, %s2891_s13  ;;  %1133 = vrot.lane.b32.xlu0 %v1129_v35, %s2891_s13  ;;  %v1262_v27 = vmul.f32 %v3900_v25, %v5453_v33  ;;  %v1261_v35 = vmul.f32 %v3904_v59, %v5453_v33 }
 0x352   :  { %v1084_v41 = vpop.permute.xlu1 %1083  ;;  %v1082_v46 = vpop.permute.xlu0 %1081 }
 0x353   :  { %v3940_v3 = vsel %vm149_vm0, %v1084_v41, %v3874_v14  ;;  %v3944_v31 = vsel %vm149_vm0, %v1082_v46, %v3872_v11  ;;  %v5454_v41 = vld [vmem:[#allocation27_spill] sm:$0xff] }
 0x354   :  { %v1146_v63 = vmul.f32 %v3940_v3, %v5445_v37  ;;  %v1145_v49 = vmul.f32 %v3944_v31, %v5445_v37  ;;  %v1158_v54 = vmul.f32 %v3940_v3, %v5446_v34  ;;  %v1157_v51 = vmul.f32 %v3944_v31, %v5446_v34 }
 0x355   :  { %v1230_v58 = vmul.f32 %v3940_v3, %v5451_v52  ;;  %v1229_v12 = vmul.f32 %v3944_v31, %v5451_v52  ;;  %v1242_v16 = vmul.f32 %v3940_v3, %v5452_v50  ;;  %v1241_v36 = vmul.f32 %v3944_v31, %v5452_v50 }
 0x356   :  { %1151 = vrot.lane.b32.xlu1 %v1146_v63, %s2890_s11  ;;  %1149 = vrot.lane.b32.xlu0 %v1145_v49, %s2890_s11  ;;  %v1274_v46 = vmul.f32 %v3900_v25, %v5454_v41  ;;  %v1273_v63 = vmul.f32 %v3904_v59, %v5454_v41  ;;  %v5455_v49 = vld [vmem:[#allocation28_spill] sm:$0xff] }
 0x35a   :  { %1163 = vrot.lane.b32.xlu1 %v1158_v54, %s2891_s13  ;;  %1161 = vrot.lane.b32.xlu0 %v1157_v51, %s2891_s13  ;;  %v1290_v54 = vmul.f32 %v3920_v21, %v5455_v49  ;;  %v1289_v51 = vmul.f32 %v3924_v19, %v5455_v49 }
 0x35e   :  { %1179 = vrot.lane.b32.xlu1 %v1174_v13, %s2890_s11  ;;  %1177 = vrot.lane.b32.xlu0 %v1173_v2, %s2890_s11  ;;  %v5456_v13 = vld [vmem:[#allocation29_spill] sm:$0xff] }
 0x35f   :  { %v1302_v2 = vmul.f32 %v3920_v21, %v5456_v13 }
 0x362   :  { %1191 = vrot.lane.b32.xlu1 %v1186_v30, %s2891_s13  ;;  %1189 = vrot.lane.b32.xlu0 %v1185_v24, %s2891_s13  ;;  %v1301_v30 = vmul.f32 %v3924_v19, %v5456_v13  ;;  %v5457_v24 = vld [vmem:[#allocation30_spill] sm:$0xff] }
 0x366   :  { %1207 = vrot.lane.b32.xlu1 %v1202_v45, %s2890_s11  ;;  %1205 = vrot.lane.b32.xlu0 %v1201_v60, %s2890_s11  ;;  %v1318_v45 = vmul.f32 %v3940_v3, %v5457_v24  ;;  %v1317_v60 = vmul.f32 %v3944_v31, %v5457_v24 }
 0x36a   :  { %1219 = vrot.lane.b32.xlu1 %v1214_v26, %s2891_s13  ;;  %1217 = vrot.lane.b32.xlu0 %v1213_v44, %s2891_s13  ;;  %v5458_v26 = vld [vmem:[#allocation31_spill] sm:$0xff] }
 0x36b   :  { %v1330_v44 = vmul.f32 %v3940_v3, %v5458_v26 }
 0x36e   :  { %1235 = vrot.lane.b32.xlu1 %v1230_v58, %s2890_s11  ;;  %1233 = vrot.lane.b32.xlu0 %v1229_v12, %s2890_s11  ;;  %v1329_v58 = vmul.f32 %v3944_v31, %v5458_v26  ;;  %v5459_v12 = vld [vmem:[#allocation32_spill] sm:$0xff] }
 0x372   :  { %1247 = vrot.lane.b32.xlu1 %v1242_v16, %s2891_s13  ;;  %1245 = vrot.lane.b32.xlu0 %v1241_v36, %s2891_s13  ;;  %v1350_v16 = vmul.f32 %v3900_v25, %v5459_v12  ;;  %v1349_v36 = vmul.f32 %v3904_v59, %v5459_v12 }
 0x376   :  { %1267 = vrot.lane.b32.xlu1 %v1262_v27, %s2890_s11  ;;  %1265 = vrot.lane.b32.xlu0 %v1261_v35, %s2890_s11  ;;  %v5460_v27 = vld [vmem:[#allocation33_spill] sm:$0xff] }
 0x377   :  { %v1362_v35 = vmul.f32 %v3900_v25, %v5460_v27 }
 0x37a   :  { %1279 = vrot.lane.b32.xlu1 %v1274_v46, %s2891_s13  ;;  %1277 = vrot.lane.b32.xlu0 %v1273_v63, %s2891_s13  ;;  %v1361_v46 = vmul.f32 %v3904_v59, %v5460_v27  ;;  %v5461_v63 = vld [vmem:[#allocation34_spill] sm:$0xff] }
 0x37b   :  { %v5473_v27 = vld [vmem:[#allocation46_spill] sm:$0xff] }
 0x37c   :  { %v1550_v12 = vmul.f32 %v3920_v21, %v5473_v27 }
 0x37e   :  { %1295 = vrot.lane.b32.xlu1 %v1290_v54, %s2890_s11  ;;  %1293 = vrot.lane.b32.xlu0 %v1289_v51, %s2890_s11  ;;  %v1378_v54 = vmul.f32 %v3920_v21, %v5461_v63  ;;  %v1377_v51 = vmul.f32 %v3924_v19, %v5461_v63 }
 0x382   :  { %1307 = vrot.lane.b32.xlu1 %v1302_v2, %s2891_s13  ;;  %1305 = vrot.lane.b32.xlu0 %v1301_v30, %s2891_s13  ;;  %v5462_v2 = vld [vmem:[#allocation35_spill] sm:$0xff] }
 0x383   :  { %v1390_v30 = vmul.f32 %v3920_v21, %v5462_v2 }
 0x386   :  { %1323 = vrot.lane.b32.xlu1 %v1318_v45, %s2890_s11  ;;  %1321 = vrot.lane.b32.xlu0 %v1317_v60, %s2890_s11  ;;  %v1389_v45 = vmul.f32 %v3924_v19, %v5462_v2  ;;  %v5463_v60 = vld [vmem:[#allocation36_spill] sm:$0xff] }
 0x38a   :  { %1335 = vrot.lane.b32.xlu1 %v1330_v44, %s2891_s13  ;;  %1333 = vrot.lane.b32.xlu0 %v1329_v58, %s2891_s13  ;;  %v1406_v44 = vmul.f32 %v3940_v3, %v5463_v60  ;;  %v1405_v58 = vmul.f32 %v3944_v31, %v5463_v60  ;;  %v5471_v60 = vld [vmem:[#allocation44_spill] sm:$0xff] }
 0x38e   :  { %1355 = vrot.lane.b32.xlu1 %v1350_v16, %s2890_s11  ;;  %1353 = vrot.lane.b32.xlu0 %v1349_v36, %s2890_s11  ;;  %v5464_v16 = vld [vmem:[#allocation37_spill] sm:$0xff] }
 0x38f   :  { %v1418_v36 = vmul.f32 %v3940_v3, %v5464_v16 }
 0x392   :  { %1367 = vrot.lane.b32.xlu1 %v1362_v35, %s2891_s13  ;;  %1365 = vrot.lane.b32.xlu0 %v1361_v46, %s2891_s13  ;;  %v1417_v35 = vmul.f32 %v3944_v31, %v5464_v16  ;;  %v5465_v46 = vld [vmem:[#allocation38_spill] sm:$0xff] }
 0x396   :  { %1383 = vrot.lane.b32.xlu1 %v1378_v54, %s2890_s11  ;;  %1381 = vrot.lane.b32.xlu0 %v1377_v51, %s2890_s11  ;;  %v1434_v54 = vmul.f32 %v3900_v25, %v5465_v46  ;;  %v1433_v51 = vmul.f32 %v3904_v59, %v5465_v46  ;;  %v5469_v46 = vld [vmem:[#allocation42_spill] sm:$0xff] }
 0x39a   :  { %1395 = vrot.lane.b32.xlu1 %v1390_v30, %s2891_s13  ;;  %1393 = vrot.lane.b32.xlu0 %v1389_v45, %s2891_s13  ;;  %v5466_v30 = vld [vmem:[#allocation39_spill] sm:$0xff] }
 0x39b   :  { %v1446_v45 = vmul.f32 %v3900_v25, %v5466_v30 }
 0x39e   :  { %1411 = vrot.lane.b32.xlu1 %v1406_v44, %s2890_s11  ;;  %1409 = vrot.lane.b32.xlu0 %v1405_v58, %s2890_s11  ;;  %v1445_v44 = vmul.f32 %v3904_v59, %v5466_v30  ;;  %v5467_v58 = vld [vmem:[#allocation40_spill] sm:$0xff] }
 0x3a2   :  { %1423 = vrot.lane.b32.xlu1 %v1418_v36, %s2891_s13  ;;  %1421 = vrot.lane.b32.xlu0 %v1417_v35, %s2891_s13  ;;  %v1462_v36 = vmul.f32 %v3920_v21, %v5467_v58  ;;  %v1461_v35 = vmul.f32 %v3924_v19, %v5467_v58  ;;  %v1490_v58 = vmul.f32 %v3940_v3, %v5469_v46 }
 0x3a6   :  { %1439 = vrot.lane.b32.xlu1 %v1434_v54, %s2890_s11  ;;  %1437 = vrot.lane.b32.xlu0 %v1433_v51, %s2890_s11  ;;  %v5468_v54 = vld [vmem:[#allocation41_spill] sm:$0xff] }
 0x3a7   :  { %v1474_v51 = vmul.f32 %v3920_v21, %v5468_v54  ;;  %v1473_v30 = vmul.f32 %v3924_v19, %v5468_v54 }
 0x3aa   :  { %1451 = vrot.lane.b32.xlu1 %v1446_v45, %s2891_s13  ;;  %1449 = vrot.lane.b32.xlu0 %v1445_v44, %s2891_s13  ;;  %v4090_v45 = vpop.permute.xlu1 %1095  ;;  %v4092_v44 = vpop.permute.xlu0 %1093 }
 0x3ae   :  { %1467 = vrot.lane.b32.xlu1 %v1462_v36, %s2890_s11  ;;  %1465 = vrot.lane.b32.xlu0 %v1461_v35, %s2890_s11  ;;  %v1489_v36 = vmul.f32 %v3944_v31, %v5469_v46  ;;  %v5470_v35 = vld [vmem:[#allocation43_spill] sm:$0xff]  ;;  %v4106_v16 = vpop.permute.xlu0 %1105  ;;  %v1522_v46 = vmul.f32 %v3900_v25, %v5471_v60 }
 0x3af   :  { %v1502_v54 = vmul.f32 %v3940_v3, %v5470_v35 }
 0x3b2   :  { %1479 = vrot.lane.b32.xlu1 %v1474_v51, %s2891_s13  ;;  %1477 = vrot.lane.b32.xlu0 %v1473_v30, %s2891_s13  ;;  %v1501_v30 = vmul.f32 %v3944_v31, %v5470_v35  ;;  %v4104_v51 = vpop.permute.xlu1 %1107  ;;  %v4116_v2 = vpop.permute.xlu0 %1121  ;;  %v5472_v35 = vld [vmem:[#allocation45_spill] sm:$0xff] }
 0x3b3   :  { %v1534_v63 = vmul.f32 %v3900_v25, %v5472_v35 }
 0x3b6   :  { %1495 = vrot.lane.b32.xlu1 %v1490_v58, %s2890_s11  ;;  %1493 = vrot.lane.b32.xlu0 %v1489_v36, %s2890_s11  ;;  %v1521_v58 = vmul.f32 %v3904_v59, %v5471_v60  ;;  %v4114_v36 = vpop.permute.xlu1 %1123  ;;  %v4128_v60 = vpop.permute.xlu0 %1133 }
 0x3ba   :  { %1507 = vrot.lane.b32.xlu1 %v1502_v54, %s2891_s13  ;;  %1505 = vrot.lane.b32.xlu0 %v1501_v30, %s2891_s13  ;;  %v1533_v54 = vmul.f32 %v3904_v59, %v5472_v35  ;;  %v4126_v30 = vpop.permute.xlu1 %1135 }
 0x3be   :  { %1527 = vrot.lane.b32.xlu1 %v1522_v46, %s2890_s11  ;;  %1525 = vrot.lane.b32.xlu0 %v1521_v58, %s2890_s11  ;;  %v1549_v46 = vmul.f32 %v3924_v19, %v5473_v27 }
 0x3c2   :  { %1539 = vrot.lane.b32.xlu1 %v1534_v63, %s2891_s13  ;;  %1537 = vrot.lane.b32.xlu0 %v1533_v54, %s2891_s13  ;;  %v5476_v63 = vld [vmem:[#allocation47_spill] sm:$0xff] }
 0x3c3   :  { %v1562_v54 = vmul.f32 %v3920_v21, %v5476_v63  ;;  %v1561_v26 = vmul.f32 %v3924_v19, %v5476_v63 }
 0x3c6   :  { %1555 = vrot.lane.b32.xlu1 %v1550_v12, %s2890_s11  ;;  %1553 = vrot.lane.b32.xlu0 %v1549_v46, %s2890_s11  ;;  %v5479_v12 = vld [vmem:[#allocation48_spill] sm:$0xff] }
 0x3c7   :  { %v1578_v46 = vmul.f32 %v3940_v3, %v5479_v12  ;;  %v1577_v13 = vmul.f32 %v3944_v31, %v5479_v12 }
 0x3c8   :  { %v4136_v58 = vpop.permute.xlu1 %1151  ;;  %v4138_v35 = vpop.permute.xlu0 %1149 }
 0x3c9   :  { %5474 = vst [vmem:[#allocation90_spill] sm:$0xff] %v4136_v58  ;;  %5475 = vst [vmem:[#allocation91_spill] sm:$0xff] %v4138_v35 }
 0x3ca   :  { %1567 = vrot.lane.b32.xlu1 %v1562_v54, %s2891_s13  ;;  %1565 = vrot.lane.b32.xlu0 %v1561_v26, %s2891_s13  ;;  %v5480_v54 = vld [vmem:[#allocation49_spill] sm:$0xff] }
 0x3cb   :  { %v1590_v26 = vmul.f32 %v3940_v3, %v5480_v54  ;;  %v1589_v41 = vmul.f32 %v3944_v31, %v5480_v54 }
 0x3cc   :  { %v4146_v24 = vpop.permute.xlu1 %1163  ;;  %v4148_v27 = vpop.permute.xlu0 %1161 }
 0x3cd   :  { %5477 = vst [vmem:[#allocation92_spill] sm:$0xff] %v4146_v24  ;;  %5478 = vst [vmem:[#allocation93_spill] sm:$0xff] %v4148_v27  ;;  %v1734_v27 = vmul.f32 %v3920_v21, %v3419_v10  ;;  %v5494_v24 = vld [vmem:[#allocation61_spill] sm:$0xff] }
 0x3ce   :  { %1583 = vrot.lane.b32.xlu1 %v1578_v46, %s2890_s11  ;;  %1581 = vrot.lane.b32.xlu0 %v1577_v13, %s2890_s11  ;;  %v5481_v46 = vld [vmem:[#allocation50_spill] sm:$0xff]  ;;  %v1260_v35 = vmul.f32 %v3665_v17, %v5494_v24 }
 0x3cf   :  { %v1610_v13 = vmul.f32 %v3900_v25, %v5481_v46  ;;  %v1609_v50 = vmul.f32 %v3904_v59, %v5481_v46 }
 0x3d0   :  { %v4156_v49 = vpop.permute.xlu1 %1179  ;;  %v4158_v63 = vpop.permute.xlu0 %1177 }
 0x3d2   :  { %1595 = vrot.lane.b32.xlu1 %v1590_v26, %s2891_s13  ;;  %1593 = vrot.lane.b32.xlu0 %v1589_v41, %s2891_s13  ;;  %v5482_v26 = vld [vmem:[#allocation51_spill] sm:$0xff] }
 0x3d3   :  { %v1622_v41 = vmul.f32 %v3900_v25, %v5482_v26  ;;  %v1621_v6 = vmul.f32 %v3904_v59, %v5482_v26 }
 0x3d4   :  { %v4166_v33 = vpop.permute.xlu1 %1191  ;;  %v4168_v12 = vpop.permute.xlu0 %1189 }
 0x3d6   :  { %1615 = vrot.lane.b32.xlu1 %v1610_v13, %s2890_s11  ;;  %1613 = vrot.lane.b32.xlu0 %v1609_v50, %s2890_s11  ;;  %v5483_v13 = vld [vmem:[#allocation52_spill] sm:$0xff] }
 0x3d7   :  { %v1638_v50 = vmul.f32 %v3920_v21, %v5483_v13  ;;  %v1637_v42 = vmul.f32 %v3924_v19, %v5483_v13 }
 0x3d8   :  { %v4176_v52 = vpop.permute.xlu1 %1207  ;;  %v4178_v54 = vpop.permute.xlu0 %1205 }
 0x3da   :  { %1627 = vrot.lane.b32.xlu1 %v1622_v41, %s2891_s13  ;;  %1625 = vrot.lane.b32.xlu0 %v1621_v6, %s2891_s13  ;;  %v5484_v41 = vld [vmem:[#allocation53_spill] sm:$0xff] }
 0x3db   :  { %v1650_v6 = vmul.f32 %v3920_v21, %v5484_v41  ;;  %v1649_v34 = vmul.f32 %v3924_v19, %v5484_v41 }
 0x3dc   :  { %v4186_v1 = vpop.permute.xlu1 %1219  ;;  %v4188_v46 = vpop.permute.xlu0 %1217 }
 0x3de   :  { %1643 = vrot.lane.b32.xlu1 %v1638_v50, %s2890_s11  ;;  %1641 = vrot.lane.b32.xlu0 %v1637_v42, %s2890_s11  ;;  %v5486_v50 = vld [vmem:[#allocation54_spill] sm:$0xff] }
 0x3df   :  { %v1666_v42 = vmul.f32 %v3940_v3, %v5486_v50  ;;  %v1665_v62 = vmul.f32 %v3944_v31, %v5486_v50  ;;  %v1694_v50 = vmul.f32 %v3900_v25, %v5488_v9 }
 0x3e0   :  { %v4196_v38 = vpop.permute.xlu1 %1235  ;;  %v4198_v26 = vpop.permute.xlu0 %1233 }
 0x3e2   :  { %1655 = vrot.lane.b32.xlu1 %v1650_v6, %s2891_s13  ;;  %1653 = vrot.lane.b32.xlu0 %v1649_v34, %s2891_s13  ;;  %v1678_v6 = vmul.f32 %v3940_v3, %v5487_v22  ;;  %v1677_v34 = vmul.f32 %v3944_v31, %v5487_v22  ;;  %v5489_v22 = vld [vmem:[#allocation57_spill] sm:$0xff] }
 0x3e4   :  { %v4206_v37 = vpop.permute.xlu1 %1247  ;;  %v4208_v13 = vpop.permute.xlu0 %1245 }
 0x3e5   :  { %5485 = vst [vmem:[#allocation94_spill] sm:$0xff] %v4208_v13 }
 0x3e6   :  { %1671 = vrot.lane.b32.xlu1 %v1666_v42, %s2890_s11  ;;  %1669 = vrot.lane.b32.xlu0 %v1665_v62, %s2890_s11  ;;  %v1693_v62 = vmul.f32 %v3904_v59, %v5488_v9 }
 0x3e8   :  { %v1268_v48 = vpop.permute.xlu1 %1267  ;;  %v1266_v41 = vpop.permute.xlu0 %1265 }
 0x3ea   :  { %1683 = vrot.lane.b32.xlu1 %v1678_v6, %s2891_s13  ;;  %1681 = vrot.lane.b32.xlu0 %v1677_v34, %s2891_s13  ;;  %v1706_v6 = vmul.f32 %v3900_v25, %v5489_v22  ;;  %v1705_v34 = vmul.f32 %v3904_v59, %v5489_v22  ;;  %v1172_v22 = vmul.f32 %v3665_v17, %v5491_v20 }
 0x3ec   :  { %v1280_v18 = vpop.permute.xlu1 %1279  ;;  %v1278_v56 = vpop.permute.xlu0 %1277 }
 0x3ee   :  { %1699 = vrot.lane.b32.xlu1 %v1694_v50, %s2890_s11  ;;  %1697 = vrot.lane.b32.xlu0 %v1693_v62, %s2890_s11  ;;  %v5490_v50 = vld [vmem:[#allocation58_spill] sm:$0xff] }
 0x3ef   :  { %v1722_v62 = vmul.f32 %v3920_v21, %v5490_v50  ;;  %v1721_v15 = vmul.f32 %v3924_v19, %v5490_v50  ;;  %v1733_v50 = vmul.f32 %v3924_v19, %v3419_v10 }
 0x3f0   :  { %v4228_v42 = vpop.permute.xlu1 %1295  ;;  %v4230_v57 = vpop.permute.xlu0 %1293 }
 0x3f2   :  { %1711 = vrot.lane.b32.xlu1 %v1706_v6, %s2891_s13  ;;  %1709 = vrot.lane.b32.xlu0 %v1705_v34, %s2891_s13  ;;  %v1171_v6 = vmul.f32 %v3656_v8, %v5491_v20  ;;  %v1259_v20 = vmul.f32 %v3656_v8, %v5494_v24 }
 0x3f4   :  { %v4238_v55 = vpop.permute.xlu1 %1307  ;;  %v4240_v9 = vpop.permute.xlu0 %1305  ;;  %v1271_v10 = vadd.f32 %v1266_v41, %v1259_v20  ;;  %v1285_v41 = vmul.f32 %v3768_v5, %v3467_v53 }
 0x3f6   :  { %1727 = vrot.lane.b32.xlu1 %v1722_v62, %s2890_s11  ;;  %1725 = vrot.lane.b32.xlu0 %v1721_v15, %s2890_s11  ;;  %v1184_v62 = vadd.f32 %v4156_v49, %v1172_v22  ;;  %v1183_v15 = vadd.f32 %v4158_v63, %v1171_v6  ;;  %v1750_v49 = vmul.f32 %v3940_v3, %v3444_v47  ;;  %v5495_v6 = vld [vmem:[#allocation62_spill] sm:$0xff] }
 0x3f7   :  { %v1749_v63 = vmul.f32 %v3944_v31, %v3444_v47 }
 0x3f8   :  { %v4252_v34 = vpop.permute.xlu1 %1323  ;;  %v4254_v29 = vpop.permute.xlu0 %1321  ;;  %v1196_v58 = vadd.f32 %v4166_v33, %v1184_v62  ;;  %v1197_v33 = vmul.f32 %v3768_v5, %v5495_v6  ;;  %v1088_v62 = vmul.f32 %v3665_v17, %v3425_v7 }
 0x3f9   :  { %5492 = vst [vmem:[#allocation95_spill] sm:$0xff] %v4252_v34  ;;  %5493 = vst [vmem:[#allocation96_spill] sm:$0xff] %v4254_v29  ;;  %v1195_v29 = vadd.f32 %v4168_v12, %v1183_v15  ;;  %v1272_v34 = vadd.f32 %v1268_v48, %v1260_v35  ;;  %v1283_v12 = vadd.f32 %v1278_v56, %v1271_v10 }
 0x3fa   :  { %1739 = vrot.lane.b32.xlu1 %v1734_v27, %s2891_s13  ;;  %1737 = vrot.lane.b32.xlu0 %v1733_v50, %s2891_s13  ;;  %v1198_v27 = vmul.f32 %v3770_v23, %v5495_v6  ;;  %v1286_v35 = vmul.f32 %v3770_v23, %v3467_v53  ;;  %v1087_v15 = vmul.f32 %v3656_v8, %v3425_v7 }
 0x3fb   :  { %v1284_v50 = vadd.f32 %v1280_v18, %v1272_v34  ;;  %v1199_v48 = vadd.f32 %v1197_v33, %v1195_v29  ;;  %v1782_v56 = vmul.f32 %v3900_v25, %v3505_v0  ;;  %v1781_v29 = vmul.f32 %v3904_v59, %v3505_v0 }
 0x3fc   :  { %v4270_v13 = vpop.permute.xlu1 %1335  ;;  %v4272_v22 = vpop.permute.xlu0 %1333  ;;  %v1200_v20 = vadd.f32 %v1198_v27, %v1196_v58  ;;  %v1287_v34 = vadd.f32 %v1285_v41, %v1283_v12  ;;  %v1810_v41 = vmul.f32 %v3920_v21, %v3565_v28 }
 0x3fd   :  { %v1288_v58 = vadd.f32 %v1286_v35, %v1284_v50  ;;  %v1211_v33 = vadd.f32 %v4178_v54, %v1199_v48 }
 0x3fe   :  { %1755 = vrot.lane.b32.xlu1 %v1750_v49, %s2890_s11  ;;  %1753 = vrot.lane.b32.xlu0 %v1749_v63, %s2890_s11  ;;  %v1100_v49 = vadd.f32 %v4090_v45, %v1088_v62  ;;  %v1099_v63 = vadd.f32 %v4092_v44, %v1087_v15  ;;  %v1212_v27 = vadd.f32 %v4176_v52, %v1200_v20 }
 0x3ff   :  { %v1794_v45 = vmul.f32 %v3900_v25, %v3513_v4  ;;  %v1793_v44 = vmul.f32 %v3904_v59, %v3513_v4  ;;  %v1223_v52 = vadd.f32 %v4188_v46, %v1211_v33  ;;  %v1300_v54 = vadd.f32 %v4228_v42, %v1288_v58 }
 0x400   :  { %v4292_v18 = vpop.permute.xlu1 %1355  ;;  %v4294_v10 = vpop.permute.xlu0 %1353  ;;  %v1112_v47 = vadd.f32 %v4104_v51, %v1100_v49  ;;  %v1111_v53 = vadd.f32 %v4106_v16, %v1099_v63  ;;  %v1224_v12 = vadd.f32 %v4186_v1, %v1212_v27  ;;  %v1299_v51 = vadd.f32 %v4230_v57, %v1287_v34 }
 0x401   :  { %v1114_v16 = vmul.f32 %v3770_v23, %v3450_v39  ;;  %v1113_v20 = vmul.f32 %v3768_v5, %v3450_v39  ;;  %v1226_v25 = vmul.f32 %v3874_v14, %v3519_v32  ;;  %v1225_v59 = vmul.f32 %v3872_v11, %v3519_v32 }
 0x402   :  { %1787 = vrot.lane.b32.xlu1 %v1782_v56, %s2890_s11  ;;  %1785 = vrot.lane.b32.xlu0 %v1781_v29, %s2890_s11  ;;  %v1312_v1 = vadd.f32 %v4238_v55, %v1300_v54  ;;  %v1311_v57 = vadd.f32 %v4240_v9, %v1299_v51  ;;  %v1809_v62 = vmul.f32 %v3924_v19, %v3565_v28  ;;  %v5498_v54 = vld [vmem:[#allocation96_spill] sm:$0xff] }
 0x403   :  { %v1116_v46 = vadd.f32 %v1114_v16, %v1112_v47  ;;  %v1115_v42 = vadd.f32 %v1113_v20, %v1111_v53  ;;  %v1228_v15 = vadd.f32 %v1226_v25, %v1224_v12  ;;  %v1227_v56 = vadd.f32 %v1225_v59, %v1223_v52  ;;  %v5497_v52 = vld [vmem:[#allocation95_spill] sm:$0xff]  ;;  %v5499_v25 = vld [vmem:[#allocation64_spill] sm:$0xff] }
 0x404   :  { %v4308_v24 = vpop.permute.xlu1 %1367  ;;  %v4310_v50 = vpop.permute.xlu0 %1365  ;;  %v1314_v29 = vmul.f32 %v3874_v14, %v3543_v43  ;;  %v1313_v55 = vmul.f32 %v3872_v11, %v3543_v43  ;;  %v1822_v33 = vmul.f32 %v3920_v21, %v3587_v61  ;;  %v5496_v21 = vld [vmem:[#allocation94_spill] sm:$0xff]  ;;  %v1762_v59 = vmul.f32 %v3940_v3, %v5499_v25 }
 0x405   :  { %v1128_v47 = vadd.f32 %v4114_v36, %v1116_v46  ;;  %v1127_v53 = vadd.f32 %v4116_v2, %v1115_v42  ;;  %v1821_v2 = vmul.f32 %v3924_v19, %v3587_v61  ;;  %v1240_v36 = vadd.f32 %v4196_v38, %v1228_v15  ;;  %v5500_v46 = vld [vmem:[#allocation90_spill] sm:$0xff] }
 0x406   :  { %1799 = vrot.lane.b32.xlu1 %v1794_v45, %s2891_s13  ;;  %1797 = vrot.lane.b32.xlu0 %v1793_v44, %s2891_s13  ;;  %v1316_v9 = vadd.f32 %v1314_v29, %v1312_v1  ;;  %v1315_v58 = vadd.f32 %v1313_v55, %v1311_v57  ;;  %v1239_v45 = vadd.f32 %v4198_v26, %v1227_v56  ;;  %v5502_v29 = vld [vmem:[#allocation92_spill] sm:$0xff] }
 0x407   :  { %v1140_v34 = vadd.f32 %v4126_v30, %v1128_v47  ;;  %v1139_v49 = vadd.f32 %v4128_v60, %v1127_v53  ;;  %v1142_v44 = vmul.f32 %v3874_v14, %v3538_v40  ;;  %v1141_v60 = vmul.f32 %v3872_v11, %v3538_v40  ;;  %v5503_v47 = vld [vmem:[#allocation93_spill] sm:$0xff] }
 0x408   :  { %v4332_v48 = vpop.permute.xlu1 %1383  ;;  %v4334_v35 = vpop.permute.xlu0 %1381  ;;  %v1252_v30 = vadd.f32 %v4206_v37, %v1240_v36  ;;  %v1251_v12 = vadd.f32 %v5496_v21, %v1239_v45  ;;  %v1328_v19 = vadd.f32 %v5497_v52, %v1316_v9  ;;  %v1327_v38 = vadd.f32 %v5498_v54, %v1315_v58  ;;  %v5507_v52 = vld [vmem:[#allocation69_spill] sm:$0xff] }
 0x409   :  { %v1144_v51 = vadd.f32 %v1142_v44, %v1140_v34  ;;  %v1143_v26 = vadd.f32 %v1141_v60, %v1139_v49  ;;  %v1761_v1 = vmul.f32 %v3944_v31, %v5499_v25  ;;  %v5506_v44 = vld [vmem:[#allocation68_spill] sm:$0xff]  ;;  %v1849_v54 = vmul.f32 %v3944_v31, %v5507_v52  ;;  %v5524_v25 = vld [vmem:[#allocation85_spill] sm:$0xff] }
 0x40a   :  { %1815 = vrot.lane.b32.xlu1 %v1810_v41, %s2890_s11  ;;  %1813 = vrot.lane.b32.xlu0 %v1809_v62, %s2890_s11  ;;  %v1340_v37 = vadd.f32 %v4270_v13, %v1328_v19  ;;  %v1339_v57 = vadd.f32 %v4272_v22, %v1327_v38  ;;  %v5501_v41 = vld [vmem:[#allocation91_spill] sm:$0xff]  ;;  %v1254_v15 = vrot.slane %v1252_v30, 1  ;;  %v1253_v56 = vrot.slane %v1251_v12, 1 }
 0x40b   :  { %v1156_v42 = vadd.f32 %v5500_v46, %v1144_v51  ;;  %v1155_v62 = vadd.f32 %v5501_v41, %v1143_v26  ;;  %v5504_v13 = vld [vmem:[#allocation67_spill] sm:$0xff]  ;;  %v1850_v19 = vmul.f32 %v3940_v3, %v5507_v52 }
 0x40c   :  { %v4350_v63 = vpop.permute.xlu1 %1395  ;;  %v4352_v27 = vpop.permute.xlu0 %1393  ;;  %v1838_v22 = vmul.f32 %v3940_v3, %v5504_v13  ;;  %v1837_v34 = vmul.f32 %v3944_v31, %v5504_v13  ;;  %v1342_v49 = vrot.slane %v1340_v37, 2  ;;  %v1255_v36 = vsel %vm374_vm1, %v1253_v56, %v1254_v15  ;;  %v5522_v52 = vld [vmem:[#allocation83_spill] sm:$0xff] }
 0x40d   :  { %v1168_v55 = vadd.f32 %v5502_v29, %v1156_v42  ;;  %v1167_v53 = vadd.f32 %v5503_v47, %v1155_v62  ;;  %v1256_v45 = vsel %vm374_vm1, %v1254_v15, %v1253_v56  ;;  %v5508_v62 = vld [vmem:[#allocation70_spill] sm:$0xff] }
 0x40e   :  { %1827 = vrot.lane.b32.xlu1 %v1822_v33, %s2891_s13  ;;  %1825 = vrot.lane.b32.xlu0 %v1821_v2, %s2891_s13  ;;  %v1341_v33 = vrot.slane %v1339_v57, 2  ;;  %v1432_v15 = vmul.f32 %v5508_v62, %v3665_v17  ;;  %v1431_v56 = vmul.f32 %v5508_v62, %v3656_v8 }
 0x40f   :  { %v1170_v60 = vadd.f32 %v1168_v55, %v5506_v44  ;;  %v1169_v30 = vadd.f32 %v1167_v53, %v5506_v44 }
 0x410   :  { %v4370_v16 = vpop.permute.xlu1 %1411  ;;  %v4372_v20 = vpop.permute.xlu0 %1409  ;;  %v1343_v38 = vsel %vm472_vm2, %v1341_v33, %v1342_v49  ;;  %v1344_v51 = vsel %vm472_vm2, %v1342_v49, %v1341_v33  ;;  %v5509_v49 = vld [vmem:[#allocation71_spill] sm:$0xff] }
 0x411   :  { %v1257_v26 = vadd.f32 %v1255_v36, %v1169_v30  ;;  %v1348_v33 = vmul.f32 %v5509_v49, %v3665_v17  ;;  %v1347_v36 = vmul.f32 %v5509_v49, %v3656_v8 }
 0x412   :  { %1767 = vrot.lane.b32.xlu1 %v1762_v59, %s2891_s13  ;;  %1765 = vrot.lane.b32.xlu0 %v1761_v1, %s2891_s13  ;;  %v1258_v59 = vadd.f32 %v1256_v45, %v1170_v60  ;;  %v5510_v45 = vld [vmem:[#allocation72_spill] sm:$0xff] }
 0x413   :  { %v4412_v1 = vadd.f32 %v1343_v38, %v1257_v26  ;;  %v1458_v60 = vmul.f32 %v3770_v23, %v5510_v45  ;;  %v1457_v30 = vmul.f32 %v3768_v5, %v5510_v45  ;;  %v5513_v45 = vld [vmem:[#allocation75_spill] sm:$0xff] }
 0x414   :  { %v4386_v9 = vpop.permute.xlu1 %1423  ;;  %v4388_v58 = vpop.permute.xlu0 %1421  ;;  %v4414_v37 = vadd.f32 %v1344_v51, %v1258_v59  ;;  %v1546_v62 = vmul.f32 %v3770_v23, %v5513_v45 }
 0x416   :  { %1843 = vrot.lane.b32.xlu1 %v1838_v22, %s2890_s11  ;;  %1841 = vrot.lane.b32.xlu0 %v1837_v34, %s2890_s11 }
 0x418   :  { %v1440_v21 = vpop.permute.xlu1 %1439  ;;  %v1438_v12 = vpop.permute.xlu0 %1437 }
 0x419   :  { %v1444_v29 = vadd.f32 %v1440_v21, %v1432_v15  ;;  %v1443_v55 = vadd.f32 %v1438_v12, %v1431_v56  ;;  %v1359_v21 = vadd.f32 %v4294_v10, %v1347_v36  ;;  %v5512_v10 = vld [vmem:[#allocation73_spill] sm:$0xff] }
 0x41a   :  { %1855 = vrot.lane.b32.xlu1 %v1850_v19, %s2891_s13  ;;  %1853 = vrot.lane.b32.xlu0 %v1849_v54, %s2891_s13  ;;  %v1360_v19 = vadd.f32 %v4292_v18, %v1348_v33  ;;  %v1520_v33 = vmul.f32 %v5512_v10, %v3665_v17 }
 0x41b   :  { %v1371_v59 = vadd.f32 %v4310_v50, %v1359_v21 }
 0x41c   :  { %v1452_v3 = vpop.permute.xlu1 %1451  ;;  %v1450_v57 = vpop.permute.xlu0 %1449  ;;  %v1372_v26 = vadd.f32 %v4308_v24, %v1360_v19 }
 0x41d   :  { %v1456_v22 = vadd.f32 %v1452_v3, %v1444_v29  ;;  %v1455_v34 = vadd.f32 %v1450_v57, %v1443_v55  ;;  %v5511_v3 = vld [vmem:[#allocation74_spill] sm:$0xff] }
 0x41e   :  { %1870 = vrot.lane.b32.xlu1 %v4414_v37, %s2889_s2  ;;  %1867 = vrot.lane.b32.xlu0 %v4412_v1, %s2889_s2  ;;  %v1374_v57 = vmul.f32 %v3770_v23, %v5511_v3  ;;  %v1373_v15 = vmul.f32 %v3768_v5, %v5511_v3 }
 0x41f   :  { %v1460_v38 = vadd.f32 %v1458_v60, %v1456_v22  ;;  %v1459_v51 = vadd.f32 %v1457_v30, %v1455_v34  ;;  %v1519_v22 = vmul.f32 %v5512_v10, %v3656_v8 }
 0x420   :  { %v1468_v31 = vpop.permute.xlu1 %1467  ;;  %v1466_v46 = vpop.permute.xlu0 %1465  ;;  %v1376_v34 = vadd.f32 %v1374_v57, %v1372_v26  ;;  %v1375_v24 = vadd.f32 %v1373_v15, %v1371_v59 }
 0x421   :  { %v1472_v55 = vadd.f32 %v1468_v31, %v1460_v38  ;;  %v1471_v18 = vadd.f32 %v1466_v46, %v1459_v51  ;;  %v1545_v31 = vmul.f32 %v3768_v5, %v5513_v45  ;;  %v5514_v46 = vld [vmem:[#allocation76_spill] sm:$0xff]  ;;  %v5515_v45 = vld [vmem:[#allocation77_spill] sm:$0xff] }
 0x422   :  { %v1486_v38 = vmul.f32 %v3874_v14, %v5514_v46  ;;  %v1485_v51 = vmul.f32 %v3872_v11, %v5514_v46  ;;  %v1402_v10 = vmul.f32 %v3874_v14, %v5515_v45 }
 0x424   :  { %v1480_v42 = vpop.permute.xlu1 %1479  ;;  %v1478_v41 = vpop.permute.xlu0 %1477 }
 0x425   :  { %v1484_v36 = vadd.f32 %v1480_v42, %v1472_v55  ;;  %v1483_v50 = vadd.f32 %v1478_v41, %v1471_v18  ;;  %v1388_v42 = vadd.f32 %v4332_v48, %v1376_v34  ;;  %v1387_v41 = vadd.f32 %v4334_v35, %v1375_v24 }
 0x427   :  { %v1488_v57 = vadd.f32 %v1486_v38, %v1484_v36  ;;  %v1487_v15 = vadd.f32 %v1485_v51, %v1483_v50  ;;  %v1400_v55 = vadd.f32 %v4350_v63, %v1388_v42  ;;  %v1399_v18 = vadd.f32 %v4352_v27, %v1387_v41 }
 0x428   :  { %v1496_v47 = vpop.permute.xlu1 %1495  ;;  %v1494_v53 = vpop.permute.xlu0 %1493 }
 0x429   :  { %v1499_v48 = vadd.f32 %v1494_v53, %v1487_v15  ;;  %v1404_v24 = vadd.f32 %v1402_v10, %v1400_v55 }
 0x42c   :  { %v1508_v12 = vpop.permute.xlu1 %1507  ;;  %v1506_v54 = vpop.permute.xlu0 %1505 }
 0x430   :  { %v1528_v56 = vpop.permute.xlu1 %1527  ;;  %v1526_v29 = vpop.permute.xlu0 %1525 }
 0x431   :  { %v1532_v60 = vadd.f32 %v1528_v56, %v1520_v33  ;;  %v1531_v30 = vadd.f32 %v1526_v29, %v1519_v22 }
 0x434   :  { %v1540_v19 = vpop.permute.xlu1 %1539  ;;  %v1538_v21 = vpop.permute.xlu0 %1537 }
 0x435   :  { %v1544_v26 = vadd.f32 %v1540_v19, %v1532_v60  ;;  %v1543_v59 = vadd.f32 %v1538_v21, %v1531_v30  ;;  %v1401_v60 = vmul.f32 %v3872_v11, %v5515_v45  ;;  %v1500_v30 = vadd.f32 %v1496_v47, %v1488_v57  ;;  %v5516_v19 = vld [vmem:[#allocation78_spill] sm:$0xff] }
 0x436   :  { %v1574_v63 = vmul.f32 %v3874_v14, %v5516_v19  ;;  %v1573_v27 = vmul.f32 %v3872_v11, %v5516_v19  ;;  %v1416_v47 = vadd.f32 %v4370_v16, %v1404_v24  ;;  %v1634_v45 = vmul.f32 %v5522_v52, %v3770_v23 }
 0x437   :  { %v1548_v56 = vadd.f32 %v1546_v62, %v1544_v26  ;;  %v1547_v29 = vadd.f32 %v1545_v31, %v1543_v59  ;;  %v1403_v36 = vadd.f32 %v1401_v60, %v1399_v18  ;;  %v1512_v21 = vadd.f32 %v1508_v12, %v1500_v30 }
 0x438   :  { %v1556_v33 = vpop.permute.xlu1 %1555  ;;  %v1554_v22 = vpop.permute.xlu0 %1553  ;;  %v1511_v31 = vadd.f32 %v1506_v54, %v1499_v48  ;;  %v1428_v15 = vadd.f32 %v4386_v9, %v1416_v47 }
 0x439   :  { %v1560_v34 = vadd.f32 %v1556_v33, %v1548_v56  ;;  %v1559_v35 = vadd.f32 %v1554_v22, %v1547_v29  ;;  %v1415_v53 = vadd.f32 %v4372_v20, %v1403_v36  ;;  %v1514_v41 = vrot.slane %v1512_v21, 1  ;;  %v5517_v22 = vld [vmem:[#allocation79_spill] sm:$0xff] }
 0x43a   :  { %v1513_v57 = vrot.slane %v1511_v31, 1  ;;  %v1430_v60 = vadd.f32 %v1428_v15, %v5517_v22 }
 0x43b   :  { %v1427_v56 = vadd.f32 %v4388_v58, %v1415_v53 }
 0x43c   :  { %v1568_v62 = vpop.permute.xlu1 %1567  ;;  %v1566_v50 = vpop.permute.xlu0 %1565  ;;  %v1515_v18 = vsel %vm374_vm1, %v1513_v57, %v1514_v41  ;;  %v1516_v16 = vsel %vm374_vm1, %v1514_v41, %v1513_v57 }
 0x43d   :  { %v1572_v38 = vadd.f32 %v1568_v62, %v1560_v34  ;;  %v1571_v51 = vadd.f32 %v1566_v50, %v1559_v35  ;;  %v1429_v30 = vadd.f32 %v1427_v56, %v5517_v22  ;;  %v1518_v58 = vadd.f32 %v1516_v16, %v1430_v60 }
 0x43f   :  { %v1576_v26 = vadd.f32 %v1574_v63, %v1572_v38  ;;  %v1575_v59 = vadd.f32 %v1573_v27, %v1571_v51  ;;  %v1517_v34 = vadd.f32 %v1515_v18, %v1429_v30 }
 0x440   :  { %v1584_v10 = vpop.permute.xlu1 %1583  ;;  %v1582_v42 = vpop.permute.xlu0 %1581 }
 0x441   :  { %v1588_v29 = vadd.f32 %v1584_v10, %v1576_v26  ;;  %v1587_v55 = vadd.f32 %v1582_v42, %v1575_v59 }
 0x444   :  { %v1596_v12 = vpop.permute.xlu1 %1595  ;;  %v1594_v54 = vpop.permute.xlu0 %1593 }
 0x445   :  { %v1600_v33 = vadd.f32 %v1596_v12, %v1588_v29  ;;  %v1599_v20 = vadd.f32 %v1594_v54, %v1587_v55  ;;  %v5518_v54 = vld [vmem:[#allocation80_spill] sm:$0xff] }
 0x446   :  { %v1692_v18 = vmul.f32 %v5518_v54, %v3665_v17  ;;  %v1691_v16 = vmul.f32 %v5518_v54, %v3656_v8 }
 0x447   :  { %v1602_v48 = vrot.slane %v1600_v33, 2  ;;  %v1601_v9 = vrot.slane %v1599_v20, 2 }
 0x448   :  { %v1616_v35 = vpop.permute.xlu1 %1615  ;;  %v1614_v24 = vpop.permute.xlu0 %1613 }
 0x449   :  { %v1603_v36 = vsel %vm472_vm2, %v1601_v9, %v1602_v48  ;;  %v1604_v62 = vsel %vm472_vm2, %v1602_v48, %v1601_v9 }
 0x44a   :  { %v4478_v50 = vadd.f32 %v1603_v36, %v1517_v34  ;;  %v4480_v63 = vadd.f32 %v1604_v62, %v1518_v58  ;;  %v5519_v34 = vld [vmem:[#allocation81_spill] sm:$0xff]  ;;  %v5520_v62 = vld [vmem:[#allocation82_spill] sm:$0xff] }
 0x44b   :  { %v1608_v58 = vmul.f32 %v5519_v34, %v3665_v17  ;;  %v1607_v36 = vmul.f32 %v5519_v34, %v3656_v8  ;;  %v1718_v19 = vmul.f32 %v5520_v62, %v3770_v23  ;;  %v1717_v22 = vmul.f32 %v5520_v62, %v3768_v5 }
 0x44c   :  { %v1628_v27 = vpop.permute.xlu1 %1627  ;;  %v1626_v21 = vpop.permute.xlu0 %1625  ;;  %1882 = vrot.lane.b32.xlu1 %v4480_v63, %s2889_s2  ;;  %1879 = vrot.lane.b32.xlu0 %v4478_v50, %s2889_s2  ;;  %v1633_v62 = vmul.f32 %v5522_v52, %v3768_v5 }
 0x44d   :  { %v1620_v46 = vadd.f32 %v1616_v35, %v1608_v58  ;;  %v1619_v54 = vadd.f32 %v1614_v24, %v1607_v36 }
 0x450   :  { %v1644_v31 = vpop.permute.xlu1 %1643  ;;  %v1642_v38 = vpop.permute.xlu0 %1641 }
 0x454   :  { %v1656_v51 = vpop.permute.xlu1 %1655  ;;  %v1654_v26 = vpop.permute.xlu0 %1653 }
 0x458   :  { %v4486_v59 = vpop.permute.xlu1 %1671  ;;  %v4488_v47 = vpop.permute.xlu0 %1669 }
 0x45c   :  { %v4490_v53 = vpop.permute.xlu1 %1683  ;;  %v4492_v10 = vpop.permute.xlu0 %1681 }
 0x460   :  { %v1700_v42 = vpop.permute.xlu1 %1699  ;;  %v1698_v41 = vpop.permute.xlu0 %1697 }
 0x461   :  { %v1704_v33 = vadd.f32 %v1700_v42, %v1692_v18  ;;  %v1703_v20 = vadd.f32 %v1698_v41, %v1691_v16 }
 0x464   :  { %v1712_v57 = vpop.permute.xlu1 %1711  ;;  %v1710_v15 = vpop.permute.xlu0 %1709 }
 0x465   :  { %v1716_v48 = vadd.f32 %v1712_v57, %v1704_v33  ;;  %v1715_v9 = vadd.f32 %v1710_v15, %v1703_v20  ;;  %v1632_v57 = vadd.f32 %v1628_v27, %v1620_v46  ;;  %v1631_v15 = vadd.f32 %v1626_v21, %v1619_v54  ;;  %v5521_v33 = vld [vmem:[#allocation84_spill] sm:$0xff] }
 0x466   :  { %v1780_v20 = vmul.f32 %v5521_v33, %v3665_v17  ;;  %v1779_v34 = vmul.f32 %v5521_v33, %v3656_v8  ;;  %v5523_v33 = vld [vmem:[#allocation86_spill] sm:$0xff] }
 0x467   :  { %v1720_v18 = vadd.f32 %v1718_v19, %v1716_v48  ;;  %v1719_v16 = vadd.f32 %v1717_v22, %v1715_v9  ;;  %v1636_v46 = vadd.f32 %v1634_v45, %v1632_v57  ;;  %v1635_v27 = vadd.f32 %v1633_v62, %v1631_v15  ;;  %v5525_v15 = vld [vmem:[#allocation87_spill] sm:$0xff] }
 0x468   :  { %v1728_v56 = vpop.permute.xlu1 %1727  ;;  %v1726_v29 = vpop.permute.xlu0 %1725  ;;  %v1746_v13 = vmul.f32 %v3874_v14, %v5523_v33  ;;  %v1745_v52 = vmul.f32 %v3872_v11, %v5523_v33 }
 0x469   :  { %v1732_v58 = vadd.f32 %v1728_v56, %v1720_v18  ;;  %v1731_v36 = vadd.f32 %v1726_v29, %v1719_v16  ;;  %v1806_v56 = vmul.f32 %v5524_v25, %v3770_v23  ;;  %v1805_v29 = vmul.f32 %v5524_v25, %v3768_v5 }
 0x46a   :  { %v1648_v45 = vadd.f32 %v1644_v31, %v1636_v46 }
 0x46c   :  { %v1740_v55 = vpop.permute.xlu1 %1739  ;;  %v1738_v12 = vpop.permute.xlu0 %1737 }
 0x46d   :  { %v1744_v21 = vadd.f32 %v1740_v55, %v1732_v58  ;;  %v1743_v54 = vadd.f32 %v1738_v12, %v1731_v36 }
 0x46f   :  { %v1748_v55 = vadd.f32 %v1746_v13, %v1744_v21  ;;  %v1747_v12 = vadd.f32 %v1745_v52, %v1743_v54 }
 0x470   :  { %v1756_v60 = vpop.permute.xlu1 %1755  ;;  %v1754_v30 = vpop.permute.xlu0 %1753 }
 0x471   :  { %v1760_v23 = vadd.f32 %v1756_v60, %v1748_v55 }
 0x474   :  { %v1788_v42 = vpop.permute.xlu1 %1787  ;;  %v1786_v41 = vpop.permute.xlu0 %1785 }
 0x475   :  { %v1792_v19 = vadd.f32 %v1788_v42, %v1780_v20  ;;  %v1791_v22 = vadd.f32 %v1786_v41, %v1779_v34  ;;  %v1647_v34 = vadd.f32 %v1642_v38, %v1635_v27  ;;  %v1660_v41 = vadd.f32 %v1656_v51, %v1648_v45 }
 0x476   :  { %v1662_v20 = vmul.f32 %v3874_v14, %v5525_v15 }
 0x477   :  { %v1659_v18 = vadd.f32 %v1654_v26, %v1647_v34 }
 0x478   :  { %v1800_v35 = vpop.permute.xlu1 %1799  ;;  %v1798_v24 = vpop.permute.xlu0 %1797  ;;  %v1664_v31 = vadd.f32 %v1662_v20, %v1660_v41 }
 0x479   :  { %v1804_v17 = vadd.f32 %v1800_v35, %v1792_v19  ;;  %v1803_v48 = vadd.f32 %v1798_v24, %v1791_v22  ;;  %v1661_v35 = vmul.f32 %v3872_v11, %v5525_v15  ;;  %v1759_v24 = vadd.f32 %v1754_v30, %v1747_v12  ;;  %v5526_v22 = vld [vmem:[#allocation88_spill] sm:$0xff] }
 0x47a   :  { %v1834_v46 = vmul.f32 %v3874_v14, %v5526_v22  ;;  %v1833_v27 = vmul.f32 %v3872_v11, %v5526_v22  ;;  %v1676_v21 = vadd.f32 %v4486_v59, %v1664_v31 }
 0x47b   :  { %v1808_v62 = vadd.f32 %v1806_v56, %v1804_v17  ;;  %v1807_v42 = vadd.f32 %v1805_v29, %v1803_v48  ;;  %v1663_v38 = vadd.f32 %v1661_v35, %v1659_v18 }
 0x47c   :  { %v1816_v9 = vpop.permute.xlu1 %1815  ;;  %v1814_v8 = vpop.permute.xlu0 %1813  ;;  %v1688_v56 = vadd.f32 %v4490_v53, %v1676_v21 }
 0x47d   :  { %v1820_v58 = vadd.f32 %v1816_v9, %v1808_v62  ;;  %v1819_v5 = vadd.f32 %v1814_v8, %v1807_v42  ;;  %v1675_v60 = vadd.f32 %v4488_v47, %v1663_v38  ;;  %v5527_v62 = vld [vmem:[#allocation89_spill] sm:$0xff] }
 0x47e   :  { %v1690_v42 = vadd.f32 %v1688_v56, %v5527_v62 }
 0x47f   :  { %v1687_v29 = vadd.f32 %v4492_v10, %v1675_v60 }
 0x480   :  { %v1828_v16 = vpop.permute.xlu1 %1827  ;;  %v1826_v57 = vpop.permute.xlu0 %1825 }
 0x481   :  { %v1832_v36 = vadd.f32 %v1828_v16, %v1820_v58  ;;  %v1831_v19 = vadd.f32 %v1826_v57, %v1819_v5  ;;  %v1689_v41 = vadd.f32 %v1687_v29, %v5527_v62 }
 0x483   :  { %v1836_v9 = vadd.f32 %v1834_v46, %v1832_v36  ;;  %v1835_v8 = vadd.f32 %v1833_v27, %v1831_v19 }
 0x484   :  { %v1768_v13 = vpop.permute.xlu1 %1767  ;;  %v1766_v52 = vpop.permute.xlu0 %1765 }
 0x485   :  { %v1772_v51 = vadd.f32 %v1768_v13, %v1760_v23  ;;  %v1771_v26 = vadd.f32 %v1766_v52, %v1759_v24 }
 0x487   :  { %v1774_v17 = vrot.slane %v1772_v51, 1  ;;  %v1773_v48 = vrot.slane %v1771_v26, 1 }
 0x488   :  { %v1844_v30 = vpop.permute.xlu1 %1843  ;;  %v1842_v54 = vpop.permute.xlu0 %1841 }
 0x489   :  { %v1848_v45 = vadd.f32 %v1844_v30, %v1836_v9  ;;  %v1847_v34 = vadd.f32 %v1842_v54, %v1835_v8  ;;  %v1775_v11 = vsel %vm374_vm1, %v1773_v48, %v1774_v17  ;;  %v1776_v59 = vsel %vm374_vm1, %v1774_v17, %v1773_v48  ;;  %v5528_v54 = vld [vmem:[#allocation14_spill] sm:$0xff]  ;;  %v5529_v9 = vld [vmem:[#allocation15_spill] sm:$0xff] }
 0x48a   :  { %v1777_v16 = vadd.f32 %v1775_v11, %v1689_v41  ;;  %v1778_v10 = vadd.f32 %v1776_v59, %v1690_v42 }
 0x48c   :  { %v1856_v14 = vpop.permute.xlu1 %1855  ;;  %v1854_v55 = vpop.permute.xlu0 %1853 }
 0x48d   :  { %v1860_v47 = vadd.f32 %v1856_v14, %v1848_v45  ;;  %v1859_v12 = vadd.f32 %v1854_v55, %v1847_v34  ;;  %v5530_v55 = vld [vmem:[#allocation16_spill] sm:$0xff] }
 0x48f   :  { %v1862_v18 = vrot.slane %v1860_v47, 2  ;;  %v1861_v53 = vrot.slane %v1859_v12, 2  ;;  %v5531_v47 = vld [vmem:[#allocation17_spill] sm:$0xff] }
 0x490   :  { %v1871_v24 = vpop.permute.xlu1 %1870  ;;  %v1868_v58 = vpop.permute.xlu0 %1867 }
 0x491   :  { %v1863_v57 = vsel %vm472_vm2, %v1861_v53, %v1862_v18  ;;  %v1864_v20 = vsel %vm472_vm2, %v1862_v18, %v1861_v53  ;;  %v1872_v5 = vsel %vm149_vm0, %v1871_v24, %v4414_v37  ;;  %v1869_v31 = vsel %vm149_vm0, %v1868_v58, %v4412_v1  ;;  %v5533_v24 = vld [vmem:[#allocation19_spill] sm:$0xff] }
 0x492   :  { %v4544_v35 = vadd.f32 %v1863_v57, %v1777_v16  ;;  %v4546_v23 = vadd.f32 %v1864_v20, %v1778_v10  ;;  %v5532_v10 = vld [vmem:[#allocation18_spill] sm:$0xff] }
 0x494   :  { %1894 = vrot.lane.b32.xlu1 %v4546_v23, %s2889_s2  ;;  %1891 = vrot.lane.b32.xlu0 %v4544_v35, %s2889_s2 }
 0x498   :  { %1875 = vrot.lane.b32.xlu1 %v1872_v5, %s2889_s2  ;;  %1873 = vrot.lane.b32.xlu0 %v1869_v31, %s2889_s2  ;;  %v5534_v31 = vld [vmem:[#allocation20_spill] sm:$0xff] }
 0x4be   :  { %v1883_v38 = vpop.permute.xlu1 %1882  ;;  %v1880_v13 = vpop.permute.xlu0 %1879 }
 0x4bf   :  { %v1884_v52 = vsel %vm149_vm0, %v1883_v38, %v4480_v63  ;;  %v1881_v36 = vsel %vm149_vm0, %v1880_v13, %v4478_v50 }
 0x4c0   :  { %1887 = vrot.lane.b32.xlu1 %v1884_v52, %s2889_s2  ;;  %1885 = vrot.lane.b32.xlu0 %v1881_v36, %s2889_s2  ;;  %v5535_v52 = vld [vmem:[#allocation21_spill] sm:$0xff] }
 0x506   :  { %v1895_v19 = vpop.permute.xlu1 %1894  ;;  %v1892_v51 = vpop.permute.xlu0 %1891 }
 0x507   :  { %v1896_v26 = vsel %vm149_vm0, %v1895_v19, %v4546_v23  ;;  %v1893_v46 = vsel %vm149_vm0, %v1892_v51, %v4544_v35  ;;  %v5536_v51 = vld [vmem:[#allocation22_spill] sm:$0xff] }
 0x508   :  { %1899 = vrot.lane.b32.xlu1 %v1896_v26, %s2889_s2  ;;  %1897 = vrot.lane.b32.xlu0 %v1893_v46, %s2889_s2  ;;  %s2892_s2 = smov [#allocation9]  }
 0x50a   :  { %v1876_v27 = vpop.permute.xlu1 %1875  ;;  %v1874_v21 = vpop.permute.xlu0 %1873 }
 0x50b   :  { %v4572_v60 = vsel %vm149_vm0, %v1876_v27, %v4414_v37  ;;  %v4576_v30 = vsel %vm149_vm0, %v1874_v21, %v4412_v1  ;;  %v5537_v27 = vld [vmem:[#allocation23_spill] sm:$0xff] }
 0x50c   :  { %v1906_v17 = vmul.f32 %v4572_v60, %v5528_v54  ;;  %v1905_v48 = vmul.f32 %v4576_v30, %v5528_v54  ;;  %v1918_v8 = vmul.f32 %v4572_v60, %v5529_v9  ;;  %v1917_v56 = vmul.f32 %v4576_v30, %v5529_v9 }
 0x50d   :  { %v1990_v38 = vmul.f32 %v4572_v60, %v5534_v31  ;;  %v1989_v13 = vmul.f32 %v4576_v30, %v5534_v31  ;;  %v2002_v36 = vmul.f32 %v4572_v60, %v5535_v52  ;;  %v2001_v19 = vmul.f32 %v4576_v30, %v5535_v52  ;;  %v5545_v31 = vld [vmem:[#allocation31_spill] sm:$0xff]  ;;  %v5546_v52 = vld [vmem:[#allocation32_spill] sm:$0xff] }
 0x50e   :  { %1911 = vrot.lane.b32.xlu1 %v1906_v17, %s2890_s11  ;;  %1909 = vrot.lane.b32.xlu0 %v1905_v48, %s2890_s11  ;;  %v5538_v17 = vld [vmem:[#allocation24_spill] sm:$0xff] }
 0x512   :  { %1923 = vrot.lane.b32.xlu1 %v1918_v8, %s2891_s13  ;;  %1921 = vrot.lane.b32.xlu0 %v1917_v56, %s2891_s13  ;;  %v5539_v8 = vld [vmem:[#allocation25_spill] sm:$0xff] }
 0x532   :  { %v1888_v29 = vpop.permute.xlu1 %1887  ;;  %v1886_v45 = vpop.permute.xlu0 %1885 }
 0x533   :  { %v4592_v34 = vsel %vm149_vm0, %v1888_v29, %v4480_v63  ;;  %v4596_v14 = vsel %vm149_vm0, %v1886_v45, %v4478_v50  ;;  %v5540_v45 = vld [vmem:[#allocation26_spill] sm:$0xff] }
 0x534   :  { %v1934_v11 = vmul.f32 %v4592_v34, %v5530_v55  ;;  %v1933_v59 = vmul.f32 %v4596_v14, %v5530_v55  ;;  %v1946_v12 = vmul.f32 %v4592_v34, %v5531_v47  ;;  %v1945_v42 = vmul.f32 %v4596_v14, %v5531_v47 }
 0x535   :  { %v2018_v26 = vmul.f32 %v4592_v34, %v5536_v51  ;;  %v2017_v46 = vmul.f32 %v4596_v14, %v5536_v51  ;;  %v2030_v21 = vmul.f32 %v4592_v34, %v5537_v27  ;;  %v2029_v54 = vmul.f32 %v4596_v14, %v5537_v27  ;;  %v5547_v51 = vld [vmem:[#allocation33_spill] sm:$0xff]  ;;  %v5548_v27 = vld [vmem:[#allocation34_spill] sm:$0xff] }
 0x536   :  { %1939 = vrot.lane.b32.xlu1 %v1934_v11, %s2890_s11  ;;  %1937 = vrot.lane.b32.xlu0 %v1933_v59, %s2890_s11  ;;  %v2078_v55 = vmul.f32 %v4572_v60, %v5540_v45  ;;  %v2077_v11 = vmul.f32 %v4576_v30, %v5540_v45  ;;  %v5541_v59 = vld [vmem:[#allocation27_spill] sm:$0xff]  ;;  %v5551_v45 = vld [vmem:[#allocation37_spill] sm:$0xff] }
 0x537   :  { %v2090_v47 = vmul.f32 %v4572_v60, %v5541_v59 }
 0x53a   :  { %1951 = vrot.lane.b32.xlu1 %v1946_v12, %s2891_s13  ;;  %1949 = vrot.lane.b32.xlu0 %v1945_v42, %s2891_s13  ;;  %v2089_v12 = vmul.f32 %v4576_v30, %v5541_v59  ;;  %v5542_v42 = vld [vmem:[#allocation28_spill] sm:$0xff]  ;;  %v5552_v59 = vld [vmem:[#allocation38_spill] sm:$0xff] }
 0x57a   :  { %v1900_v41 = vpop.permute.xlu1 %1899  ;;  %v1898_v18 = vpop.permute.xlu0 %1897 }
 0x57b   :  { %v4612_v53 = vsel %vm149_vm0, %v1900_v41, %v4546_v23  ;;  %v4616_v16 = vsel %vm149_vm0, %v1898_v18, %v4544_v35  ;;  %v2106_v41 = vmul.f32 %v4592_v34, %v5542_v42  ;;  %v2105_v18 = vmul.f32 %v4596_v14, %v5542_v42  ;;  %v5553_v42 = vld [vmem:[#allocation39_spill] sm:$0xff] }
 0x57c   :  { %v1962_v57 = vmul.f32 %v4612_v53, %v5532_v10  ;;  %v1961_v20 = vmul.f32 %v4616_v16, %v5532_v10  ;;  %v1974_v58 = vmul.f32 %v4612_v53, %v5533_v24  ;;  %v1973_v5 = vmul.f32 %v4616_v16, %v5533_v24  ;;  %v5543_v10 = vld [vmem:[#allocation29_spill] sm:$0xff]  ;;  %v5544_v24 = vld [vmem:[#allocation30_spill] sm:$0xff] }
 0x57d   :  { %v2046_v48 = vmul.f32 %v4612_v53, %v5538_v17  ;;  %v2045_v9 = vmul.f32 %v4616_v16, %v5538_v17  ;;  %v2058_v56 = vmul.f32 %v4612_v53, %v5539_v8  ;;  %v2057_v29 = vmul.f32 %v4616_v16, %v5539_v8  ;;  %v5549_v17 = vld [vmem:[#allocation35_spill] sm:$0xff]  ;;  %v5550_v8 = vld [vmem:[#allocation36_spill] sm:$0xff] }
 0x57e   :  { %1967 = vrot.lane.b32.xlu1 %v1962_v57, %s2890_s11  ;;  %1965 = vrot.lane.b32.xlu0 %v1961_v20, %s2890_s11  ;;  %v2118_v57 = vmul.f32 %v4592_v34, %v5543_v10  ;;  %v2117_v20 = vmul.f32 %v4596_v14, %v5543_v10  ;;  %v5554_v10 = vld [vmem:[#allocation40_spill] sm:$0xff] }
 0x582   :  { %1979 = vrot.lane.b32.xlu1 %v1974_v58, %s2891_s13  ;;  %1977 = vrot.lane.b32.xlu0 %v1973_v5, %s2891_s13  ;;  %v2134_v58 = vmul.f32 %v4612_v53, %v5544_v24  ;;  %v2133_v5 = vmul.f32 %v4616_v16, %v5544_v24  ;;  %v5555_v24 = vld [vmem:[#allocation41_spill] sm:$0xff] }
 0x586   :  { %1995 = vrot.lane.b32.xlu1 %v1990_v38, %s2890_s11  ;;  %1993 = vrot.lane.b32.xlu0 %v1989_v13, %s2890_s11  ;;  %v2146_v38 = vmul.f32 %v4612_v53, %v5545_v31  ;;  %v2145_v13 = vmul.f32 %v4616_v16, %v5545_v31  ;;  %v4762_v31 = vpop.permute.xlu1 %1911 }
 0x58a   :  { %2007 = vrot.lane.b32.xlu1 %v2002_v36, %s2891_s13  ;;  %2005 = vrot.lane.b32.xlu0 %v2001_v19, %s2891_s13  ;;  %v2166_v36 = vmul.f32 %v4572_v60, %v5546_v52  ;;  %v2165_v19 = vmul.f32 %v4576_v30, %v5546_v52 }
 0x58e   :  { %2023 = vrot.lane.b32.xlu1 %v2018_v26, %s2890_s11  ;;  %2021 = vrot.lane.b32.xlu0 %v2017_v46, %s2890_s11  ;;  %v2178_v26 = vmul.f32 %v4572_v60, %v5547_v51  ;;  %v2177_v46 = vmul.f32 %v4576_v30, %v5547_v51 }
 0x592   :  { %2035 = vrot.lane.b32.xlu1 %v2030_v21, %s2891_s13  ;;  %2033 = vrot.lane.b32.xlu0 %v2029_v54, %s2891_s13  ;;  %v2194_v21 = vmul.f32 %v4592_v34, %v5548_v27  ;;  %v2193_v54 = vmul.f32 %v4596_v14, %v5548_v27 }
 0x596   :  { %2051 = vrot.lane.b32.xlu1 %v2046_v48, %s2890_s11  ;;  %2049 = vrot.lane.b32.xlu0 %v2045_v9, %s2890_s11  ;;  %v2206_v48 = vmul.f32 %v4592_v34, %v5549_v17  ;;  %v2205_v9 = vmul.f32 %v4596_v14, %v5549_v17 }
 0x59a   :  { %2063 = vrot.lane.b32.xlu1 %v2058_v56, %s2891_s13  ;;  %2061 = vrot.lane.b32.xlu0 %v2057_v29, %s2891_s13  ;;  %v2222_v56 = vmul.f32 %v4612_v53, %v5550_v8  ;;  %v2221_v29 = vmul.f32 %v4616_v16, %v5550_v8  ;;  %v5559_v8 = vld [vmem:[#allocation45_spill] sm:$0xff] }
 0x59e   :  { %2083 = vrot.lane.b32.xlu1 %v2078_v55, %s2890_s11  ;;  %2081 = vrot.lane.b32.xlu0 %v2077_v11, %s2890_s11  ;;  %v2234_v55 = vmul.f32 %v4612_v53, %v5551_v45  ;;  %v2233_v11 = vmul.f32 %v4616_v16, %v5551_v45 }
 0x5a2   :  { %2095 = vrot.lane.b32.xlu1 %v2090_v47, %s2891_s13  ;;  %2093 = vrot.lane.b32.xlu0 %v2089_v12, %s2891_s13  ;;  %v2250_v47 = vmul.f32 %v4572_v60, %v5552_v59  ;;  %v2249_v12 = vmul.f32 %v4576_v30, %v5552_v59 }
 0x5a6   :  { %2111 = vrot.lane.b32.xlu1 %v2106_v41, %s2890_s11  ;;  %2109 = vrot.lane.b32.xlu0 %v2105_v18, %s2890_s11  ;;  %v2262_v41 = vmul.f32 %v4572_v60, %v5553_v42  ;;  %v2261_v18 = vmul.f32 %v4576_v30, %v5553_v42 }
 0x5aa   :  { %2123 = vrot.lane.b32.xlu1 %v2118_v57, %s2891_s13  ;;  %2121 = vrot.lane.b32.xlu0 %v2117_v20, %s2891_s13  ;;  %v2278_v57 = vmul.f32 %v4592_v34, %v5554_v10  ;;  %v2277_v20 = vmul.f32 %v4596_v14, %v5554_v10  ;;  %v5562_v10 = vld [vmem:[#allocation47_spill] sm:$0xff] }
 0x5ae   :  { %2139 = vrot.lane.b32.xlu1 %v2134_v58, %s2890_s11  ;;  %2137 = vrot.lane.b32.xlu0 %v2133_v5, %s2890_s11  ;;  %v2290_v58 = vmul.f32 %v4592_v34, %v5555_v24  ;;  %v2289_v5 = vmul.f32 %v4596_v14, %v5555_v24 }
 0x5b2   :  { %2151 = vrot.lane.b32.xlu1 %v2146_v38, %s2891_s13  ;;  %2149 = vrot.lane.b32.xlu0 %v2145_v13, %s2891_s13  ;;  %v4764_v38 = vpop.permute.xlu0 %1909  ;;  %v5556_v13 = vld [vmem:[#allocation42_spill] sm:$0xff] }
 0x5b3   :  { %v2306_v52 = vmul.f32 %v4612_v53, %v5556_v13 }
 0x5b6   :  { %2171 = vrot.lane.b32.xlu1 %v2166_v36, %s2890_s11  ;;  %2169 = vrot.lane.b32.xlu0 %v2165_v19, %s2890_s11  ;;  %v2305_v36 = vmul.f32 %v4616_v16, %v5556_v13  ;;  %v5557_v19 = vld [vmem:[#allocation43_spill] sm:$0xff]  ;;  %v4778_v27 = vpop.permute.xlu0 %1921 }
 0x5b7   :  { %v2318_v51 = vmul.f32 %v4612_v53, %v5557_v19 }
 0x5ba   :  { %2183 = vrot.lane.b32.xlu1 %v2178_v26, %s2891_s13  ;;  %2181 = vrot.lane.b32.xlu0 %v2177_v46, %s2891_s13  ;;  %v2317_v26 = vmul.f32 %v4616_v16, %v5557_v19  ;;  %v4776_v46 = vpop.permute.xlu1 %1923  ;;  %v5564_v19 = vld [vmem:[#allocation57_spill] sm:$0xff] }
 0x5be   :  { %2199 = vrot.lane.b32.xlu1 %v2194_v21, %s2890_s11  ;;  %2197 = vrot.lane.b32.xlu0 %v2193_v54, %s2890_s11  ;;  %v5558_v21 = vld [vmem:[#allocation44_spill] sm:$0xff] }
 0x5bf   :  { %v2338_v54 = vmul.f32 %v4572_v60, %v5558_v21  ;;  %v2337_v17 = vmul.f32 %v4576_v30, %v5558_v21 }
 0x5c2   :  { %2211 = vrot.lane.b32.xlu1 %v2206_v48, %s2891_s13  ;;  %2209 = vrot.lane.b32.xlu0 %v2205_v9, %s2891_s13  ;;  %v4786_v48 = vpop.permute.xlu1 %1939  ;;  %v4788_v9 = vpop.permute.xlu0 %1937 }
 0x5c6   :  { %2227 = vrot.lane.b32.xlu1 %v2222_v56, %s2890_s11  ;;  %2225 = vrot.lane.b32.xlu0 %v2221_v29, %s2890_s11  ;;  %v2350_v56 = vmul.f32 %v4572_v60, %v5559_v8  ;;  %v2349_v29 = vmul.f32 %v4576_v30, %v5559_v8  ;;  %v4798_v45 = vpop.permute.xlu1 %1951  ;;  %v2522_v8 = vmul.f32 %v4572_v60, %v5564_v19 }
 0x5ca   :  { %2239 = vrot.lane.b32.xlu1 %v2234_v55, %s2891_s13  ;;  %2237 = vrot.lane.b32.xlu0 %v2233_v11, %s2891_s13  ;;  %v4800_v55 = vpop.permute.xlu0 %1949  ;;  %v5560_v11 = vld [vmem:[#allocation46_spill] sm:$0xff] }
 0x5cb   :  { %v2366_v59 = vmul.f32 %v4592_v34, %v5560_v11 }
 0x5ce   :  { %2255 = vrot.lane.b32.xlu1 %v2250_v47, %s2890_s11  ;;  %2253 = vrot.lane.b32.xlu0 %v2249_v12, %s2890_s11  ;;  %v2365_v47 = vmul.f32 %v4596_v14, %v5560_v11  ;;  %v5565_v11 = vld [vmem:[#allocation51_spill] sm:$0xff] }
 0x5d2   :  { %2267 = vrot.lane.b32.xlu1 %v2262_v41, %s2891_s13  ;;  %2265 = vrot.lane.b32.xlu0 %v2261_v18, %s2891_s13  ;;  %v5561_v41 = vld [vmem:[#allocation56_spill] sm:$0xff] }
 0x5d3   :  { %v2509_v18 = vmul.f32 %v4576_v30, %v5561_v41  ;;  %v2510_v13 = vmul.f32 %v4572_v60, %v5561_v41 }
 0x5d6   :  { %2283 = vrot.lane.b32.xlu1 %v2278_v57, %s2890_s11  ;;  %2281 = vrot.lane.b32.xlu0 %v2277_v20, %s2890_s11  ;;  %v2377_v57 = vmul.f32 %v4596_v14, %v5562_v10 }
 0x5da   :  { %2295 = vrot.lane.b32.xlu1 %v2290_v58, %s2891_s13  ;;  %2293 = vrot.lane.b32.xlu0 %v2289_v5, %s2891_s13  ;;  %v5563_v58 = vld [vmem:[#allocation50_spill] sm:$0xff] }
 0x5db   :  { %v2425_v5 = vmul.f32 %v4576_v30, %v5563_v58 }
 0x5de   :  { %2311 = vrot.lane.b32.xlu1 %v2306_v52, %s2890_s11  ;;  %2309 = vrot.lane.b32.xlu0 %v2305_v36, %s2890_s11 }
 0x5e2   :  { %2323 = vrot.lane.b32.xlu1 %v2318_v51, %s2891_s13  ;;  %2321 = vrot.lane.b32.xlu0 %v2317_v26, %s2891_s13  ;;  %v2521_v51 = vmul.f32 %v4576_v30, %v5564_v19  ;;  %v2426_v26 = vmul.f32 %v4572_v60, %v5563_v58  ;;  %v2438_v58 = vmul.f32 %v4572_v60, %v5565_v11 }
 0x5e6   :  { %2343 = vrot.lane.b32.xlu1 %v2338_v54, %s2890_s11  ;;  %2341 = vrot.lane.b32.xlu0 %v2337_v17, %s2890_s11  ;;  %v2597_v17 = vmul.f32 %v4576_v30, %v3505_v0 }
 0x5ea   :  { %2355 = vrot.lane.b32.xlu1 %v2350_v56, %s2891_s13  ;;  %2353 = vrot.lane.b32.xlu0 %v2349_v29, %s2891_s13 }
 0x5ee   :  { %2371 = vrot.lane.b32.xlu1 %v2366_v59, %s2890_s11  ;;  %2369 = vrot.lane.b32.xlu0 %v2365_v47, %s2890_s11  ;;  %v2437_v59 = vmul.f32 %v4576_v30, %v5565_v11  ;;  %v2598_v47 = vmul.f32 %v4572_v60, %v3505_v0  ;;  %v2610_v11 = vmul.f32 %v4572_v60, %v3513_v4 }
 0x5f0   :  { %v4808_v12 = vpop.permute.xlu1 %1967  ;;  %v4810_v42 = vpop.permute.xlu0 %1965 }
 0x5f2   :  { %2513 = vrot.lane.b32.xlu1 %v2509_v18, %s2890_s11  ;;  %2381 = vrot.lane.b32.xlu0 %v2377_v57, %s2891_s13  ;;  %v2609_v57 = vmul.f32 %v4576_v30, %v3513_v4  ;;  %v5567_v30 = vld [vmem:[#allocation58_spill] sm:$0xff] }
 0x5f3   :  { %v2538_v4 = vmul.f32 %v4592_v34, %v5567_v30 }
 0x5f4   :  { %v4818_v20 = vpop.permute.xlu1 %1979  ;;  %v4820_v24 = vpop.permute.xlu0 %1977 }
 0x5f6   :  { %2429 = vrot.lane.b32.xlu1 %v2425_v5, %s2890_s11  ;;  %2515 = vrot.lane.b32.xlu0 %v2510_v13, %s2890_s11  ;;  %v5566_v5 = vld [vmem:[#allocation59_spill] sm:$0xff] }
 0x5f7   :  { %v1988_v13 = vmul.f32 %v4414_v37, %v5566_v5  ;;  %v1987_v19 = vmul.f32 %v4412_v1, %v5566_v5  ;;  %v5568_v5 = vld [vmem:[#allocation52_spill] sm:$0xff] }
 0x5f8   :  { %v1996_v52 = vpop.permute.xlu1 %1995  ;;  %v1994_v36 = vpop.permute.xlu0 %1993 }
 0x5f9   :  { %v2000_v0 = vadd.f32 %v1996_v52, %v1988_v13  ;;  %v2014_v52 = vmul.f32 %v4480_v63, %v5495_v6  ;;  %v2453_v13 = vmul.f32 %v4596_v14, %v5568_v5 }
 0x5fa   :  { %2525 = vrot.lane.b32.xlu1 %v2521_v51, %s2891_s13  ;;  %2431 = vrot.lane.b32.xlu0 %v2426_v26, %s2890_s11  ;;  %v1999_v51 = vadd.f32 %v1994_v36, %v1987_v19  ;;  %v2013_v36 = vmul.f32 %v4478_v50, %v5495_v6  ;;  %v1903_v19 = vmul.f32 %v4412_v1, %v3425_v7  ;;  %v5569_v6 = vld [vmem:[#allocation61_spill] sm:$0xff] }
 0x5fc   :  { %v2008_v21 = vpop.permute.xlu1 %2007  ;;  %v2006_v54 = vpop.permute.xlu0 %2005 }
 0x5fe   :  { %2601 = vrot.lane.b32.xlu1 %v2597_v17, %s2890_s11  ;;  %2527 = vrot.lane.b32.xlu0 %v2522_v8, %s2891_s13  ;;  %v2537_v8 = vmul.f32 %v4596_v14, %v5567_v30 }
 0x600   :  { %v2024_v56 = vpop.permute.xlu1 %2023  ;;  %v2022_v29 = vpop.permute.xlu0 %2021 }
 0x602   :  { %2441 = vrot.lane.b32.xlu1 %v2437_v59, %s2891_s13  ;;  %2603 = vrot.lane.b32.xlu0 %v2598_v47, %s2890_s11  ;;  %v2012_v59 = vadd.f32 %v2008_v21, %v2000_v0  ;;  %v2011_v47 = vadd.f32 %v2006_v54, %v1999_v51  ;;  %v1904_v54 = vmul.f32 %v4414_v37, %v3425_v7 }
 0x603   :  { %v2076_v0 = vmul.f32 %v4414_v37, %v5569_v6  ;;  %v1930_v7 = vmul.f32 %v4480_v63, %v3450_v39 }
 0x604   :  { %v2036_v41 = vpop.permute.xlu1 %2035  ;;  %v2034_v18 = vpop.permute.xlu0 %2033  ;;  %v2016_v60 = vadd.f32 %v2014_v52, %v2012_v59  ;;  %v2015_v21 = vadd.f32 %v2013_v36, %v2011_v47  ;;  %v1916_v51 = vadd.f32 %v4762_v31, %v1904_v54  ;;  %v5570_v59 = vld [vmem:[#allocation60_spill] sm:$0xff]  ;;  %v2454_v52 = vmul.f32 %v4592_v34, %v5568_v5 }
 0x605   :  { %v2549_v47 = vmul.f32 %v4596_v14, %v5570_v59  ;;  %v1929_v54 = vmul.f32 %v4478_v50, %v3450_v39 }
 0x606   :  { %2613 = vrot.lane.b32.xlu1 %v2609_v57, %s2891_s13  ;;  %2443 = vrot.lane.b32.xlu0 %v2438_v58, %s2891_s13  ;;  %v2028_v36 = vadd.f32 %v2024_v56, %v2016_v60  ;;  %v1928_v31 = vadd.f32 %v4776_v46, %v1916_v51  ;;  %v2625_v60 = vmul.f32 %v4596_v14, %v3565_v28 }
 0x607   :  { %v2550_v46 = vmul.f32 %v4592_v34, %v5570_v59 }
 0x608   :  { %v4856_v26 = vpop.permute.xlu1 %2051  ;;  %v4858_v17 = vpop.permute.xlu0 %2049  ;;  %v2040_v5 = vadd.f32 %v2036_v41, %v2028_v36  ;;  %v2042_v41 = vmul.f32 %v4546_v23, %v3519_v32  ;;  %v1932_v51 = vadd.f32 %v1930_v7, %v1928_v31 }
 0x60a   :  { %2541 = vrot.lane.b32.xlu1 %v2537_v8, %s2890_s11  ;;  %2615 = vrot.lane.b32.xlu0 %v2610_v11, %s2891_s13  ;;  %v1915_v8 = vadd.f32 %v4764_v38, %v1903_v19 }
 0x60c   :  { %v4870_v57 = vpop.permute.xlu1 %2063  ;;  %v4872_v58 = vpop.permute.xlu0 %2061  ;;  %v1927_v38 = vadd.f32 %v4778_v27, %v1915_v8  ;;  %v5571_v27 = vld [vmem:[#allocation65_spill] sm:$0xff] }
 0x60d   :  { %v2101_v39 = vmul.f32 %v4478_v50, %v5571_v27 }
 0x60e   :  { %2457 = vrot.lane.b32.xlu1 %v2453_v13, %s2890_s11  ;;  %2543 = vrot.lane.b32.xlu0 %v2538_v4, %s2890_s11  ;;  %v2027_v13 = vadd.f32 %v2022_v29, %v2015_v21  ;;  %v2075_v4 = vmul.f32 %v4412_v1, %v5569_v6  ;;  %v2102_v21 = vmul.f32 %v4480_v63, %v5571_v27  ;;  %v5572_v27 = vld [vmem:[#allocation53_spill] sm:$0xff] }
 0x60f   :  { %v1931_v8 = vadd.f32 %v1929_v54, %v1927_v38 }
 0x610   :  { %v2084_v30 = vpop.permute.xlu1 %2083  ;;  %v2082_v11 = vpop.permute.xlu0 %2081  ;;  %v2039_v19 = vadd.f32 %v2034_v18, %v2027_v13  ;;  %v2041_v18 = vmul.f32 %v4544_v35, %v3519_v32  ;;  %v2465_v32 = vmul.f32 %v4596_v14, %v5572_v27 }
 0x611   :  { %v2088_v62 = vadd.f32 %v2084_v30, %v2076_v0  ;;  %v2087_v22 = vadd.f32 %v2082_v11, %v2075_v4  ;;  %v2044_v30 = vadd.f32 %v2042_v41, %v2040_v5  ;;  %v1943_v36 = vadd.f32 %v4788_v9, %v1931_v8 }
 0x612   :  { %2553 = vrot.lane.b32.xlu1 %v2549_v47, %s2891_s13  ;;  %2459 = vrot.lane.b32.xlu0 %v2454_v52, %s2890_s11  ;;  %v2043_v11 = vadd.f32 %v2041_v18, %v2039_v19  ;;  %v1944_v52 = vadd.f32 %v4786_v48, %v1932_v51  ;;  %v1957_v48 = vmul.f32 %v4544_v35, %v3538_v40 }
 0x613   :  { %v1955_v31 = vadd.f32 %v4800_v55, %v1943_v36  ;;  %v2056_v9 = vadd.f32 %v4856_v26, %v2044_v30  ;;  %v2466_v55 = vmul.f32 %v4592_v34, %v5572_v27 }
 0x614   :  { %v2096_v56 = vpop.permute.xlu1 %2095  ;;  %v2094_v29 = vpop.permute.xlu0 %2093  ;;  %v1956_v7 = vadd.f32 %v4798_v45, %v1944_v52  ;;  %v2055_v38 = vadd.f32 %v4858_v17, %v2043_v11  ;;  %v2378_v45 = vmul.f32 %v4592_v34, %v5562_v10 }
 0x615   :  { %v2100_v6 = vadd.f32 %v2096_v56, %v2088_v62  ;;  %v2099_v0 = vadd.f32 %v2094_v29, %v2087_v22  ;;  %v2626_v22 = vmul.f32 %v4592_v34, %v3565_v28  ;;  %v1958_v62 = vmul.f32 %v4546_v23, %v3538_v40 }
 0x616   :  { %2629 = vrot.lane.b32.xlu1 %v2625_v60, %s2890_s11  ;;  %2555 = vrot.lane.b32.xlu0 %v2550_v46, %s2891_s13  ;;  %v2130_v40 = vmul.f32 %v4546_v23, %v3543_v43  ;;  %v2129_v56 = vmul.f32 %v4544_v35, %v3543_v43  ;;  %v2068_v26 = vadd.f32 %v4870_v57, %v2056_v9 }
 0x617   :  { %v2104_v59 = vadd.f32 %v2102_v21, %v2100_v6  ;;  %v2103_v47 = vadd.f32 %v2101_v39, %v2099_v0  ;;  %v2067_v17 = vadd.f32 %v4872_v58, %v2055_v38  ;;  %v1960_v46 = vadd.f32 %v1958_v62, %v1956_v7 }
 0x618   :  { %v2112_v13 = vpop.permute.xlu1 %2111  ;;  %v2110_v4 = vpop.permute.xlu0 %2109  ;;  %v1959_v21 = vadd.f32 %v1957_v48, %v1955_v31  ;;  %v2638_v57 = vmul.f32 %v4592_v34, %v3587_v61  ;;  %v2637_v58 = vmul.f32 %v4596_v14, %v3587_v61  ;;  %v2070_v0 = vrot.slane %v2068_v26, 1  ;;  %v5574_v48 = vld [vmem:[#allocation54_spill] sm:$0xff]  ;;  %v5575_v26 = vld [vmem:[#allocation48_spill] sm:$0xff] }
 0x619   :  { %v2116_v54 = vadd.f32 %v2112_v13, %v2104_v59  ;;  %v2115_v28 = vadd.f32 %v2110_v4, %v2103_v47  ;;  %v1972_v41 = vadd.f32 %v4808_v12, %v1960_v46  ;;  %v2069_v51 = vrot.slane %v2067_v17, 1  ;;  %v5573_v47 = vld [vmem:[#allocation63_spill] sm:$0xff] }
 0x61a   :  { %2469 = vrot.lane.b32.xlu1 %v2465_v32, %s2891_s13  ;;  %2631 = vrot.lane.b32.xlu0 %v2626_v22, %s2890_s11  ;;  %v1971_v18 = vadd.f32 %v4810_v42, %v1959_v21  ;;  %v2566_v34 = vmul.f32 %v4612_v53, %v5573_v47  ;;  %v2565_v61 = vmul.f32 %v4616_v16, %v5573_v47 }
 0x61b   :  { %v1984_v8 = vadd.f32 %v4818_v20, %v1972_v41  ;;  %v2071_v14 = vsel %vm374_vm1, %v2069_v51, %v2070_v0  ;;  %v2072_v20 = vsel %vm374_vm1, %v2070_v0, %v2069_v51  ;;  %v2164_v32 = vmul.f32 %v4414_v37, %v5509_v49 }
 0x61c   :  { %v2124_v5 = vpop.permute.xlu1 %2123  ;;  %v2122_v19 = vpop.permute.xlu0 %2121  ;;  %v1983_v30 = vadd.f32 %v4820_v24, %v1971_v18  ;;  %v2482_v9 = vmul.f32 %v4612_v53, %v5574_v48  ;;  %v2481_v38 = vmul.f32 %v4616_v16, %v5574_v48  ;;  %v2394_v17 = vmul.f32 %v4612_v53, %v5575_v26 }
 0x61d   :  { %v2128_v29 = vadd.f32 %v2124_v5, %v2116_v54  ;;  %v2127_v60 = vadd.f32 %v2122_v19, %v2115_v28  ;;  %v1986_v36 = vadd.f32 %v1984_v8, %v5506_v44  ;;  %v2163_v28 = vmul.f32 %v4412_v1, %v5509_v49  ;;  %v5577_v8 = vld [vmem:[#allocation67_spill] sm:$0xff] }
 0x61e   :  { %2383 = vrot.lane.b32.xlu1 %v2378_v45, %s2891_s13  ;;  %2471 = vrot.lane.b32.xlu0 %v2466_v55, %s2891_s13  ;;  %v1985_v13 = vadd.f32 %v1983_v30, %v5506_v44  ;;  %v2393_v49 = vmul.f32 %v4616_v16, %v5575_v26  ;;  %v2190_v46 = vmul.f32 %v4480_v63, %v5511_v3 }
 0x61f   :  { %v2132_v10 = vadd.f32 %v2130_v40, %v2128_v29  ;;  %v2131_v39 = vadd.f32 %v2129_v56, %v2127_v60  ;;  %v2074_v62 = vadd.f32 %v2072_v20, %v1986_v36  ;;  %v2189_v21 = vmul.f32 %v4478_v50, %v5511_v3 }
 0x620   :  { %v2140_v6 = vpop.permute.xlu1 %2139  ;;  %v2138_v43 = vpop.permute.xlu0 %2137  ;;  %v2073_v22 = vadd.f32 %v2071_v14, %v1985_v13  ;;  %v2654_v30 = vmul.f32 %v4612_v53, %v5577_v8 }
 0x621   :  { %v2144_v12 = vadd.f32 %v2140_v6, %v2132_v10  ;;  %v2143_v42 = vadd.f32 %v2138_v43, %v2131_v39  ;;  %v5576_v6 = vld [vmem:[#allocation64_spill] sm:$0xff] }
 0x622   :  { %2643 = vrot.lane.b32.xlu1 %v2638_v57, %s2891_s13  ;;  %2641 = vrot.lane.b32.xlu0 %v2637_v58, %s2891_s13  ;;  %v2578_v43 = vmul.f32 %v4612_v53, %v5576_v6  ;;  %v2577_v57 = vmul.f32 %v4616_v16, %v5576_v6 }
 0x624   :  { %v2152_v11 = vpop.permute.xlu1 %2151  ;;  %v2150_v59 = vpop.permute.xlu0 %2149 }
 0x625   :  { %v2156_v24 = vadd.f32 %v2152_v11, %v2144_v12  ;;  %v2155_v52 = vadd.f32 %v2150_v59, %v2143_v42  ;;  %v2653_v12 = vmul.f32 %v4616_v16, %v5577_v8  ;;  %v5578_v59 = vld [vmem:[#allocation77_spill] sm:$0xff] }
 0x626   :  { %2571 = vrot.lane.b32.xlu1 %v2566_v34, %s2890_s11  ;;  %2569 = vrot.lane.b32.xlu0 %v2565_v61, %s2890_s11  ;;  %v2218_v47 = vmul.f32 %v4546_v23, %v5578_v59  ;;  %v2217_v34 = vmul.f32 %v4544_v35, %v5578_v59 }
 0x627   :  { %v2158_v4 = vrot.slane %v2156_v24, 2  ;;  %v2157_v27 = vrot.slane %v2155_v52, 2  ;;  %v5579_v52 = vld [vmem:[#allocation55_spill] sm:$0xff] }
 0x628   :  { %v2172_v7 = vpop.permute.xlu1 %2171  ;;  %v2170_v31 = vpop.permute.xlu0 %2169  ;;  %v2494_v36 = vmul.f32 %v4612_v53, %v5579_v52  ;;  %v2493_v13 = vmul.f32 %v4616_v16, %v5579_v52  ;;  %v5585_v52 = vld [vmem:[#allocation79_spill] sm:$0xff] }
 0x629   :  { %v2159_v44 = vsel %vm472_vm2, %v2157_v27, %v2158_v4  ;;  %v2160_v54 = vsel %vm472_vm2, %v2158_v4, %v2157_v27  ;;  %v2176_v45 = vadd.f32 %v2172_v7, %v2164_v32  ;;  %v2175_v55 = vadd.f32 %v2170_v31, %v2163_v28 }
 0x62a   :  { %v2161_v5 = vadd.f32 %v2159_v44, %v2073_v22  ;;  %v2162_v19 = vadd.f32 %v2160_v54, %v2074_v62  ;;  %2487 = vrot.lane.b32.xlu1 %v2482_v9, %s2890_s11  ;;  %2485 = vrot.lane.b32.xlu0 %v2481_v38, %s2890_s11  ;;  %v5580_v62 = vld [vmem:[#allocation49_spill] sm:$0xff] }
 0x62b   :  { %v2406_v7 = vmul.f32 %v4612_v53, %v5580_v62  ;;  %v2405_v31 = vmul.f32 %v4616_v16, %v5580_v62  ;;  %v5581_v54 = vld [vmem:[#allocation69_spill] sm:$0xff] }
 0x62c   :  { %2684 = vst.msk [vmem:[#allocation9] sm:$0xff] %vm2683_vm3, %v2161_v5  ;;  %2685 = vst.msk [vmem:[#allocation9 + $0x8] sm:$0xff] %vm2683_vm3, %v2162_v19  ;;  %v2184_v40 = vpop.permute.xlu1 %2183  ;;  %v2182_v56 = vpop.permute.xlu0 %2181  ;;  %v2666_v28 = vmul.f32 %v4612_v53, %v5581_v54  ;;  %v2665_v5 = vmul.f32 %v4616_v16, %v5581_v54  ;;  %v5582_v19 = vld [vmem:[#allocation70_spill] sm:$0xff]  ;;  %v5583_v53 = vld [vmem:[#allocation72_spill] sm:$0xff] }
 0x62d   :  { %v2188_v29 = vadd.f32 %v2184_v40, %v2176_v45  ;;  %v2187_v60 = vadd.f32 %v2182_v56, %v2175_v55  ;;  %v2248_v45 = vmul.f32 %v4414_v37, %v5582_v19  ;;  %v2247_v55 = vmul.f32 %v4412_v1, %v5582_v19  ;;  %v5586_v62 = vld [vmem:[#allocation73_spill] sm:$0xff] }
 0x62e   :  { %2399 = vrot.lane.b32.xlu1 %v2394_v17, %s2890_s11  ;;  %2397 = vrot.lane.b32.xlu0 %v2393_v49, %s2890_s11  ;;  %v2273_v16 = vmul.f32 %v4478_v50, %v5583_v53 }
 0x62f   :  { %v2192_v10 = vadd.f32 %v2190_v46, %v2188_v29  ;;  %v2191_v39 = vadd.f32 %v2189_v21, %v2187_v60  ;;  %v2274_v60 = vmul.f32 %v4480_v63, %v5583_v53 }
 0x630   :  { %v2200_v41 = vpop.permute.xlu1 %2199  ;;  %v2198_v18 = vpop.permute.xlu0 %2197 }
 0x631   :  { %v2204_v58 = vadd.f32 %v2200_v41, %v2192_v10  ;;  %v2203_v0 = vadd.f32 %v2198_v18, %v2191_v39 }
 0x632   :  { %2583 = vrot.lane.b32.xlu1 %v2578_v43, %s2891_s13  ;;  %2581 = vrot.lane.b32.xlu0 %v2577_v57, %s2891_s13 }
 0x634   :  { %v2212_v3 = vpop.permute.xlu1 %2211  ;;  %v2210_v51 = vpop.permute.xlu0 %2209 }
 0x635   :  { %v2216_v42 = vadd.f32 %v2212_v3, %v2204_v58  ;;  %v2215_v11 = vadd.f32 %v2210_v51, %v2203_v0  ;;  %v5584_v0 = vld [vmem:[#allocation76_spill] sm:$0xff] }
 0x636   :  { %2659 = vrot.lane.b32.xlu1 %v2654_v30, %s2890_s11  ;;  %2657 = vrot.lane.b32.xlu0 %v2653_v12, %s2890_s11  ;;  %v2302_v3 = vmul.f32 %v4546_v23, %v5584_v0  ;;  %v2301_v51 = vmul.f32 %v4544_v35, %v5584_v0  ;;  %s2697_s11 = sshll.u32 %s2892_s2, 4  ;;  %s2698_s11 = int_to_ptr.vmem [resolvable:$true] %s2697_s11 }
 0x637   :  { %v2220_v61 = vadd.f32 %v2218_v47, %v2216_v42  ;;  %v2219_v14 = vadd.f32 %v2217_v34, %v2215_v11  ;;  %p2859_p5 = scmp.lt.s32.totalorder %s2698_s11, %s2698_s11 }
 0x638   :  { %v2228_v20 = vpop.permute.xlu1 %2227  ;;  %v2226_v24 = vpop.permute.xlu0 %2225 }
 0x639   :  { %v2232_v4 = vadd.f32 %v2228_v20, %v2220_v61  ;;  %v2231_v27 = vadd.f32 %v2226_v24, %v2219_v14 }
 0x63a   :  { %2499 = vrot.lane.b32.xlu1 %v2494_v36, %s2891_s13  ;;  %2497 = vrot.lane.b32.xlu0 %v2493_v13, %s2891_s13 }
 0x63c   :  { %v2240_v32 = vpop.permute.xlu1 %2239  ;;  %v2238_v22 = vpop.permute.xlu0 %2237 }
 0x63d   :  { %v2244_v48 = vadd.f32 %v2240_v32, %v2232_v4  ;;  %v2243_v9 = vadd.f32 %v2238_v22, %v2231_v27 }
 0x63e   :  { %2411 = vrot.lane.b32.xlu1 %v2406_v7, %s2891_s13  ;;  %2409 = vrot.lane.b32.xlu0 %v2405_v31, %s2891_s13  ;;  %v2336_v7 = vmul.f32 %v4414_v37, %v5586_v62  ;;  %v2335_v31 = vmul.f32 %v4412_v1, %v5586_v62 }
 0x63f   :  { %v2246_v36 = vadd.f32 %v2244_v48, %v5585_v52  ;;  %v2245_v13 = vadd.f32 %v2243_v9, %v5585_v52 }
 0x640   :  { %v2256_v38 = vpop.permute.xlu1 %2255  ;;  %v2254_v44 = vpop.permute.xlu0 %2253 }
 0x641   :  { %v2260_v40 = vadd.f32 %v2256_v38, %v2248_v45  ;;  %v2259_v56 = vadd.f32 %v2254_v44, %v2247_v55  ;;  %v5587_v45 = vld [vmem:[#allocation75_spill] sm:$0xff] }
 0x642   :  { %2671 = vrot.lane.b32.xlu1 %v2666_v28, %s2891_s13  ;;  %2669 = vrot.lane.b32.xlu0 %v2665_v5, %s2891_s13  ;;  %v2362_v55 = vmul.f32 %v4480_v63, %v5587_v45  ;;  %s2854_s13 = scalar_lea.vmem %s2698_s11, 768 }
 0x643   :  { %p2855_p4 = scmp.ne.s32.totalorder %s2698_s11, %s2854_s13  ;;  %p2860_p6 = scmp.lt.s32.totalorder %s2854_s13, %s2854_s13 }
 0x644   :  { %v2268_v26 = vpop.permute.xlu1 %2267  ;;  %v2266_v17 = vpop.permute.xlu0 %2265 }
 0x645   :  { %v2272_v49 = vadd.f32 %v2268_v26, %v2260_v40  ;;  %v2271_v29 = vadd.f32 %v2266_v17, %v2259_v56  ;;  %v2361_v40 = vmul.f32 %v4478_v50, %v5587_v45  ;;  %p2861_p7 = por %p2860_p6, %p2859_p5 }
 0x647   :  { %v2276_v46 = vadd.f32 %v2274_v60, %v2272_v49  ;;  %v2275_v21 = vadd.f32 %v2273_v16, %v2271_v29  ;;  %p2862_p8 = pnand %p2861_p7, %p2855_p4 }
 0x648   :  { %v2284_v10 = vpop.permute.xlu1 %2283  ;;  %v2282_v39 = vpop.permute.xlu0 %2281 }
 0x649   :  { %v2288_v41 = vadd.f32 %v2284_v10, %v2276_v46  ;;  %v2287_v18 = vadd.f32 %v2282_v39, %v2275_v21 }
 0x64c   :  { %v2296_v6 = vpop.permute.xlu1 %2295  ;;  %v2294_v43 = vpop.permute.xlu0 %2293 }
 0x64d   :  { %v2300_v57 = vadd.f32 %v2296_v6, %v2288_v41  ;;  %v2299_v58 = vadd.f32 %v2294_v43, %v2287_v18 }
 0x64f   :  { %v2304_v8 = vadd.f32 %v2302_v3, %v2300_v57  ;;  %v2303_v30 = vadd.f32 %v2301_v51, %v2299_v58 }
 0x650   :  { %v2312_v12 = vpop.permute.xlu1 %2311  ;;  %v2310_v42 = vpop.permute.xlu0 %2309 }
 0x651   :  { %v2316_v11 = vadd.f32 %v2312_v12, %v2304_v8  ;;  %v2315_v59 = vadd.f32 %v2310_v42, %v2303_v30 }
 0x654   :  { %v2324_v47 = vpop.permute.xlu1 %2323  ;;  %v2322_v34 = vpop.permute.xlu0 %2321 }
 0x655   :  { %v2328_v61 = vadd.f32 %v2324_v47, %v2316_v11  ;;  %v2327_v14 = vadd.f32 %v2322_v34, %v2315_v59 }
 0x657   :  { %v2330_v20 = vrot.slane %v2328_v61, 1  ;;  %v2329_v24 = vrot.slane %v2327_v14, 1 }
 0x658   :  { %v2344_v4 = vpop.permute.xlu1 %2343  ;;  %v2342_v27 = vpop.permute.xlu0 %2341 }
 0x659   :  { %v2331_v32 = vsel %vm374_vm1, %v2329_v24, %v2330_v20  ;;  %v2332_v22 = vsel %vm374_vm1, %v2330_v20, %v2329_v24  ;;  %v2348_v48 = vadd.f32 %v2344_v4, %v2336_v7  ;;  %v2347_v9 = vadd.f32 %v2342_v27, %v2335_v31 }
 0x65a   :  { %v5048_v38 = vadd.f32 %v2331_v32, %v2245_v13  ;;  %v5050_v44 = vadd.f32 %v2332_v22, %v2246_v36  ;;  %v5588_v13 = vld [vmem:[#allocation80_spill] sm:$0xff]  ;;  %v5589_v22 = vld [vmem:[#allocation81_spill] sm:$0xff] }
 0x65b   :  { %v2507_v4 = vmul.f32 %v4412_v1, %v5588_v13  ;;  %v2508_v27 = vmul.f32 %v4414_v37, %v5588_v13  ;;  %v2423_v62 = vmul.f32 %v4412_v1, %v5589_v22  ;;  %v2424_v31 = vmul.f32 %v4414_v37, %v5589_v22 }
 0x65c   :  { %v2356_v54 = vpop.permute.xlu1 %2355  ;;  %v2354_v28 = vpop.permute.xlu0 %2353 }
 0x65d   :  { %v2360_v5 = vadd.f32 %v2356_v54, %v2348_v48  ;;  %v2359_v19 = vadd.f32 %v2354_v28, %v2347_v9 }
 0x65f   :  { %v2364_v56 = vadd.f32 %v2362_v55, %v2360_v5  ;;  %v2363_v26 = vadd.f32 %v2361_v40, %v2359_v19  ;;  %v5590_v40 = vld [vmem:[#allocation82_spill] sm:$0xff] }
 0x660   :  { %v2372_v17 = vpop.permute.xlu1 %2371  ;;  %v2370_v49 = vpop.permute.xlu0 %2369 }
 0x661   :  { %v5056_v29 = vadd.f32 %v2372_v17, %v2364_v56  ;;  %v2375_v53 = vadd.f32 %v2370_v49, %v2363_v26  ;;  %v2533_v56 = vmul.f32 %v4478_v50, %v5590_v40  ;;  %v2534_v26 = vmul.f32 %v4480_v63, %v5590_v40 }
 0x664   :  { %v2514_v60 = vpop.permute.xlu1 %2513  ;;  %v2382_v16 = vpop.permute.xlu0 %2381 }
 0x665   :  { %v5058_v46 = vadd.f32 %v2382_v16, %v2375_v53  ;;  %v2519_v32 = vadd.f32 %v2514_v60, %v2507_v4  ;;  %v5591_v53 = vld [vmem:[#allocation84_spill] sm:$0xff] }
 0x666   :  { %v2595_v60 = vmul.f32 %v4412_v1, %v5591_v53  ;;  %v2596_v16 = vmul.f32 %v4414_v37, %v5591_v53 }
 0x668   :  { %v2430_v21 = vpop.permute.xlu1 %2429  ;;  %v2516_v10 = vpop.permute.xlu0 %2515 }
 0x669   :  { %v2520_v7 = vadd.f32 %v2516_v10, %v2508_v27  ;;  %v2435_v54 = vadd.f32 %v2430_v21, %v2423_v62  ;;  %v5592_v10 = vld [vmem:[#allocation83_spill] sm:$0xff] }
 0x66c   :  { %v2526_v39 = vpop.permute.xlu1 %2525  ;;  %v2432_v41 = vpop.permute.xlu0 %2431 }
 0x66d   :  { %v2531_v28 = vadd.f32 %v2526_v39, %v2519_v32  ;;  %v2436_v5 = vadd.f32 %v2432_v41, %v2424_v31  ;;  %v2449_v39 = vmul.f32 %v4478_v50, %v5592_v10 }
 0x66f   :  { %v2535_v21 = vadd.f32 %v2533_v56, %v2531_v28 }
 0x670   :  { %v2602_v18 = vpop.permute.xlu1 %2601  ;;  %v2528_v6 = vpop.permute.xlu0 %2527 }
 0x671   :  { %v2532_v19 = vadd.f32 %v2528_v6, %v2520_v7  ;;  %v2450_v6 = vmul.f32 %v4480_v63, %v5592_v10 }
 0x673   :  { %v2536_v41 = vadd.f32 %v2534_v26, %v2532_v19  ;;  %v2622_v19 = vmul.f32 %v4480_v63, %v5524_v25 }
 0x674   :  { %v2442_v43 = vpop.permute.xlu1 %2441  ;;  %v2604_v57 = vpop.permute.xlu0 %2603 }
 0x675   :  { %v2447_v45 = vadd.f32 %v2442_v43, %v2435_v54  ;;  %v2607_v43 = vadd.f32 %v2602_v18, %v2595_v60 }
 0x677   :  { %v2451_v4 = vadd.f32 %v2449_v39, %v2447_v45 }
 0x678   :  { %v2614_v58 = vpop.permute.xlu1 %2613  ;;  %v2444_v0 = vpop.permute.xlu0 %2443 }
 0x679   :  { %v2448_v55 = vadd.f32 %v2444_v0, %v2436_v5  ;;  %v2608_v0 = vadd.f32 %v2604_v57, %v2596_v16  ;;  %v2619_v1 = vadd.f32 %v2614_v58, %v2607_v43  ;;  %v2621_v5 = vmul.f32 %v4478_v50, %v5524_v25  ;;  %v5594_v43 = vld [vmem:[#allocation88_spill] sm:$0xff] }
 0x67a   :  { %v2478_v50 = vmul.f32 %v4546_v23, %v5525_v15  ;;  %v2477_v25 = vmul.f32 %v4544_v35, %v5525_v15 }
 0x67b   :  { %v2452_v32 = vadd.f32 %v2450_v6, %v2448_v55 }
 0x67c   :  { %v2542_v3 = vpop.permute.xlu1 %2541  ;;  %v2616_v51 = vpop.permute.xlu0 %2615 }
 0x67d   :  { %v2547_v13 = vadd.f32 %v2542_v3, %v2535_v21  ;;  %v2620_v7 = vadd.f32 %v2616_v51, %v2608_v0  ;;  %v2562_v3 = vmul.f32 %v4546_v23, %v5523_v33 }
 0x680   :  { %v2458_v8 = vpop.permute.xlu1 %2457  ;;  %v2544_v30 = vpop.permute.xlu0 %2543 }
 0x681   :  { %v2548_v27 = vadd.f32 %v2544_v30, %v2536_v41  ;;  %v2463_v31 = vadd.f32 %v2458_v8, %v2451_v4  ;;  %v2561_v30 = vmul.f32 %v4544_v35, %v5523_v33  ;;  %v2623_v8 = vadd.f32 %v2621_v5, %v2619_v1  ;;  %v5595_v1 = vld [vmem:[#allocation89_spill] sm:$0xff] }
 0x684   :  { %v2554_v12 = vpop.permute.xlu1 %2553  ;;  %v2460_v42 = vpop.permute.xlu0 %2459 }
 0x685   :  { %v2559_v37 = vadd.f32 %v2554_v12, %v2547_v13  ;;  %v2464_v54 = vadd.f32 %v2460_v42, %v2452_v32  ;;  %v2624_v12 = vadd.f32 %v2622_v19, %v2620_v7 }
 0x687   :  { %v2563_v45 = vadd.f32 %v2561_v30, %v2559_v37 }
 0x688   :  { %v5060_v11 = vpop.permute.xlu1 %2629  ;;  %v2556_v59 = vpop.permute.xlu0 %2555 }
 0x689   :  { %v2560_v28 = vadd.f32 %v2556_v59, %v2548_v27  ;;  %v2635_v63 = vadd.f32 %v5060_v11, %v2623_v8 }
 0x68b   :  { %v2564_v59 = vadd.f32 %v2562_v3, %v2560_v28 }
 0x68c   :  { %v2470_v47 = vpop.permute.xlu1 %2469  ;;  %v2632_v34 = vpop.permute.xlu0 %2631 }
 0x68d   :  { %v2475_v18 = vadd.f32 %v2470_v47, %v2463_v31  ;;  %v2636_v47 = vadd.f32 %v2632_v34, %v2624_v12 }
 0x690   :  { %v2384_v61 = vpop.permute.xlu1 %2383  ;;  %v2472_v14 = vpop.permute.xlu0 %2471 }
 0x691   :  { %v2476_v57 = vadd.f32 %v2472_v14, %v2464_v54  ;;  %v2388_v42 = vadd.f32 %v2384_v61, %v5056_v29  ;;  %v5593_v14 = vld [vmem:[#allocation78_spill] sm:$0xff]  ;;  %v2479_v61 = vadd.f32 %v2477_v25, %v2475_v18 }
 0x692   :  { %v2390_v33 = vmul.f32 %v4546_v23, %v5593_v14  ;;  %v2389_v55 = vmul.f32 %v4544_v35, %v5593_v14 }
 0x693   :  { %v2480_v29 = vadd.f32 %v2478_v50, %v2476_v57 }
 0x694   :  { %v5062_v20 = vpop.permute.xlu1 %2643  ;;  %v5064_v24 = vpop.permute.xlu0 %2641  ;;  %v2392_v15 = vadd.f32 %v2390_v33, %v2388_v42  ;;  %v2391_v11 = vadd.f32 %v2389_v55, %v5058_v46 }
 0x695   :  { %v2648_v60 = vadd.f32 %v5062_v20, %v2636_v47  ;;  %v2647_v16 = vadd.f32 %v5064_v24, %v2635_v63 }
 0x698   :  { %v2572_v52 = vpop.permute.xlu1 %2571  ;;  %v2570_v36 = vpop.permute.xlu0 %2569 }
 0x699   :  { %v2576_v40 = vadd.f32 %v2572_v52, %v2564_v59  ;;  %v2575_v56 = vadd.f32 %v2570_v36, %v2563_v45  ;;  %v2650_v52 = vmul.f32 %v4546_v23, %v5594_v43  ;;  %v2649_v36 = vmul.f32 %v4544_v35, %v5594_v43 }
 0x69b   :  { %v2652_v24 = vadd.f32 %v2650_v52, %v2648_v60  ;;  %v2651_v27 = vadd.f32 %v2649_v36, %v2647_v16 }
 0x69c   :  { %v2488_v48 = vpop.permute.xlu1 %2487  ;;  %v2486_v9 = vpop.permute.xlu0 %2485 }
 0x69d   :  { %v2492_v34 = vadd.f32 %v2488_v48, %v2480_v29  ;;  %v2491_v21 = vadd.f32 %v2486_v9, %v2479_v61 }
 0x6a0   :  { %v2400_v17 = vpop.permute.xlu1 %2399  ;;  %v2398_v49 = vpop.permute.xlu0 %2397 }
 0x6a1   :  { %v2404_v41 = vadd.f32 %v2400_v17, %v2392_v15  ;;  %v2403_v6 = vadd.f32 %v2398_v49, %v2391_v11 }
 0x6a4   :  { %v2584_v22 = vpop.permute.xlu1 %2583  ;;  %v2582_v62 = vpop.permute.xlu0 %2581 }
 0x6a5   :  { %v2588_v10 = vadd.f32 %v2584_v22, %v2576_v40  ;;  %v2587_v39 = vadd.f32 %v2582_v62, %v2575_v56 }
 0x6a7   :  { %v2590_v48 = vrot.slane %v2588_v10, 1  ;;  %v2589_v9 = vrot.slane %v2587_v39, 1 }
 0x6a8   :  { %v2660_v58 = vpop.permute.xlu1 %2659  ;;  %v2658_v51 = vpop.permute.xlu0 %2657 }
 0x6a9   :  { %v2664_v22 = vadd.f32 %v2660_v58, %v2652_v24  ;;  %v2663_v62 = vadd.f32 %v2658_v51, %v2651_v27  ;;  %v2592_v57 = vsel %vm374_vm1, %v2590_v48, %v2589_v9  ;;  %v2591_v3 = vsel %vm374_vm1, %v2589_v9, %v2590_v48 }
 0x6ac   :  { %v2500_v26 = vpop.permute.xlu1 %2499  ;;  %v2498_v53 = vpop.permute.xlu0 %2497 }
 0x6ad   :  { %v2504_v0 = vadd.f32 %v2500_v26, %v2492_v34  ;;  %v2503_v13 = vadd.f32 %v2498_v53, %v2491_v21 }
 0x6af   :  { %v2506_v7 = vadd.f32 %v2504_v0, %v5595_v1  ;;  %v2505_v23 = vadd.f32 %v2503_v13, %v5595_v1 }
 0x6b0   :  { %v2412_v20 = vpop.permute.xlu1 %2411  ;;  %v2410_v4 = vpop.permute.xlu0 %2409 }
 0x6b1   :  { %v2416_v32 = vadd.f32 %v2412_v20, %v2404_v41  ;;  %v2415_v46 = vadd.f32 %v2410_v4, %v2403_v6  ;;  %v2594_v51 = vadd.f32 %v2592_v57, %v2506_v7  ;;  %v2593_v8 = vadd.f32 %v2591_v3, %v2505_v23 }
 0x6b3   :  { %v2418_v17 = vrot.slane %v2416_v32, 2  ;;  %v2417_v49 = vrot.slane %v2415_v46, 2 }
 0x6b4   :  { %v2672_v31 = vpop.permute.xlu1 %2671  ;;  %v2670_v35 = vpop.permute.xlu0 %2669 }
 0x6b5   :  { %v2419_v37 = vsel %vm472_vm2, %v2417_v49, %v2418_v17  ;;  %v2420_v54 = vsel %vm472_vm2, %v2418_v17, %v2417_v49  ;;  %v2676_v28 = vadd.f32 %v2672_v31, %v2664_v22  ;;  %v2675_v5 = vadd.f32 %v2670_v35, %v2663_v62 }
 0x6b6   :  { %v2421_v19 = vadd.f32 %v2419_v37, %v5048_v38  ;;  %v2422_v18 = vadd.f32 %v2420_v54, %v5050_v44 }
 0x6b7   :  { %v2678_v30 = vrot.slane %v2676_v28, 2  ;;  %v2677_v58 = vrot.slane %v2675_v5, 2 }
 0x6b8   :  { %2687 = vst.msk [vmem:[#allocation9 + $0x10] sm:$0xff] %vm2683_vm3, %v2421_v19  ;;  %2688 = vst.msk [vmem:[#allocation9 + $0x18] sm:$0xff] %vm2683_vm3, %v2422_v18 }
 0x6b9   :  { %v2679_v38 = vsel %vm472_vm2, %v2677_v58, %v2678_v30  ;;  %v2680_v44 = vsel %vm472_vm2, %v2678_v30, %v2677_v58 }
 0x6ba   :  { %v2681_v12 = vadd.f32 %v2679_v38, %v2593_v8  ;;  %v2682_v42 = vadd.f32 %v2680_v44, %v2594_v51 }
 0x6bc   :  { %2690 = vst.msk [vmem:[#allocation9 + $0x20] sm:$0xff] %vm2683_vm3, %v2681_v12  ;;  %2691 = vst.msk [vmem:[#allocation9 + $0x28] sm:$0xff] %vm2683_vm3, %v2682_v42 }
 0x6bd   :  { %2865 = shalt.err (!%p2862_p8)
}
 0x6be   :  { %s2866_s20 = scalar_lea.hbm %s5149_s3, 768 }
 0x6bf   :  { %p2867_p9 = scmp.ne.s32.totalorder %s5149_s3, %s2866_s20  ;;  %p2870_p10 = scmp.lt.u32.totalorder %s2866_s20, %s5149_s3 }
 0x6c1   :  { %p2872_p11 = pnand %p2870_p10, %p2867_p9 }
 0x6c3   :  { %2875 = shalt.err (!%p2872_p11)
}
 0x6c4   :  { %2703 = dma.vmem_to_hbm [thread:$0]  %s2698_s11, 768, %s5149_s3, [#allocation4], %s2885_s1, %s2885_s1, %s2886_s25  }
 0x6c5   :  { %2882 = dma.done.wait [#allocation4], 768  }
 0x6c6   :  { %2883 = vsyncadd [#allocation4], 4294966528 }
 0x6c7   :  { %2707 = vsyncpa [#allocation3], 1 }
 0x6c8   :  { %2708 = vsyncpa [#allocation4], 1 }
 0x6c9   :  { %2709 = vsyncpa [#allocation5], 1 }
 0x6ca   :  { %2710 = vsyncpa [#allocation8], 1 }

</bundles_post_ra>
